<compile_context>
chip_gen: v5e
topology: v5e:2x2
jax: 0.10.0
libtpu: 0.0.40
codegen_flags: <defaults>
</compile_context>

<pallas_src>
import functools

import jax
import jax.numpy as jnp
from jax import lax
from jax.experimental import pallas as pl
from jax.experimental.pallas import tpu as pltpu


def _round_up(x, m):
    return (x + m - 1) // m * m


def _mish_exact(x):
    # Exact mish(x) = x * tanh(softplus(x)); used by the pure-JAX reference only.
    sp = jnp.maximum(x, 0.0) + jnp.log1p(jnp.exp(-jnp.abs(x)))
    return x * jnp.tanh(sp)


def _mish_kernel(x):
    # mish(x) = x * tanh(softplus(x)) = x * u*(u+2) / (u*(u+2) + 2), u = exp(x).
    # One EUP transcendental (exp) + an approximate reciprocal instead of exp+log+tanh.
    u = jnp.exp(jnp.minimum(x, 20.0))
    t = u * (u + 2.0)
    m = x * t * pl.reciprocal(t + 2.0, approx=True)
    return jnp.where(x > 20.0, x, m)          # overflow guard: mish(x) ~= x for large x


def prepare_conv_pos_emb_params(w1, b1, w2, b2, groups, compute_dtype=jnp.bfloat16):
    """One-time weight prep (hoisted out of the per-call path).

    PyTorch grouped Conv1d weight [d_out, d_in/g, K] -> grouped per-tap [K, g, c_in, c_out]
    in `compute_dtype` (no block-diagonal densification). Bias [d] -> [g, 1, c] f32.
    """
    d, c_in, K = w1.shape
    assert d % groups == 0
    c = d // groups
    assert c_in == c

    def prep_w(w):
        # [g*c_out, c_in, K] -> [g, c_out, c_in, K] -> [K, g, c_in, c_out]
        return jnp.transpose(w.reshape(groups, c, c, K), (3, 0, 2, 1)).astype(compute_dtype)

    def prep_b(b):
        return b.reshape(groups, 1, c).astype(jnp.float32)

    return prep_w(w1), prep_b(b1), prep_w(w2), prep_b(b2)


def _conv_pos_emb_kernel(x_main_ref, x_halo_ref, w1_ref, b1_ref, w2_ref, b2_ref, mk_ref,
                         o_ref, xs_ref, hs_ref, *, K, pad, tile_n, n_valid):
    # x_main_ref: (1, tile_n, g, c)   bf16, rows [s-2p, s+tile_n-2p) of the padded input
    # x_halo_ref: (1, 1, 4p, g, c)    bf16, rows [s+tile_n-2p, s+tile_n+2p)
    # w*_ref    : (K, g, c, c)        bf16 grouped per-tap weights
    # b*_ref    : (g, 1, c)           f32 biases
    # mk_ref    : (1, tile_n, 1)      f32 output mask (also zeroes round-up rows)
    # o_ref     : (1, tile_n, g, c)   x.dtype output tile (t-major -> free [b,n,d] view)
    # xs_ref    : (g, tile_n+4p, c)   bf16 scratch: assembled grouped x window
    # hs_ref    : (g, tile_n+2p, c)   bf16 scratch: layer-1 activations incl. conv-2 halo
    g = w1_ref.shape[1]
    r1 = tile_n + 2 * pad
    r = tile_n + 4 * pad
    s = pl.program_id(1) * tile_n            # first output row of this tile

    # ---- assemble the grouped (g, r, c) x window: t-major blocks -> group-major scratch
    # (this in-kernel relayout replaces the old wrapper-side HBM transpose pass)
    for gi in range(g):
        xs_ref[gi, 0:tile_n, :] = x_main_ref[0, :, gi, :]
        xs_ref[gi, tile_n:r, :] = x_halo_ref[0, 0, :, gi, :]

    # ---- grouped conv 1 (+ bias, Mish) over tile_n + 2*pad rows ----
    acc = jnp.einsum('gtc,gco->gto', xs_ref[:, 0:r1, :], w1_ref[0],
                     preferred_element_type=jnp.float32)
    for k in range(1, K):
        acc = acc + jnp.einsum('gtc,gco->gto', xs_ref[:, k:k + r1, :], w1_ref[k],
                               preferred_element_type=jnp.float32)
    h = _mish_kernel(acc + b1_ref[...])
    # rows outside the true sequence [0, n_valid) must contribute exact zeros to conv 2
    row = lax.broadcasted_iota(jnp.int32, (1, r1, 1), 1) + (s - pad)
    h = jnp.where((row >= 0) & (row < n_valid), h, 0.0)
    hs_ref[...] = h.astype(hs_ref.dtype)

    # ---- grouped conv 2 (+ bias, Mish, fused output mask) over tile_n rows ----
    acc2 = jnp.einsum('gtc,gco->gto', hs_ref[:, 0:tile_n, :], w2_ref[0],
                      preferred_element_type=jnp.float32)
    for k in range(1, K):
        acc2 = acc2 + jnp.einsum('gtc,gco->gto', hs_ref[:, k:k + tile_n, :], w2_ref[k],
                                 preferred_element_type=jnp.float32)
    y = _mish_kernel(acc2 + b2_ref[...]) * mk_ref[...]     # (g, t, c) * (1, t, 1)
    y = y.astype(o_ref.dtype)
    # store t-major so the wrapper's [b, n_t, g, c] -> [b, n_t, d] reshape is free
    for gi in range(g):
        o_ref[0, :, gi, :] = y[gi]


def conv_position_embedding(x, mask, params, groups, *, seq_tile=512,
                            compute_dtype=jnp.bfloat16,
                            vmem_limit_bytes=48 * 1024 * 1024):
    """x: [b, n, d]; mask: optional [b, n] bool; params from prepare_conv_pos_emb_params."""
    b, n, d = x.shape
    w1g, b1g, w2g, b2g = params
    K = w1g.shape[0]
    g = groups
    assert d % g == 0
    c = d // g
    pad = K // 2
    assert K % 2 == 1 and pad >= 1, "kernel_size must be odd and >= 3"

    tile_n = min(_round_up(seq_tile, 16), _round_up(n, 16))
    n_t = _round_up(n, tile_n)
    n_tiles = n_t // tile_n
    hr = 4 * pad                              # halo rows per tile (conv1 + conv2 halos)
    n_p = n_t + hr                            # 2*pad front + n_t + (round-up + 2*pad) back

    # --- one fused XLA pass over x: mask, bf16 cast, zero pad; all further layout is free
    if mask is not None:
        xm = jnp.where(mask[..., None], x, jnp.zeros((), x.dtype))
        mf = mask.astype(jnp.float32)
    else:
        xm = x
        mf = jnp.ones((b, n), jnp.float32)
    xm = xm.astype(compute_dtype)
    xp = jnp.pad(xm, ((0, 0), (2 * pad, (n_t - n) + 2 * pad), (0, 0)))   # [b, n_p, d]
    xg = xp.reshape(b, n_p, g, c)                                        # free view
    # small per-tile halo blocks (rows [s+tile_n-2p, s+tile_n+2p) of the padded input)
    x_halo = jnp.stack(
        [xg[:, (j + 1) * tile_n:(j + 1) * tile_n + hr] for j in range(n_tiles)], axis=1)
    mf = jnp.pad(mf, ((0, 0), (0, n_t - n)))[..., None]                  # [b, n_t, 1]

    kernel = functools.partial(_conv_pos_emb_kernel, K=K, pad=pad,
                               tile_n=tile_n, n_valid=n)

    out_g = pl.pallas_call(
        kernel,
        out_shape=jax.ShapeDtypeStruct((b, n_t, g, c), x.dtype),
        grid_spec=pltpu.PrefetchScalarGridSpec(
            num_scalar_prefetch=0,
            grid=(b, n_tiles),
            in_specs=[
                pl.BlockSpec((1, tile_n, g, c), lambda i, j: (i, j, 0, 0)),    # x main
                pl.BlockSpec((1, 1, hr, g, c), lambda i, j: (i, j, 0, 0, 0)),  # x halo
                pl.BlockSpec((K, g, c, c), lambda i, j: (0, 0, 0, 0)),         # w1
                pl.BlockSpec((g, 1, c), lambda i, j: (0, 0, 0)),               # b1
                pl.BlockSpec((K, g, c, c), lambda i, j: (0, 0, 0, 0)),         # w2
                pl.BlockSpec((g, 1, c), lambda i, j: (0, 0, 0)),               # b2
                pl.BlockSpec((1, tile_n, 1), lambda i, j: (i, j, 0)),          # out mask
            ],
            out_specs=pl.BlockSpec((1, tile_n, g, c), lambda i, j: (i, j, 0, 0)),
            scratch_shapes=[
                pltpu.VMEM((g, tile_n + 4 * pad, c), compute_dtype),   # assembled x window
                pltpu.VMEM((g, tile_n + 2 * pad, c), compute_dtype),   # layer-1 activations
            ],
        ),
        compiler_params=pltpu.CompilerParams(
            dimension_semantics=("parallel", "parallel"),
            vmem_limit_bytes=vmem_limit_bytes),
    )(xg, x_halo, w1g, b1g, w2g, b2g, mf)

    # free view back to channels-last; output mask already applied in-kernel
    return out_g.reshape(b, n_t, d)[:, :n, :]


def _reference(x, mask, w1, b1, w2, b2, groups, cast_dtype=None):
    """Pure-JAX reference matching the PyTorch forward (optionally bf16-consistent)."""
    K = w1.shape[-1]
    pad = K // 2
    if mask is not None:
        x = jnp.where(mask[..., None], x, 0.0)

    def conv(a, w, bias):
        if cast_dtype is not None:
            a = a.astype(cast_dtype)
            w = w.astype(cast_dtype)
        y = jax.lax.conv_general_dilated(
            a, w, window_strides=(1,), padding=[(pad, pad)],
            dimension_numbers=("NCH", "OIH", "NCH"),
            feature_group_count=groups,
            preferred_element_type=jnp.float32)
        return y + bias[None, :, None].astype(jnp.float32)

    h = jnp.transpose(x, (0, 2, 1))          # [b, d, n]
    h = _mish_exact(conv(h, w1, b1))
    h = _mish_exact(conv(h, w2, b2))
    out = jnp.transpose(h, (0, 2, 1))
    if mask is not None:
        out = jnp.where(mask[..., None], out, 0.0)
    return out


if __name__ == "__main__":
    key = jax.random.PRNGKey(0)
    b, n, d = 2, 16, 32
    groups = 4
    kernel_size = 7                      # module requires odd kernel size
    c_in = d // groups

    k1, k2, k3, k4, k5 = jax.random.split(key, 5)
    bound = 1.0 / (c_in * kernel_size) ** 0.5   # PyTorch default Conv1d init bound
    w1 = jax.random.uniform(k1, (d, c_in, kernel_size), jnp.float32, -bound, bound)
    b1 = jax.random.uniform(k2, (d,), jnp.float32, -bound, bound)
    w2 = jax.random.uniform(k3, (d, c_in, kernel_size), jnp.float32, -bound, bound)
    b2 = jax.random.uniform(k4, (d,), jnp.float32, -bound, bound)

    x = jax.random.normal(k5, (b, n, d), jnp.float32)
    lengths = jnp.array([16, 12])
    mask = jnp.arange(n)[None, :] < lengths[:, None]   # [b, n] bool

    params = prepare_conv_pos_emb_params(w1, b1, w2, b2, groups)   # one-time weight prep
    out = conv_position_embedding(x, mask, params, groups)
    out = jax.block_until_ready(out)
    assert out.shape == (b, n, d)

    # Tolerances: the bf16-consistent reference isolates kernel-logic correctness; the
    # remaining deviation is the bf16 round-trip of the layer-1 activations plus the
    # approximate-reciprocal Mish. The f32 reference bounds the deliberate bf16 MXU error.
    ref_bf16 = _reference(x, mask, w1, b1, w2, b2, groups, cast_dtype=jnp.bfloat16)
    ref_f32 = _reference(x, mask, w1, b1, w2, b2, groups)
    assert jnp.allclose(out, ref_bf16, atol=1e-2, rtol=1e-2), "mismatch vs bf16 reference"
    assert jnp.allclose(out, ref_f32, atol=3e-2, rtol=3e-2), "mismatch vs f32 reference"

    # Exercise the multi-tile (sequence-tiled + halo) path as well.
    n2 = 40
    x2 = jax.random.normal(jax.random.PRNGKey(1), (b, n2, d), jnp.float32)
    mask2 = jnp.arange(n2)[None, :] < jnp.array([40, 29])[:, None]
    out2 = conv_position_embedding(x2, mask2, params, groups, seq_tile=16)
    out2 = jax.block_until_ready(out2)
    assert out2.shape == (b, n2, d)
    ref2 = _reference(x2, mask2, w1, b1, w2, b2, groups, cast_dtype=jnp.bfloat16)
    assert jnp.allclose(out2, ref2, atol=1e-2, rtol=1e-2), "mismatch (multi-tile) vs bf16 ref"

    print("KERNEL_OK")
</pallas_src>

<mosaic_0001>
module attributes {stable_mosaic.version = 11 : i64} {
  func.func @_conv_pos_emb_kernel(%arg0: i32, %arg1: i32, %arg2: memref<1x16x4x8xbf16, #tpu.memory_space<vmem>>, %arg3: memref<1x1x12x4x8xbf16, #tpu.memory_space<vmem>>, %arg4: memref<7x4x8x8xbf16, #tpu.memory_space<vmem>>, %arg5: memref<4x1x8xf32, #tpu.memory_space<vmem>>, %arg6: memref<7x4x8x8xbf16, #tpu.memory_space<vmem>>, %arg7: memref<4x1x8xf32, #tpu.memory_space<vmem>>, %arg8: memref<1x16x1xf32, #tpu.memory_space<vmem>>, %arg9: memref<1x16x4x8xf32, #tpu.memory_space<vmem>>, %arg10: memref<4x28x8xbf16, #tpu.memory_space<vmem>>, %arg11: memref<4x22x8xbf16, #tpu.memory_space<vmem>>) attributes {dimension_semantics = [#tpu.dimension_semantics<parallel>, #tpu.dimension_semantics<parallel>], iteration_bounds = array<i64: 2, 1>, scalar_prefetch = 0 : i64, scratch_operands = 2 : i64, tpu.core_type = #tpu.core_type<tc>, window_params = [{transform_indices = @transform_0, window_bounds = array<i64: 1, 16, 4, 8>}, {transform_indices = @transform_1, window_bounds = array<i64: 1, 1, 12, 4, 8>}, {pipeline_mode = #tpu.pipeline_mode<synchronous>, transform_indices = @transform_2, window_bounds = array<i64: 7, 4, 8, 8>}, {pipeline_mode = #tpu.pipeline_mode<synchronous>, transform_indices = @transform_3, window_bounds = array<i64: 4, 1, 8>}, {pipeline_mode = #tpu.pipeline_mode<synchronous>, transform_indices = @transform_4, window_bounds = array<i64: 7, 4, 8, 8>}, {pipeline_mode = #tpu.pipeline_mode<synchronous>, transform_indices = @transform_5, window_bounds = array<i64: 4, 1, 8>}, {transform_indices = @transform_6, window_bounds = array<i64: 1, 16, 1>}, {transform_indices = @transform_7, window_bounds = array<i64: 1, 16, 4, 8>}]} {
    %c16_i32 = arith.constant 16 : i32
    %0 = arith.muli %arg1, %c16_i32 : i32
    %c0 = arith.constant 0 : index
    %c0_0 = arith.constant 0 : index
    %c0_1 = arith.constant 0 : index
    %c0_2 = arith.constant 0 : index
    %1 = vector.load %arg2[%c0, %c0_0, %c0_1, %c0_2] : memref<1x16x4x8xbf16, #tpu.memory_space<vmem>>, vector<1x16x1x8xbf16>
    %2 = vector.shape_cast %1 : vector<1x16x1x8xbf16> to vector<16x8xbf16>
    %c0_3 = arith.constant 0 : index
    %c0_4 = arith.constant 0 : index
    %c0_5 = arith.constant 0 : index
    %3 = vector.load %arg10[%c0_3, %c0_4, %c0_5] : memref<4x28x8xbf16, #tpu.memory_space<vmem>>, vector<1x16x8xbf16>
    %4 = vector.shape_cast %3 : vector<1x16x8xbf16> to vector<16x8xbf16>
    %5 = vector.shape_cast %2 : vector<16x8xbf16> to vector<1x16x8xbf16>
    tpu.vector_store %arg10[%c0_3, %c0_4, %c0_5], %5 {strides = array<i32>} : memref<4x28x8xbf16, #tpu.memory_space<vmem>>, vector<1x16x8xbf16>,
    %c0_6 = arith.constant 0 : index
    %c0_7 = arith.constant 0 : index
    %c0_8 = arith.constant 0 : index
    %c0_9 = arith.constant 0 : index
    %c0_10 = arith.constant 0 : index
    %6 = vector.load %arg3[%c0_6, %c0_7, %c0_8, %c0_9, %c0_10] : memref<1x1x12x4x8xbf16, #tpu.memory_space<vmem>>, vector<1x1x12x1x8xbf16>
    %7 = vector.shape_cast %6 : vector<1x1x12x1x8xbf16> to vector<12x8xbf16>
    %c0_11 = arith.constant 0 : index
    %c16 = arith.constant 16 : index
    %c0_12 = arith.constant 0 : index
    %8 = vector.load %arg10[%c0_11, %c16, %c0_12] : memref<4x28x8xbf16, #tpu.memory_space<vmem>>, vector<1x12x8xbf16>
    %9 = vector.shape_cast %8 : vector<1x12x8xbf16> to vector<12x8xbf16>
    %10 = vector.shape_cast %7 : vector<12x8xbf16> to vector<1x12x8xbf16>
    tpu.vector_store %arg10[%c0_11, %c16, %c0_12], %10 {strides = array<i32>} : memref<4x28x8xbf16, #tpu.memory_space<vmem>>, vector<1x12x8xbf16>,
    %c0_13 = arith.constant 0 : index
    %c0_14 = arith.constant 0 : index
    %c1 = arith.constant 1 : index
    %c0_15 = arith.constant 0 : index
    %11 = vector.load %arg2[%c0_13, %c0_14, %c1, %c0_15] : memref<1x16x4x8xbf16, #tpu.memory_space<vmem>>, vector<1x16x1x8xbf16>
    %12 = vector.shape_cast %11 : vector<1x16x1x8xbf16> to vector<16x8xbf16>
    %c1_16 = arith.constant 1 : index
    %c0_17 = arith.constant 0 : index
    %c0_18 = arith.constant 0 : index
    %13 = vector.load %arg10[%c1_16, %c0_17, %c0_18] : memref<4x28x8xbf16, #tpu.memory_space<vmem>>, vector<1x16x8xbf16>
    %14 = vector.shape_cast %13 : vector<1x16x8xbf16> to vector<16x8xbf16>
    %15 = vector.shape_cast %12 : vector<16x8xbf16> to vector<1x16x8xbf16>
    tpu.vector_store %arg10[%c1_16, %c0_17, %c0_18], %15 {strides = array<i32>} : memref<4x28x8xbf16, #tpu.memory_space<vmem>>, vector<1x16x8xbf16>,
    %c0_19 = arith.constant 0 : index
    %c0_20 = arith.constant 0 : index
    %c0_21 = arith.constant 0 : index
    %c1_22 = arith.constant 1 : index
    %c0_23 = arith.constant 0 : index
    %16 = vector.load %arg3[%c0_19, %c0_20, %c0_21, %c1_22, %c0_23] : memref<1x1x12x4x8xbf16, #tpu.memory_space<vmem>>, vector<1x1x12x1x8xbf16>
    %17 = vector.shape_cast %16 : vector<1x1x12x1x8xbf16> to vector<12x8xbf16>
    %c1_24 = arith.constant 1 : index
    %c16_25 = arith.constant 16 : index
    %c0_26 = arith.constant 0 : index
    %18 = vector.load %arg10[%c1_24, %c16_25, %c0_26] : memref<4x28x8xbf16, #tpu.memory_space<vmem>>, vector<1x12x8xbf16>
    %19 = vector.shape_cast %18 : vector<1x12x8xbf16> to vector<12x8xbf16>
    %20 = vector.shape_cast %17 : vector<12x8xbf16> to vector<1x12x8xbf16>
    tpu.vector_store %arg10[%c1_24, %c16_25, %c0_26], %20 {strides = array<i32>} : memref<4x28x8xbf16, #tpu.memory_space<vmem>>, vector<1x12x8xbf16>,
    %c0_27 = arith.constant 0 : index
    %c0_28 = arith.constant 0 : index
    %c2 = arith.constant 2 : index
    %c0_29 = arith.constant 0 : index
    %21 = vector.load %arg2[%c0_27, %c0_28, %c2, %c0_29] : memref<1x16x4x8xbf16, #tpu.memory_space<vmem>>, vector<1x16x1x8xbf16>
    %22 = vector.shape_cast %21 : vector<1x16x1x8xbf16> to vector<16x8xbf16>
    %c2_30 = arith.constant 2 : index
    %c0_31 = arith.constant 0 : index
    %c0_32 = arith.constant 0 : index
    %23 = vector.load %arg10[%c2_30, %c0_31, %c0_32] : memref<4x28x8xbf16, #tpu.memory_space<vmem>>, vector<1x16x8xbf16>
    %24 = vector.shape_cast %23 : vector<1x16x8xbf16> to vector<16x8xbf16>
    %25 = vector.shape_cast %22 : vector<16x8xbf16> to vector<1x16x8xbf16>
    tpu.vector_store %arg10[%c2_30, %c0_31, %c0_32], %25 {strides = array<i32>} : memref<4x28x8xbf16, #tpu.memory_space<vmem>>, vector<1x16x8xbf16>,
    %c0_33 = arith.constant 0 : index
    %c0_34 = arith.constant 0 : index
    %c0_35 = arith.constant 0 : index
    %c2_36 = arith.constant 2 : index
    %c0_37 = arith.constant 0 : index
    %26 = vector.load %arg3[%c0_33, %c0_34, %c0_35, %c2_36, %c0_37] : memref<1x1x12x4x8xbf16, #tpu.memory_space<vmem>>, vector<1x1x12x1x8xbf16>
    %27 = vector.shape_cast %26 : vector<1x1x12x1x8xbf16> to vector<12x8xbf16>
    %c2_38 = arith.constant 2 : index
    %c16_39 = arith.constant 16 : index
    %c0_40 = arith.constant 0 : index
    %28 = vector.load %arg10[%c2_38, %c16_39, %c0_40] : memref<4x28x8xbf16, #tpu.memory_space<vmem>>, vector<1x12x8xbf16>
    %29 = vector.shape_cast %28 : vector<1x12x8xbf16> to vector<12x8xbf16>
    %30 = vector.shape_cast %27 : vector<12x8xbf16> to vector<1x12x8xbf16>
    tpu.vector_store %arg10[%c2_38, %c16_39, %c0_40], %30 {strides = array<i32>} : memref<4x28x8xbf16, #tpu.memory_space<vmem>>, vector<1x12x8xbf16>,
    %c0_41 = arith.constant 0 : index
    %c0_42 = arith.constant 0 : index
    %c3 = arith.constant 3 : index
    %c0_43 = arith.constant 0 : index
    %31 = vector.load %arg2[%c0_41, %c0_42, %c3, %c0_43] : memref<1x16x4x8xbf16, #tpu.memory_space<vmem>>, vector<1x16x1x8xbf16>
    %32 = vector.shape_cast %31 : vector<1x16x1x8xbf16> to vector<16x8xbf16>
    %c3_44 = arith.constant 3 : index
    %c0_45 = arith.constant 0 : index
    %c0_46 = arith.constant 0 : index
    %33 = vector.load %arg10[%c3_44, %c0_45, %c0_46] : memref<4x28x8xbf16, #tpu.memory_space<vmem>>, vector<1x16x8xbf16>
    %34 = vector.shape_cast %33 : vector<1x16x8xbf16> to vector<16x8xbf16>
    %35 = vector.shape_cast %32 : vector<16x8xbf16> to vector<1x16x8xbf16>
    tpu.vector_store %arg10[%c3_44, %c0_45, %c0_46], %35 {strides = array<i32>} : memref<4x28x8xbf16, #tpu.memory_space<vmem>>, vector<1x16x8xbf16>,
    %c0_47 = arith.constant 0 : index
    %c0_48 = arith.constant 0 : index
    %c0_49 = arith.constant 0 : index
    %c3_50 = arith.constant 3 : index
    %c0_51 = arith.constant 0 : index
    %36 = vector.load %arg3[%c0_47, %c0_48, %c0_49, %c3_50, %c0_51] : memref<1x1x12x4x8xbf16, #tpu.memory_space<vmem>>, vector<1x1x12x1x8xbf16>
    %37 = vector.shape_cast %36 : vector<1x1x12x1x8xbf16> to vector<12x8xbf16>
    %c3_52 = arith.constant 3 : index
    %c16_53 = arith.constant 16 : index
    %c0_54 = arith.constant 0 : index
    %38 = vector.load %arg10[%c3_52, %c16_53, %c0_54] : memref<4x28x8xbf16, #tpu.memory_space<vmem>>, vector<1x12x8xbf16>
    %39 = vector.shape_cast %38 : vector<1x12x8xbf16> to vector<12x8xbf16>
    %40 = vector.shape_cast %37 : vector<12x8xbf16> to vector<1x12x8xbf16>
    tpu.vector_store %arg10[%c3_52, %c16_53, %c0_54], %40 {strides = array<i32>} : memref<4x28x8xbf16, #tpu.memory_space<vmem>>, vector<1x12x8xbf16>,
    %c0_55 = arith.constant 0 : index
    %c0_56 = arith.constant 0 : index
    %c0_57 = arith.constant 0 : index
    %41 = vector.load %arg10[%c0_55, %c0_56, %c0_57] : memref<4x28x8xbf16, #tpu.memory_space<vmem>>, vector<4x22x8xbf16>
    %c0_58 = arith.constant 0 : index
    %c0_59 = arith.constant 0 : index
    %c0_60 = arith.constant 0 : index
    %c0_61 = arith.constant 0 : index
    %42 = vector.load %arg4[%c0_58, %c0_59, %c0_60, %c0_61] : memref<7x4x8x8xbf16, #tpu.memory_space<vmem>>, vector<1x4x8x8xbf16>
    %43 = vector.shape_cast %42 : vector<1x4x8x8xbf16> to vector<4x8x8xbf16>
    "tpu.trace_start"() <{level = 10 : i32, message = "gtc,gco->gto"}> : () -> ()
    %cst = arith.constant dense<0.000000e+00> : vector<4x22x8xf32>
    %44 = tpu.matmul %41, %43, %cst {dimension_numbers = #tpu.dot_dimension_numbers<[2], [1], [1], [2], [0, 0, 0, 1, 1, 2], [0], [0]>} : vector<4x22x8xbf16>, vector<4x8x8xbf16>, vector<4x22x8xf32> -> vector<4x22x8xf32>
    "tpu.trace_stop"() : () -> ()
    %c0_62 = arith.constant 0 : index
    %c1_63 = arith.constant 1 : index
    %c0_64 = arith.constant 0 : index
    %45 = vector.load %arg10[%c0_62, %c1_63, %c0_64] : memref<4x28x8xbf16, #tpu.memory_space<vmem>>, vector<4x22x8xbf16>
    %c1_65 = arith.constant 1 : index
    %c0_66 = arith.constant 0 : index
    %c0_67 = arith.constant 0 : index
    %c0_68 = arith.constant 0 : index
    %46 = vector.load %arg4[%c1_65, %c0_66, %c0_67, %c0_68] : memref<7x4x8x8xbf16, #tpu.memory_space<vmem>>, vector<1x4x8x8xbf16>
    %47 = vector.shape_cast %46 : vector<1x4x8x8xbf16> to vector<4x8x8xbf16>
    "tpu.trace_start"() <{level = 10 : i32, message = "gtc,gco->gto"}> : () -> ()
    %cst_69 = arith.constant dense<0.000000e+00> : vector<4x22x8xf32>
    %48 = tpu.matmul %45, %47, %cst_69 {dimension_numbers = #tpu.dot_dimension_numbers<[2], [1], [1], [2], [0, 0, 0, 1, 1, 2], [0], [0]>} : vector<4x22x8xbf16>, vector<4x8x8xbf16>, vector<4x22x8xf32> -> vector<4x22x8xf32>
    "tpu.trace_stop"() : () -> ()
    %49 = arith.addf %44, %48 : vector<4x22x8xf32>
    %c0_70 = arith.constant 0 : index
    %c2_71 = arith.constant 2 : index
    %c0_72 = arith.constant 0 : index
    %50 = vector.load %arg10[%c0_70, %c2_71, %c0_72] : memref<4x28x8xbf16, #tpu.memory_space<vmem>>, vector<4x22x8xbf16>
    %c2_73 = arith.constant 2 : index
    %c0_74 = arith.constant 0 : index
    %c0_75 = arith.constant 0 : index
    %c0_76 = arith.constant 0 : index
    %51 = vector.load %arg4[%c2_73, %c0_74, %c0_75, %c0_76] : memref<7x4x8x8xbf16, #tpu.memory_space<vmem>>, vector<1x4x8x8xbf16>
    %52 = vector.shape_cast %51 : vector<1x4x8x8xbf16> to vector<4x8x8xbf16>
    "tpu.trace_start"() <{level = 10 : i32, message = "gtc,gco->gto"}> : () -> ()
    %cst_77 = arith.constant dense<0.000000e+00> : vector<4x22x8xf32>
    %53 = tpu.matmul %50, %52, %cst_77 {dimension_numbers = #tpu.dot_dimension_numbers<[2], [1], [1], [2], [0, 0, 0, 1, 1, 2], [0], [0]>} : vector<4x22x8xbf16>, vector<4x8x8xbf16>, vector<4x22x8xf32> -> vector<4x22x8xf32>
    "tpu.trace_stop"() : () -> ()
    %54 = arith.addf %49, %53 : vector<4x22x8xf32>
    %c0_78 = arith.constant 0 : index
    %c3_79 = arith.constant 3 : index
    %c0_80 = arith.constant 0 : index
    %55 = vector.load %arg10[%c0_78, %c3_79, %c0_80] : memref<4x28x8xbf16, #tpu.memory_space<vmem>>, vector<4x22x8xbf16>
    %c3_81 = arith.constant 3 : index
    %c0_82 = arith.constant 0 : index
    %c0_83 = arith.constant 0 : index
    %c0_84 = arith.constant 0 : index
    %56 = vector.load %arg4[%c3_81, %c0_82, %c0_83, %c0_84] : memref<7x4x8x8xbf16, #tpu.memory_space<vmem>>, vector<1x4x8x8xbf16>
    %57 = vector.shape_cast %56 : vector<1x4x8x8xbf16> to vector<4x8x8xbf16>
    "tpu.trace_start"() <{level = 10 : i32, message = "gtc,gco->gto"}> : () -> ()
    %cst_85 = arith.constant dense<0.000000e+00> : vector<4x22x8xf32>
    %58 = tpu.matmul %55, %57, %cst_85 {dimension_numbers = #tpu.dot_dimension_numbers<[2], [1], [1], [2], [0, 0, 0, 1, 1, 2], [0], [0]>} : vector<4x22x8xbf16>, vector<4x8x8xbf16>, vector<4x22x8xf32> -> vector<4x22x8xf32>
    "tpu.trace_stop"() : () -> ()
    %59 = arith.addf %54, %58 : vector<4x22x8xf32>
    %c0_86 = arith.constant 0 : index
    %c4 = arith.constant 4 : index
    %c0_87 = arith.constant 0 : index
    %60 = vector.load %arg10[%c0_86, %c4, %c0_87] : memref<4x28x8xbf16, #tpu.memory_space<vmem>>, vector<4x22x8xbf16>
    %c4_88 = arith.constant 4 : index
    %c0_89 = arith.constant 0 : index
    %c0_90 = arith.constant 0 : index
    %c0_91 = arith.constant 0 : index
    %61 = vector.load %arg4[%c4_88, %c0_89, %c0_90, %c0_91] : memref<7x4x8x8xbf16, #tpu.memory_space<vmem>>, vector<1x4x8x8xbf16>
    %62 = vector.shape_cast %61 : vector<1x4x8x8xbf16> to vector<4x8x8xbf16>
    "tpu.trace_start"() <{level = 10 : i32, message = "gtc,gco->gto"}> : () -> ()
    %cst_92 = arith.constant dense<0.000000e+00> : vector<4x22x8xf32>
    %63 = tpu.matmul %60, %62, %cst_92 {dimension_numbers = #tpu.dot_dimension_numbers<[2], [1], [1], [2], [0, 0, 0, 1, 1, 2], [0], [0]>} : vector<4x22x8xbf16>, vector<4x8x8xbf16>, vector<4x22x8xf32> -> vector<4x22x8xf32>
    "tpu.trace_stop"() : () -> ()
    %64 = arith.addf %59, %63 : vector<4x22x8xf32>
    %c0_93 = arith.constant 0 : index
    %c5 = arith.constant 5 : index
    %c0_94 = arith.constant 0 : index
    %65 = vector.load %arg10[%c0_93, %c5, %c0_94] : memref<4x28x8xbf16, #tpu.memory_space<vmem>>, vector<4x22x8xbf16>
    %c5_95 = arith.constant 5 : index
    %c0_96 = arith.constant 0 : index
    %c0_97 = arith.constant 0 : index
    %c0_98 = arith.constant 0 : index
    %66 = vector.load %arg4[%c5_95, %c0_96, %c0_97, %c0_98] : memref<7x4x8x8xbf16, #tpu.memory_space<vmem>>, vector<1x4x8x8xbf16>
    %67 = vector.shape_cast %66 : vector<1x4x8x8xbf16> to vector<4x8x8xbf16>
    "tpu.trace_start"() <{level = 10 : i32, message = "gtc,gco->gto"}> : () -> ()
    %cst_99 = arith.constant dense<0.000000e+00> : vector<4x22x8xf32>
    %68 = tpu.matmul %65, %67, %cst_99 {dimension_numbers = #tpu.dot_dimension_numbers<[2], [1], [1], [2], [0, 0, 0, 1, 1, 2], [0], [0]>} : vector<4x22x8xbf16>, vector<4x8x8xbf16>, vector<4x22x8xf32> -> vector<4x22x8xf32>
    "tpu.trace_stop"() : () -> ()
    %69 = arith.addf %64, %68 : vector<4x22x8xf32>
    %c0_100 = arith.constant 0 : index
    %c6 = arith.constant 6 : index
    %c0_101 = arith.constant 0 : index
    %70 = vector.load %arg10[%c0_100, %c6, %c0_101] : memref<4x28x8xbf16, #tpu.memory_space<vmem>>, vector<4x22x8xbf16>
    %c6_102 = arith.constant 6 : index
    %c0_103 = arith.constant 0 : index
    %c0_104 = arith.constant 0 : index
    %c0_105 = arith.constant 0 : index
    %71 = vector.load %arg4[%c6_102, %c0_103, %c0_104, %c0_105] : memref<7x4x8x8xbf16, #tpu.memory_space<vmem>>, vector<1x4x8x8xbf16>
    %72 = vector.shape_cast %71 : vector<1x4x8x8xbf16> to vector<4x8x8xbf16>
    "tpu.trace_start"() <{level = 10 : i32, message = "gtc,gco->gto"}> : () -> ()
    %cst_106 = arith.constant dense<0.000000e+00> : vector<4x22x8xf32>
    %73 = tpu.matmul %70, %72, %cst_106 {dimension_numbers = #tpu.dot_dimension_numbers<[2], [1], [1], [2], [0, 0, 0, 1, 1, 2], [0], [0]>} : vector<4x22x8xbf16>, vector<4x8x8xbf16>, vector<4x22x8xf32> -> vector<4x22x8xf32>
    "tpu.trace_stop"() : () -> ()
    %74 = arith.addf %69, %73 : vector<4x22x8xf32>
    %c0_107 = arith.constant 0 : index
    %c0_108 = arith.constant 0 : index
    %c0_109 = arith.constant 0 : index
    %75 = vector.load %arg5[%c0_107, %c0_108, %c0_109] : memref<4x1x8xf32, #tpu.memory_space<vmem>>, vector<4x1x8xf32>
    %76 = vector.broadcast %75 : vector<4x1x8xf32> to vector<4x22x8xf32>
    %77 = arith.addf %74, %76 : vector<4x22x8xf32>
    %cst_110 = arith.constant 2.000000e+01 : f32
    %78 = vector.broadcast %cst_110 : f32 to vector<4x22x8xf32>
    %79 = arith.minimumf %77, %78 : vector<4x22x8xf32>
    %80 = math.exp %79 : vector<4x22x8xf32>
    %cst_111 = arith.constant 2.000000e+00 : f32
    %81 = vector.broadcast %cst_111 : f32 to vector<4x22x8xf32>
    %82 = arith.addf %80, %81 : vector<4x22x8xf32>
    %83 = arith.mulf %80, %82 : vector<4x22x8xf32>
    %84 = arith.mulf %77, %83 : vector<4x22x8xf32>
    %cst_112 = arith.constant 2.000000e+00 : f32
    %85 = vector.broadcast %cst_112 : f32 to vector<4x22x8xf32>
    %86 = arith.addf %83, %85 : vector<4x22x8xf32>
    %87 = tpu.reciprocal %86 {approx = true} : vector<4x22x8xf32> -> vector<4x22x8xf32>
    %88 = arith.mulf %84, %87 : vector<4x22x8xf32>
    %cst_113 = arith.constant 2.000000e+01 : f32
    %89 = vector.broadcast %cst_113 : f32 to vector<4x22x8xf32>
    %90 = arith.cmpf ogt, %77, %89 : vector<4x22x8xf32>
    %91 = arith.select %90, %77, %88 : vector<4x22x8xi1>, vector<4x22x8xf32>
    %92 = tpu.iota {dimensions = array<i32: 1>} : vector<1x22x1xi32>
    %c3_i32 = arith.constant 3 : i32
    %93 = arith.subi %0, %c3_i32 : i32
    %94 = vector.broadcast %93 : i32 to vector<1x22x1xi32>
    %95 = arith.addi %92, %94 : vector<1x22x1xi32>
    %c0_i32 = arith.constant 0 : i32
    %96 = vector.broadcast %c0_i32 : i32 to vector<1x22x1xi32>
    %97 = arith.cmpi sge, %95, %96 : vector<1x22x1xi32>
    %c16_i32_114 = arith.constant 16 : i32
    %98 = vector.broadcast %c16_i32_114 : i32 to vector<1x22x1xi32>
    %99 = arith.cmpi slt, %95, %98 : vector<1x22x1xi32>
    %100 = arith.andi %97, %99 : vector<1x22x1xi1>
    %cst_115 = arith.constant 0.000000e+00 : f32
    %101 = vector.shape_cast %100 : vector<1x22x1xi1> to vector<1x22x1xi1>
    %102 = vector.broadcast %101 : vector<1x22x1xi1> to vector<4x22x8xi1>
    %103 = vector.broadcast %cst_115 : f32 to vector<4x22x8xf32>
    %104 = arith.select %102, %91, %103 : vector<4x22x8xi1>, vector<4x22x8xf32>
    %105 = arith.truncf %104 : vector<4x22x8xf32> to vector<4x22x8xbf16>
    %c0_116 = arith.constant 0 : index
    %c0_117 = arith.constant 0 : index
    %c0_118 = arith.constant 0 : index
    %106 = vector.load %arg11[%c0_116, %c0_117, %c0_118] : memref<4x22x8xbf16, #tpu.memory_space<vmem>>, vector<4x22x8xbf16>
    tpu.vector_store %arg11[%c0_116, %c0_117, %c0_118], %105 {strides = array<i32>} : memref<4x22x8xbf16, #tpu.memory_space<vmem>>, vector<4x22x8xbf16>,
    %c0_119 = arith.constant 0 : index
    %c0_120 = arith.constant 0 : index
    %c0_121 = arith.constant 0 : index
    %107 = vector.load %arg11[%c0_119, %c0_120, %c0_121] : memref<4x22x8xbf16, #tpu.memory_space<vmem>>, vector<4x16x8xbf16>
    %c0_122 = arith.constant 0 : index
    %c0_123 = arith.constant 0 : index
    %c0_124 = arith.constant 0 : index
    %c0_125 = arith.constant 0 : index
    %108 = vector.load %arg6[%c0_122, %c0_123, %c0_124, %c0_125] : memref<7x4x8x8xbf16, #tpu.memory_space<vmem>>, vector<1x4x8x8xbf16>
    %109 = vector.shape_cast %108 : vector<1x4x8x8xbf16> to vector<4x8x8xbf16>
    "tpu.trace_start"() <{level = 10 : i32, message = "gtc,gco->gto"}> : () -> ()
    %cst_126 = arith.constant dense<0.000000e+00> : vector<4x16x8xf32>
    %110 = tpu.matmul %107, %109, %cst_126 {dimension_numbers = #tpu.dot_dimension_numbers<[2], [1], [1], [2], [0, 0, 0, 1, 1, 2], [0], [0]>} : vector<4x16x8xbf16>, vector<4x8x8xbf16>, vector<4x16x8xf32> -> vector<4x16x8xf32>
    "tpu.trace_stop"() : () -> ()
    %c0_127 = arith.constant 0 : index
    %c1_128 = arith.constant 1 : index
    %c0_129 = arith.constant 0 : index
    %111 = vector.load %arg11[%c0_127, %c1_128, %c0_129] : memref<4x22x8xbf16, #tpu.memory_space<vmem>>, vector<4x16x8xbf16>
    %c1_130 = arith.constant 1 : index
    %c0_131 = arith.constant 0 : index
    %c0_132 = arith.constant 0 : index
    %c0_133 = arith.constant 0 : index
    %112 = vector.load %arg6[%c1_130, %c0_131, %c0_132, %c0_133] : memref<7x4x8x8xbf16, #tpu.memory_space<vmem>>, vector<1x4x8x8xbf16>
    %113 = vector.shape_cast %112 : vector<1x4x8x8xbf16> to vector<4x8x8xbf16>
    "tpu.trace_start"() <{level = 10 : i32, message = "gtc,gco->gto"}> : () -> ()
    %cst_134 = arith.constant dense<0.000000e+00> : vector<4x16x8xf32>
    %114 = tpu.matmul %111, %113, %cst_134 {dimension_numbers = #tpu.dot_dimension_numbers<[2], [1], [1], [2], [0, 0, 0, 1, 1, 2], [0], [0]>} : vector<4x16x8xbf16>, vector<4x8x8xbf16>, vector<4x16x8xf32> -> vector<4x16x8xf32>
    "tpu.trace_stop"() : () -> ()
    %115 = arith.addf %110, %114 : vector<4x16x8xf32>
    %c0_135 = arith.constant 0 : index
    %c2_136 = arith.constant 2 : index
    %c0_137 = arith.constant 0 : index
    %116 = vector.load %arg11[%c0_135, %c2_136, %c0_137] : memref<4x22x8xbf16, #tpu.memory_space<vmem>>, vector<4x16x8xbf16>
    %c2_138 = arith.constant 2 : index
    %c0_139 = arith.constant 0 : index
    %c0_140 = arith.constant 0 : index
    %c0_141 = arith.constant 0 : index
    %117 = vector.load %arg6[%c2_138, %c0_139, %c0_140, %c0_141] : memref<7x4x8x8xbf16, #tpu.memory_space<vmem>>, vector<1x4x8x8xbf16>
    %118 = vector.shape_cast %117 : vector<1x4x8x8xbf16> to vector<4x8x8xbf16>
    "tpu.trace_start"() <{level = 10 : i32, message = "gtc,gco->gto"}> : () -> ()
    %cst_142 = arith.constant dense<0.000000e+00> : vector<4x16x8xf32>
    %119 = tpu.matmul %116, %118, %cst_142 {dimension_numbers = #tpu.dot_dimension_numbers<[2], [1], [1], [2], [0, 0, 0, 1, 1, 2], [0], [0]>} : vector<4x16x8xbf16>, vector<4x8x8xbf16>, vector<4x16x8xf32> -> vector<4x16x8xf32>
    "tpu.trace_stop"() : () -> ()
    %120 = arith.addf %115, %119 : vector<4x16x8xf32>
    %c0_143 = arith.constant 0 : index
    %c3_144 = arith.constant 3 : index
    %c0_145 = arith.constant 0 : index
    %121 = vector.load %arg11[%c0_143, %c3_144, %c0_145] : memref<4x22x8xbf16, #tpu.memory_space<vmem>>, vector<4x16x8xbf16>
    %c3_146 = arith.constant 3 : index
    %c0_147 = arith.constant 0 : index
    %c0_148 = arith.constant 0 : index
    %c0_149 = arith.constant 0 : index
    %122 = vector.load %arg6[%c3_146, %c0_147, %c0_148, %c0_149] : memref<7x4x8x8xbf16, #tpu.memory_space<vmem>>, vector<1x4x8x8xbf16>
    %123 = vector.shape_cast %122 : vector<1x4x8x8xbf16> to vector<4x8x8xbf16>
    "tpu.trace_start"() <{level = 10 : i32, message = "gtc,gco->gto"}> : () -> ()
    %cst_150 = arith.constant dense<0.000000e+00> : vector<4x16x8xf32>
    %124 = tpu.matmul %121, %123, %cst_150 {dimension_numbers = #tpu.dot_dimension_numbers<[2], [1], [1], [2], [0, 0, 0, 1, 1, 2], [0], [0]>} : vector<4x16x8xbf16>, vector<4x8x8xbf16>, vector<4x16x8xf32> -> vector<4x16x8xf32>
    "tpu.trace_stop"() : () -> ()
    %125 = arith.addf %120, %124 : vector<4x16x8xf32>
    %c0_151 = arith.constant 0 : index
    %c4_152 = arith.constant 4 : index
    %c0_153 = arith.constant 0 : index
    %126 = vector.load %arg11[%c0_151, %c4_152, %c0_153] : memref<4x22x8xbf16, #tpu.memory_space<vmem>>, vector<4x16x8xbf16>
    %c4_154 = arith.constant 4 : index
    %c0_155 = arith.constant 0 : index
    %c0_156 = arith.constant 0 : index
    %c0_157 = arith.constant 0 : index
    %127 = vector.load %arg6[%c4_154, %c0_155, %c0_156, %c0_157] : memref<7x4x8x8xbf16, #tpu.memory_space<vmem>>, vector<1x4x8x8xbf16>
    %128 = vector.shape_cast %127 : vector<1x4x8x8xbf16> to vector<4x8x8xbf16>
    "tpu.trace_start"() <{level = 10 : i32, message = "gtc,gco->gto"}> : () -> ()
    %cst_158 = arith.constant dense<0.000000e+00> : vector<4x16x8xf32>
    %129 = tpu.matmul %126, %128, %cst_158 {dimension_numbers = #tpu.dot_dimension_numbers<[2], [1], [1], [2], [0, 0, 0, 1, 1, 2], [0], [0]>} : vector<4x16x8xbf16>, vector<4x8x8xbf16>, vector<4x16x8xf32> -> vector<4x16x8xf32>
    "tpu.trace_stop"() : () -> ()
    %130 = arith.addf %125, %129 : vector<4x16x8xf32>
    %c0_159 = arith.constant 0 : index
    %c5_160 = arith.constant 5 : index
    %c0_161 = arith.constant 0 : index
    %131 = vector.load %arg11[%c0_159, %c5_160, %c0_161] : memref<4x22x8xbf16, #tpu.memory_space<vmem>>, vector<4x16x8xbf16>
    %c5_162 = arith.constant 5 : index
    %c0_163 = arith.constant 0 : index
    %c0_164 = arith.constant 0 : index
    %c0_165 = arith.constant 0 : index
    %132 = vector.load %arg6[%c5_162, %c0_163, %c0_164, %c0_165] : memref<7x4x8x8xbf16, #tpu.memory_space<vmem>>, vector<1x4x8x8xbf16>
    %133 = vector.shape_cast %132 : vector<1x4x8x8xbf16> to vector<4x8x8xbf16>
    "tpu.trace_start"() <{level = 10 : i32, message = "gtc,gco->gto"}> : () -> ()
    %cst_166 = arith.constant dense<0.000000e+00> : vector<4x16x8xf32>
    %134 = tpu.matmul %131, %133, %cst_166 {dimension_numbers = #tpu.dot_dimension_numbers<[2], [1], [1], [2], [0, 0, 0, 1, 1, 2], [0], [0]>} : vector<4x16x8xbf16>, vector<4x8x8xbf16>, vector<4x16x8xf32> -> vector<4x16x8xf32>
    "tpu.trace_stop"() : () -> ()
    %135 = arith.addf %130, %134 : vector<4x16x8xf32>
    %c0_167 = arith.constant 0 : index
    %c6_168 = arith.constant 6 : index
    %c0_169 = arith.constant 0 : index
    %136 = vector.load %arg11[%c0_167, %c6_168, %c0_169] : memref<4x22x8xbf16, #tpu.memory_space<vmem>>, vector<4x16x8xbf16>
    %c6_170 = arith.constant 6 : index
    %c0_171 = arith.constant 0 : index
    %c0_172 = arith.constant 0 : index
    %c0_173 = arith.constant 0 : index
    %137 = vector.load %arg6[%c6_170, %c0_171, %c0_172, %c0_173] : memref<7x4x8x8xbf16, #tpu.memory_space<vmem>>, vector<1x4x8x8xbf16>
    %138 = vector.shape_cast %137 : vector<1x4x8x8xbf16> to vector<4x8x8xbf16>
    "tpu.trace_start"() <{level = 10 : i32, message = "gtc,gco->gto"}> : () -> ()
    %cst_174 = arith.constant dense<0.000000e+00> : vector<4x16x8xf32>
    %139 = tpu.matmul %136, %138, %cst_174 {dimension_numbers = #tpu.dot_dimension_numbers<[2], [1], [1], [2], [0, 0, 0, 1, 1, 2], [0], [0]>} : vector<4x16x8xbf16>, vector<4x8x8xbf16>, vector<4x16x8xf32> -> vector<4x16x8xf32>
    "tpu.trace_stop"() : () -> ()
    %140 = arith.addf %135, %139 : vector<4x16x8xf32>
    %c0_175 = arith.constant 0 : index
    %c0_176 = arith.constant 0 : index
    %c0_177 = arith.constant 0 : index
    %141 = vector.load %arg7[%c0_175, %c0_176, %c0_177] : memref<4x1x8xf32, #tpu.memory_space<vmem>>, vector<4x1x8xf32>
    %142 = vector.broadcast %141 : vector<4x1x8xf32> to vector<4x16x8xf32>
    %143 = arith.addf %140, %142 : vector<4x16x8xf32>
    %cst_178 = arith.constant 2.000000e+01 : f32
    %144 = vector.broadcast %cst_178 : f32 to vector<4x16x8xf32>
    %145 = arith.minimumf %143, %144 : vector<4x16x8xf32>
    %146 = math.exp %145 : vector<4x16x8xf32>
    %cst_179 = arith.constant 2.000000e+00 : f32
    %147 = vector.broadcast %cst_179 : f32 to vector<4x16x8xf32>
    %148 = arith.addf %146, %147 : vector<4x16x8xf32>
    %149 = arith.mulf %146, %148 : vector<4x16x8xf32>
    %150 = arith.mulf %143, %149 : vector<4x16x8xf32>
    %cst_180 = arith.constant 2.000000e+00 : f32
    %151 = vector.broadcast %cst_180 : f32 to vector<4x16x8xf32>
    %152 = arith.addf %149, %151 : vector<4x16x8xf32>
    %153 = tpu.reciprocal %152 {approx = true} : vector<4x16x8xf32> -> vector<4x16x8xf32>
    %154 = arith.mulf %150, %153 : vector<4x16x8xf32>
    %cst_181 = arith.constant 2.000000e+01 : f32
    %155 = vector.broadcast %cst_181 : f32 to vector<4x16x8xf32>
    %156 = arith.cmpf ogt, %143, %155 : vector<4x16x8xf32>
    %157 = arith.select %156, %143, %154 : vector<4x16x8xi1>, vector<4x16x8xf32>
    %c0_182 = arith.constant 0 : index
    %c0_183 = arith.constant 0 : index
    %c0_184 = arith.constant 0 : index
    %158 = vector.load %arg8[%c0_182, %c0_183, %c0_184] : memref<1x16x1xf32, #tpu.memory_space<vmem>>, vector<1x16x1xf32>
    %159 = vector.broadcast %158 : vector<1x16x1xf32> to vector<4x16x8xf32>
    %160 = arith.mulf %157, %159 : vector<4x16x8xf32>
    %161 = vector.extract_strided_slice %160 {offsets = [0, 0, 0], sizes = [1, 16, 8], strides = [1, 1, 1]} : vector<4x16x8xf32> to vector<1x16x8xf32>
    %162 = vector.shape_cast %161 : vector<1x16x8xf32> to vector<16x8xf32>
    %c0_185 = arith.constant 0 : index
    %c0_186 = arith.constant 0 : index
    %c0_187 = arith.constant 0 : index
    %c0_188 = arith.constant 0 : index
    %163 = vector.load %arg9[%c0_185, %c0_186, %c0_187, %c0_188] : memref<1x16x4x8xf32, #tpu.memory_space<vmem>>, vector<1x16x1x8xf32>
    %164 = vector.shape_cast %163 : vector<1x16x1x8xf32> to vector<16x8xf32>
    %165 = vector.shape_cast %162 : vector<16x8xf32> to vector<1x16x1x8xf32>
    tpu.vector_store %arg9[%c0_185, %c0_186, %c0_187, %c0_188], %165 {strides = array<i32>} : memref<1x16x4x8xf32, #tpu.memory_space<vmem>>, vector<1x16x1x8xf32>,
    %166 = vector.extract_strided_slice %160 {offsets = [1, 0, 0], sizes = [1, 16, 8], strides = [1, 1, 1]} : vector<4x16x8xf32> to vector<1x16x8xf32>
    %167 = vector.shape_cast %166 : vector<1x16x8xf32> to vector<16x8xf32>
    %c0_189 = arith.constant 0 : index
    %c0_190 = arith.constant 0 : index
    %c1_191 = arith.constant 1 : index
    %c0_192 = arith.constant 0 : index
    %168 = vector.load %arg9[%c0_189, %c0_190, %c1_191, %c0_192] : memref<1x16x4x8xf32, #tpu.memory_space<vmem>>, vector<1x16x1x8xf32>
    %169 = vector.shape_cast %168 : vector<1x16x1x8xf32> to vector<16x8xf32>
    %170 = vector.shape_cast %167 : vector<16x8xf32> to vector<1x16x1x8xf32>
    tpu.vector_store %arg9[%c0_189, %c0_190, %c1_191, %c0_192], %170 {strides = array<i32>} : memref<1x16x4x8xf32, #tpu.memory_space<vmem>>, vector<1x16x1x8xf32>,
    %171 = vector.extract_strided_slice %160 {offsets = [2, 0, 0], sizes = [1, 16, 8], strides = [1, 1, 1]} : vector<4x16x8xf32> to vector<1x16x8xf32>
    %172 = vector.shape_cast %171 : vector<1x16x8xf32> to vector<16x8xf32>
    %c0_193 = arith.constant 0 : index
    %c0_194 = arith.constant 0 : index
    %c2_195 = arith.constant 2 : index
    %c0_196 = arith.constant 0 : index
    %173 = vector.load %arg9[%c0_193, %c0_194, %c2_195, %c0_196] : memref<1x16x4x8xf32, #tpu.memory_space<vmem>>, vector<1x16x1x8xf32>
    %174 = vector.shape_cast %173 : vector<1x16x1x8xf32> to vector<16x8xf32>
    %175 = vector.shape_cast %172 : vector<16x8xf32> to vector<1x16x1x8xf32>
    tpu.vector_store %arg9[%c0_193, %c0_194, %c2_195, %c0_196], %175 {strides = array<i32>} : memref<1x16x4x8xf32, #tpu.memory_space<vmem>>, vector<1x16x1x8xf32>,
    %176 = vector.extract_strided_slice %160 {offsets = [3, 0, 0], sizes = [1, 16, 8], strides = [1, 1, 1]} : vector<4x16x8xf32> to vector<1x16x8xf32>
    %177 = vector.shape_cast %176 : vector<1x16x8xf32> to vector<16x8xf32>
    %c0_197 = arith.constant 0 : index
    %c0_198 = arith.constant 0 : index
    %c3_199 = arith.constant 3 : index
    %c0_200 = arith.constant 0 : index
    %178 = vector.load %arg9[%c0_197, %c0_198, %c3_199, %c0_200] : memref<1x16x4x8xf32, #tpu.memory_space<vmem>>, vector<1x16x1x8xf32>
    %179 = vector.shape_cast %178 : vector<1x16x1x8xf32> to vector<16x8xf32>
    %180 = vector.shape_cast %177 : vector<16x8xf32> to vector<1x16x1x8xf32>
    tpu.vector_store %arg9[%c0_197, %c0_198, %c3_199, %c0_200], %180 {strides = array<i32>} : memref<1x16x4x8xf32, #tpu.memory_space<vmem>>, vector<1x16x1x8xf32>,
    return
  }
  func.func @transform_0(%arg0: i32, %arg1: i32) -> (i32, i32, i32, i32) {
    %c0_i32 = arith.constant 0 : i32
    %c0_i32_0 = arith.constant 0 : i32
    %c0_i32_1 = arith.constant 0 : i32
    return %arg0, %arg1, %c0_i32, %c0_i32_0 : i32, i32, i32, i32
  }
  func.func @transform_1(%arg0: i32, %arg1: i32) -> (i32, i32, i32, i32, i32) {
    %c0_i32 = arith.constant 0 : i32
    %c0_i32_0 = arith.constant 0 : i32
    %c0_i32_1 = arith.constant 0 : i32
    %c0_i32_2 = arith.constant 0 : i32
    return %arg0, %arg1, %c0_i32, %c0_i32_0, %c0_i32_1 : i32, i32, i32, i32, i32
  }
  func.func @transform_2(%arg0: i32, %arg1: i32) -> (i32, i32, i32, i32) {
    %c0_i32 = arith.constant 0 : i32
    %c0_i32_0 = arith.constant 0 : i32
    %c0_i32_1 = arith.constant 0 : i32
    %c0_i32_2 = arith.constant 0 : i32
    %c0_i32_3 = arith.constant 0 : i32
    return %c0_i32, %c0_i32_0, %c0_i32_1, %c0_i32_2 : i32, i32, i32, i32
  }
  func.func @transform_3(%arg0: i32, %arg1: i32) -> (i32, i32, i32) {
    %c0_i32 = arith.constant 0 : i32
    %c0_i32_0 = arith.constant 0 : i32
    %c0_i32_1 = arith.constant 0 : i32
    %c0_i32_2 = arith.constant 0 : i32
    return %c0_i32, %c0_i32_0, %c0_i32_1 : i32, i32, i32
  }
  func.func @transform_4(%arg0: i32, %arg1: i32) -> (i32, i32, i32, i32) {
    %c0_i32 = arith.constant 0 : i32
    %c0_i32_0 = arith.constant 0 : i32
    %c0_i32_1 = arith.constant 0 : i32
    %c0_i32_2 = arith.constant 0 : i32
    %c0_i32_3 = arith.constant 0 : i32
    return %c0_i32, %c0_i32_0, %c0_i32_1, %c0_i32_2 : i32, i32, i32, i32
  }
  func.func @transform_5(%arg0: i32, %arg1: i32) -> (i32, i32, i32) {
    %c0_i32 = arith.constant 0 : i32
    %c0_i32_0 = arith.constant 0 : i32
    %c0_i32_1 = arith.constant 0 : i32
    %c0_i32_2 = arith.constant 0 : i32
    return %c0_i32, %c0_i32_0, %c0_i32_1 : i32, i32, i32
  }
  func.func @transform_6(%arg0: i32, %arg1: i32) -> (i32, i32, i32) {
    %c0_i32 = arith.constant 0 : i32
    %c0_i32_0 = arith.constant 0 : i32
    return %arg0, %arg1, %c0_i32 : i32, i32, i32
  }
  func.func @transform_7(%arg0: i32, %arg1: i32) -> (i32, i32, i32, i32) {
    %c0_i32 = arith.constant 0 : i32
    %c0_i32_0 = arith.constant 0 : i32
    %c0_i32_1 = arith.constant 0 : i32
    return %arg0, %arg1, %c0_i32, %c0_i32_0 : i32, i32, i32, i32
  }
}

</mosaic_0001>

<bundles_post_ra>
// kernel: tpu_custom_call.1
= control target key start
LH: loop header
LB: loop body
LE: loop exit
PB: predicated region body
PF: predicated region fallthrough
CT: control target
= control target key end

     0   :  { %12 = vsyncpa [#allocation5], 0  ;;  %s5359_s24 = smov 0   ;;  %s5361_s25 = smov 0   ;;  %s6552_s0 = inlined_call_operand.vmem [shape: bf16[2,28,4,8], index: 0, kind: input, shape index: {}]   ;;  %s6553_s1 = inlined_call_operand.vmem [shape: bf16[2,1,12,4,8], index: 1, kind: input, shape index: {}]   ;;  %s6554_s2 = inlined_call_operand.vmem [shape: bf16[7,4,8,8], index: 2, kind: input, shape index: {}]   ;;  %s6555_s3 = inlined_call_operand.vmem [shape: f32[4,1,8], index: 3, kind: input, shape index: {}]   ;;  %s6556_s4 = inlined_call_operand.hbm [shape: bf16[7,4,8,8], index: 4, kind: input, shape index: {}]   ;;  %s6557_s5 = inlined_call_operand.vmem [shape: f32[4,1,8], index: 5, kind: input, shape index: {}]   ;;  %s6558_s6 = inlined_call_operand.vmem [shape: f32[2,16,1], index: 6, kind: input, shape index: {}]   ;;  %s6559_s7 = inlined_call_operand.vmem [shape: f32[2,16,4,8], index: 7, kind: output, shape index: {}]  }
   0x1   :  { %s5363_s26 = smov 0  }
   0x2 LB: > { %s4643_s27 = sadd.s32 4294967295, %s5313_s26   ;;  %s30_s28 = sadd.s32 1, %s5309_s25  ;;  %s5313_s26 = sphi %s5363_s26, %s18_s26   ;;  %s5309_s25 = sphi %s5361_s25, %s6561_s25   ;;  %s5305_s24 = sphi %s5359_s24, %s6560_s24  }
   0x3   : > { %p32_p0 = scmp.ge.s32.totalorder %s30_s28, 2  ;;  %p4645_p1 = scmp.ge.s32.totalorder %s5313_s26, 1 }
   0x4   : > { %p231_p2 = scmp.lt.s32.totalorder %s5313_s26, 3  ;;  %p5138_p4 = scmp.eq.s32.totalorder %s4643_s27, 0 }
   0x5   : > { %s6563_s28 = smov (%p32_p0, %s30_s28), 0  ;;  %s248_s8 = sshll.u32 %s6556_s4, 4  ;;  %s249_s8 = int_to_ptr.hbm [resolvable:$true] %s248_s8 }
   0x6   : > { %p232_p3 = pnand %p4645_p1, %p231_p2  ;;  %s5315_s9 = smov [#allocation4]  }
   0x7   : > { %s250_s10 = sshll.u32 %s5315_s9, 4  ;;  %s5316_s11 = smov 64   ;;  %s251_s10 = int_to_ptr.vmem [resolvable:$true] %s250_s10 }
   0x8   : > { %p5134_p5 = pneg %p232_p3  ;;  %s5317_s12 = smov 4  }
   0x9   : > { %315 = sbr.rel (%p232_p3) target bundleno = 942 (0x3ae), region = 48 }
   0xa   : > { %p5135_p6 = pnand %p5138_p4, %p5134_p5 }
   0xc   : > { %5137 = dma.hbm_to_vmem [thread:$0]  (!%p5135_p6), %s249_s8, 1792, %s251_s10, [#allocation5], %s5316_s11, %s5316_s11, %s5317_s12  }
   0xe   : > { %5300 = dma.done.wait (%p5138_p4), [#allocation5], 1792  }
   0xf   : > { %5302 = vsyncadd (%p5138_p4), [#allocation5], 4294965504  ;;  %p383_p7 = scmp.lt.s32.totalorder %s5305_s24, 1  ;;  %vm1439_vm0 = vcmask 1043456   ;;  %v4656_v0 = vld [vmem:[%s6554_s2 + $0x10] sm:$0xf] }
  0x10   : > { %v1441_v1 = vsel %vm1439_vm0, %v4656_v0, 0  ;;  %vm527_vm1 = vcmask 1041409   ;;  %vm530_vm2 = vcmask 1042434   ;;  %vm533_vm3 = vcmask 1043459  }
  0x11   : > { %s6565_s24 = smov (!%p383_p7, %s5305_s24), 1  ;;  %1450 = vmatpush.bf16.msra.mxu0 %v1441_v1  ;;  %vm536_vm4 = vcmask 1044484   ;;  %vm539_vm5 = vcmask 1045509   ;;  %vm542_vm6 = vcmask 1046534   ;;  %vm545_vm7 = vcmask 1047559  }
  0x12   : > { %s5128_s13 = smul.u32 56, %s6565_s24  ;;  %vm565_vm8 = vcmask 60416   ;;  %vm1416_vm9 = vsmask.f32 7424  ;;  %vm1432_vm10 = vcmask 64512   ;;  %vm668_vm11 = vcmask 58368  }
  0x13   : > { %s5129_s19 = smul.u32 24, %s6565_s24  ;;  %vm1776_vm12 = vcmask 1046528   ;;  %vm1964_vm13 = vsmask.f32 6400  ;;  %vm2214_vm14 = vcmask 1045504   ;;  %s5054_s9 = sshll.u32 %s6565_s24, 4 }
  0x14   : > { %s5390_s18 = scalar_lea.vmem %s6552_s0, %s5128_s13  ;;  %vm2408_vm15 = vsmask.f32 5376  ;;  %s5055_s16 = sshll.u32 %s6565_s24, 6 }
  0x15   : > { %v427_v2 = vld [vmem:[%s5390_s18] sm:$0x1]  ;;  %v428_v3 = vld [vmem:[%s5390_s18 + $0x2] sm:$0x1]  ;;  %v429_v4 = vld [vmem:[%s5390_s18 + $0x4] sm:$0x1]  ;;  %s5420_s22 = scalar_lea.vmem %s6553_s1, %s5129_s19  ;;  %s6352_s20 = scalar_lea.vmem %s6559_s7, %s5055_s16 }
  0x16   : > { %v430_v5 = vld [vmem:[%s5390_s18 + $0x6] sm:$0x1]  ;;  %444 = vst [vmem:[#allocation1] ss:$2 sm:$0xff] %v427_v2  ;;  %v431_v6 = vld [vmem:[%s5390_s18 + $0x8] sm:$0x1] }
  0x17   : > { %449 = vst [vmem:[#allocation1 + $0x10] ss:$2 sm:$0xff] %v428_v3  ;;  %v432_v7 = vld [vmem:[%s5390_s18 + $0xa] sm:$0x1]  ;;  %v433_v8 = vld [vmem:[%s5390_s18 + $0xc] sm:$0x1] }
  0x18   : > { %454 = vst [vmem:[#allocation1 + $0x20] ss:$2 sm:$0xff] %v429_v4  ;;  %v434_v9 = vld [vmem:[%s5390_s18 + $0xe] sm:$0x1]  ;;  %v435_v20 = vld [vmem:[%s5390_s18 + $0x10] sm:$0x1] }
  0x19   : > { %459 = vst [vmem:[#allocation1 + $0x30] ss:$2 sm:$0xff] %v430_v5  ;;  %v436_v23 = vld [vmem:[%s5390_s18 + $0x12] sm:$0x1]  ;;  %v437_v24 = vld [vmem:[%s5390_s18 + $0x14] sm:$0x1] }
  0x1a   : > { %v438_v26 = vld [vmem:[%s5390_s18 + $0x16] sm:$0x1]  ;;  %v439_v40 = vld [vmem:[%s5390_s18 + $0x18] sm:$0x1]  ;;  %v440_v43 = vld [vmem:[%s5390_s18 + $0x1a] sm:$0x1] }
  0x1b   : > { %v441_v44 = vld [vmem:[%s5390_s18 + $0x1c] sm:$0x1]  ;;  %v442_v46 = vld [vmem:[%s5390_s18 + $0x1e] sm:$0x1]  ;;  %v568_v61 = vld [vmem:[%s5420_s22] sm:$0x1] }
  0x1c   : > { %v569_v63 = vld [vmem:[%s5420_s22 + $0x2] sm:$0x1]  ;;  %v570_v0 = vld [vmem:[%s5420_s22 + $0x4] sm:$0x1]  ;;  %v571_v2 = vld [vmem:[%s5420_s22 + $0x6] sm:$0x1] }
  0x1d   : > { %v445_v10 = vld.sshfl [vmem:[#allocation1] sm:$0xff pattern:$0x75643120] }
  0x1e   : > { %v450_v11 = vld.sshfl [vmem:[#allocation1 + $0x10] sm:$0xff pattern:$0x75643120]  ;;  %463 = vst [vmem:[#allocation1] ss:$2 sm:$0xff] %v431_v6  ;;  %v510_v13 = vunpack.c.l.b16 %v445_v10 }
  0x1f   : > { %v455_v12 = vld.sshfl [vmem:[#allocation1 + $0x20] sm:$0xff pattern:$0x75643120]  ;;  %467 = vst [vmem:[#allocation1 + $0x10] ss:$2 sm:$0xff] %v432_v7  ;;  %v511_v14 = vunpack.c.l.b16 %v450_v11 }
  0x20   : > { %v460_v15 = vld.sshfl [vmem:[#allocation1 + $0x30] sm:$0xff pattern:$0x75643120]  ;;  %471 = vst [vmem:[#allocation1 + $0x20] ss:$2 sm:$0xff] %v433_v8  ;;  %v512_v16 = vunpack.c.l.b16 %v455_v12 }
  0x21   : > { %475 = vst [vmem:[#allocation1 + $0x30] ss:$2 sm:$0xff] %v434_v9  ;;  %v513_v17 = vunpack.c.l.b16 %v460_v15  ;;  %v526_v18 = vrot.slane %v511_v14, 7 }
  0x22   : > { %v529_v19 = vrot.slane %v512_v16, 6 }
  0x23   : > { %v528_v21 = vsel %vm527_vm1, %v526_v18, %v510_v13  ;;  %v532_v22 = vrot.slane %v513_v17, 5  ;;  %v572_v17 = vld [vmem:[%s5420_s22 + $0x8] sm:$0x1] }
  0x24   : > { %v531_v25 = vsel %vm530_vm2, %v529_v19, %v528_v21  ;;  %v573_v19 = vld [vmem:[%s5420_s22 + $0xa] sm:$0x1] }
  0x25   : > { %v464_v27 = vld.sshfl [vmem:[#allocation1] sm:$0xff pattern:$0x75643120]  ;;  %v534_v32 = vsel %vm533_vm3, %v532_v22, %v531_v25  ;;  %v575_v22 = vld [vmem:[%s5420_s22 + $0xe] sm:$0x1] }
  0x26   : > { %v468_v28 = vld.sshfl [vmem:[#allocation1 + $0x10] sm:$0xff pattern:$0x75643120]  ;;  %479 = vst [vmem:[#allocation1] ss:$2 sm:$0xff] %v435_v20  ;;  %v514_v29 = vunpack.c.l.b16 %v464_v27 }
  0x27   : > { %v472_v30 = vld.sshfl [vmem:[#allocation1 + $0x20] sm:$0xff pattern:$0x75643120]  ;;  %483 = vst [vmem:[#allocation1 + $0x10] ss:$2 sm:$0xff] %v436_v23  ;;  %v515_v31 = vunpack.c.l.b16 %v468_v28 }
  0x28   : > { %v476_v33 = vld.sshfl [vmem:[#allocation1 + $0x30] sm:$0xff pattern:$0x75643120]  ;;  %487 = vst [vmem:[#allocation1 + $0x20] ss:$2 sm:$0xff] %v437_v24  ;;  %v516_v34 = vunpack.c.l.b16 %v472_v30  ;;  %v535_v35 = vrot.slane %v514_v29, 4 }
  0x29   : > { %491 = vst [vmem:[#allocation1 + $0x30] ss:$2 sm:$0xff] %v438_v26  ;;  %v517_v36 = vunpack.c.l.b16 %v476_v33  ;;  %v538_v37 = vrot.slane %v515_v31, 3  ;;  %v574_v20 = vld [vmem:[%s5420_s22 + $0xc] sm:$0x1] }
  0x2a   : > { %v537_v38 = vsel %vm536_vm4, %v535_v35, %v534_v32  ;;  %v541_v39 = vrot.slane %v516_v34, 2 }
  0x2b   : > { %v540_v41 = vsel %vm539_vm5, %v538_v37, %v537_v38  ;;  %v544_v42 = vrot.slane %v517_v36, 1  ;;  %v576_v36 = vld [vmem:[%s5420_s22 + $0x10] sm:$0x1]  ;;  %v577_v38 = vld [vmem:[%s5420_s22 + $0x12] sm:$0x1] }
  0x2c   : > { %v543_v45 = vsel %vm542_vm6, %v541_v39, %v540_v41 }
  0x2d   : > { %v480_v47 = vld.sshfl [vmem:[#allocation1] sm:$0xff pattern:$0x75643120]  ;;  %v546_v48 = vsel %vm545_vm7, %v544_v42, %v543_v45 }
  0x2e   : > { %v484_v49 = vld.sshfl [vmem:[#allocation1 + $0x10] sm:$0xff pattern:$0x75643120]  ;;  %495 = vst [vmem:[#allocation1] ss:$2 sm:$0xff] %v439_v40  ;;  %v561_v50 = vpack.c.b16 %v546_v48, %v546_v48  ;;  %v518_v52 = vunpack.c.l.b16 %v480_v47 }
  0x2f   : > { %v488_v51 = vld.sshfl [vmem:[#allocation1 + $0x20] sm:$0xff pattern:$0x75643120]  ;;  %499 = vst [vmem:[#allocation1 + $0x10] ss:$2 sm:$0xff] %v440_v43  ;;  %v519_v53 = vunpack.c.l.b16 %v484_v49 }
  0x30   : > { %v492_v54 = vld.sshfl [vmem:[#allocation1 + $0x30] sm:$0xff pattern:$0x75643120]  ;;  %503 = vst [vmem:[#allocation1 + $0x20] ss:$2 sm:$0xff] %v441_v44  ;;  %v520_v55 = vunpack.c.l.b16 %v488_v51 }
  0x31   : > { %507 = vst [vmem:[#allocation1 + $0x30] ss:$2 sm:$0xff] %v442_v46  ;;  %v521_v56 = vunpack.c.l.b16 %v492_v54  ;;  %v547_v57 = vrot.slane %v519_v53, 7  ;;  %v578_v44 = vld [vmem:[%s5420_s22 + $0x14] sm:$0x1] }
  0x32   : > { %v549_v58 = vrot.slane %v520_v55, 6  ;;  %566 = vst.msk [vmem:[#allocation2] sm:$0xf] %vm565_vm8, %v561_v50  ;;  %v579_v47 = vld [vmem:[%s5420_s22 + $0x16] sm:$0x1] }
  0x33   : > { %v548_v59 = vsel %vm527_vm1, %v547_v57, %v518_v52  ;;  %v551_v60 = vrot.slane %v521_v56, 5  ;;  %v670_v55 = vld [vmem:[%s5390_s18] sm:$0x1]  ;;  %v671_v57 = vld [vmem:[%s5390_s18 + $0x2] sm:$0x1] }
  0x34   : > { %v550_v62 = vsel %vm530_vm2, %v549_v58, %v548_v59 }
  0x35   : > { %v496_v1 = vld.sshfl [vmem:[#allocation1] sm:$0xff pattern:$0x75643120]  ;;  %v552_v7 = vsel %vm533_vm3, %v551_v60, %v550_v62 }
  0x36   : > { %v500_v3 = vld.sshfl [vmem:[#allocation1 + $0x10] sm:$0xff pattern:$0x75643120]  ;;  %v522_v4 = vunpack.c.l.b16 %v496_v1  ;;  %581 = vst [vmem:[#allocation1] ss:$2 sm:$0xff] %v568_v61 }
  0x37   : > { %v504_v5 = vld.sshfl [vmem:[#allocation1 + $0x20] sm:$0xff pattern:$0x75643120]  ;;  %v523_v6 = vunpack.c.l.b16 %v500_v3  ;;  %586 = vst [vmem:[#allocation1 + $0x10] ss:$2 sm:$0xff] %v569_v63 }
  0x38   : > { %v508_v8 = vld.sshfl [vmem:[#allocation1 + $0x30] sm:$0xff pattern:$0x75643120]  ;;  %v524_v9 = vunpack.c.l.b16 %v504_v5  ;;  %v553_v10 = vrot.slane %v522_v4, 4  ;;  %591 = vst [vmem:[#allocation1 + $0x20] ss:$2 sm:$0xff] %v570_v0 }
  0x39   : > { %v525_v11 = vunpack.c.l.b16 %v508_v8  ;;  %v555_v12 = vrot.slane %v523_v6, 3  ;;  %596 = vst [vmem:[#allocation1 + $0x30] ss:$2 sm:$0xff] %v571_v2  ;;  %v672_v63 = vld [vmem:[%s5390_s18 + $0x4] sm:$0x1] }
  0x3a   : > { %v554_v13 = vsel %vm536_vm4, %v553_v10, %v552_v7  ;;  %v557_v14 = vrot.slane %v524_v9, 2  ;;  %v673_v0 = vld [vmem:[%s5390_s18 + $0x6] sm:$0x1]  ;;  %v1387_v3 = vld [vmem:[%s6554_s2] sm:$0xf] }
  0x3b   : > { %v556_v15 = vsel %vm539_vm5, %v555_v12, %v554_v13  ;;  %v559_v16 = vrot.slane %v525_v11, 1  ;;  %v1626_v5 = vsel %vm1439_vm0, %v1387_v3, 0  ;;  %v674_v6 = vld [vmem:[%s5390_s18 + $0x8] sm:$0x1]  ;;  %v675_v7 = vld [vmem:[%s5390_s18 + $0xa] sm:$0x1] }
  0x3c   : > { %v558_v18 = vsel %vm542_vm6, %v557_v14, %v556_v15  ;;  %1635 = vmatpush.bf16.msrb.mxu0 %v1626_v5  ;;  %v676_v12 = vld [vmem:[%s5390_s18 + $0xc] sm:$0x1]  ;;  %v804_v5 = vld [vmem:[%s5420_s22] sm:$0x1] }
  0x3d   : > { %v560_v21 = vsel %vm545_vm7, %v559_v16, %v558_v18  ;;  %v582_v23 = vld.sshfl [vmem:[#allocation1] sm:$0xff pattern:$0x75643120]  ;;  %v677_v16 = vld [vmem:[%s5390_s18 + $0xe] sm:$0x1] }
  0x3e   : > { %v562_v24 = vpack.c.b16 %v560_v21, %v560_v21  ;;  %v587_v25 = vld.sshfl [vmem:[#allocation1 + $0x10] sm:$0xff pattern:$0x75643120]  ;;  %600 = vst [vmem:[#allocation1] ss:$2 sm:$0xff] %v572_v17  ;;  %v631_v27 = vunpack.c.l.b16 %v582_v23 }
  0x3f   : > { %v592_v26 = vld.sshfl [vmem:[#allocation1 + $0x20] sm:$0xff pattern:$0x75643120]  ;;  %604 = vst [vmem:[#allocation1 + $0x10] ss:$2 sm:$0xff] %v573_v19  ;;  %v632_v28 = vunpack.c.l.b16 %v587_v25 }
  0x40   : > { %567 = vst.msk [vmem:[#allocation2 + $0x4] sm:$0xf] %vm565_vm8, %v562_v24  ;;  %v597_v29 = vld.sshfl [vmem:[#allocation1 + $0x30] sm:$0xff pattern:$0x75643120]  ;;  %v633_v30 = vunpack.c.l.b16 %v592_v26 }
  0x41   : > { %608 = vst [vmem:[#allocation1 + $0x20] ss:$2 sm:$0xff] %v574_v20  ;;  %v634_v31 = vunpack.c.l.b16 %v597_v29  ;;  %v643_v32 = vrot.slane %v632_v28, 7  ;;  %v678_v17 = vld [vmem:[%s5390_s18 + $0x10] sm:$0x1] }
  0x42   : > { %612 = vst [vmem:[#allocation1 + $0x30] ss:$2 sm:$0xff] %v575_v22  ;;  %v645_v33 = vrot.slane %v633_v30, 6  ;;  %v679_v21 = vld [vmem:[%s5390_s18 + $0x12] sm:$0x1] }
  0x43   : > { %v644_v34 = vsel %vm527_vm1, %v643_v32, %v631_v27  ;;  %v647_v35 = vrot.slane %v634_v31, 5  ;;  %v680_v28 = vld [vmem:[%s5390_s18 + $0x14] sm:$0x1]  ;;  %v681_v31 = vld [vmem:[%s5390_s18 + $0x16] sm:$0x1] }
  0x44   : > { %v646_v37 = vsel %vm530_vm2, %v645_v33, %v644_v34  ;;  %v682_v34 = vld [vmem:[%s5390_s18 + $0x18] sm:$0x1] }
  0x45   : > { %v601_v39 = vld.sshfl [vmem:[#allocation1] sm:$0xff pattern:$0x75643120]  ;;  %v648_v43 = vsel %vm533_vm3, %v647_v35, %v646_v37 }
  0x46   : > { %v605_v40 = vld.sshfl [vmem:[#allocation1 + $0x10] sm:$0xff pattern:$0x75643120]  ;;  %v635_v41 = vunpack.c.l.b16 %v601_v39  ;;  %616 = vst [vmem:[#allocation1] ss:$2 sm:$0xff] %v576_v36 }
  0x47   : > { %v636_v42 = vunpack.c.l.b16 %v605_v40  ;;  %620 = vst [vmem:[#allocation1 + $0x10] ss:$2 sm:$0xff] %v577_v38  ;;  %v5060_v1 = vld [vmem:[#allocation2] sm:$0xff] }
  0x48   : > { %v609_v45 = vld.sshfl [vmem:[#allocation1 + $0x20] sm:$0xff pattern:$0x75643120]  ;;  %v649_v46 = vrot.slane %v635_v41, 4  ;;  %v1420_v8 = vshll.u32 %v5060_v1, 16  ;;  %v1418_v14 = vshrl.u32 %v5060_v1, 16 }
  0x49   : > { %v613_v48 = vld.sshfl [vmem:[#allocation1 + $0x30] sm:$0xff pattern:$0x75643120]  ;;  %v637_v49 = vunpack.c.l.b16 %v609_v45  ;;  %v651_v50 = vrot.slane %v636_v42, 3  ;;  %624 = vst [vmem:[#allocation1 + $0x20] ss:$2 sm:$0xff] %v578_v44 }
  0x4a   : > { %v638_v51 = vunpack.c.l.b16 %v613_v48  ;;  %v650_v52 = vsel %vm536_vm4, %v649_v46, %v648_v43  ;;  %628 = vst [vmem:[#allocation1 + $0x30] ss:$2 sm:$0xff] %v579_v47  ;;  %v1422_v15 = vrot.slane %v1420_v8, 1  ;;  %v683_v41 = vld [vmem:[%s5390_s18 + $0x1a] sm:$0x1] }
  0x4b   : > { %v652_v53 = vsel %vm539_vm5, %v651_v50, %v650_v52  ;;  %v653_v54 = vrot.slane %v637_v49, 2 }
  0x4c   : > { %v655_v56 = vrot.slane %v638_v51, 1  ;;  %v1423_v22 = vor.u32 %v1422_v15, %v1418_v14 }
  0x4d   : > { %v654_v58 = vsel %vm542_vm6, %v653_v54, %v652_v53  ;;  %v5451_v59 = vld.sshfl [vmem:[#allocation1] sm:$0xff pattern:$0x75643120] }
  0x4e   : > { %v656_v60 = vsel %vm545_vm7, %v655_v56, %v654_v58  ;;  %v5454_v61 = vld.sshfl [vmem:[#allocation1 + $0x10] sm:$0xff pattern:$0x75643120]  ;;  %687 = vst [vmem:[#allocation1] ss:$2 sm:$0xff] %v670_v55 }
  0x4f   : > { %v663_v62 = vpack.c.b16 %v656_v60, %v656_v60  ;;  %692 = vst [vmem:[#allocation1 + $0x10] ss:$2 sm:$0xff] %v671_v57  ;;  %v684_v56 = vld [vmem:[%s5390_s18 + $0x1c] sm:$0x1] }
  0x50   : > { %v5459_v2 = vld.sshfl [vmem:[#allocation1 + $0x20] sm:$0xff pattern:$0x75643120] }
  0x51   : > { %667 = vst.msk [vmem:[#allocation2 + $0x8] sm:$0xf] %vm565_vm8, %v663_v62  ;;  %v5464_v4 = vld.sshfl [vmem:[#allocation1 + $0x30] sm:$0xff pattern:$0x75643120] }
  0x52   : > { %697 = vst [vmem:[#allocation1 + $0x20] ss:$2 sm:$0xff] %v672_v63  ;;  %v685_v62 = vld [vmem:[%s5390_s18 + $0x1e] sm:$0x1] }
  0x53   : > { %702 = vst [vmem:[#allocation1 + $0x30] ss:$2 sm:$0xff] %v673_v0 }
  0x55   : > { %v688_v9 = vld.sshfl [vmem:[#allocation1] sm:$0xff pattern:$0x75643120] }
  0x56   : > { %v693_v10 = vld.sshfl [vmem:[#allocation1 + $0x10] sm:$0xff pattern:$0x75643120]  ;;  %706 = vst [vmem:[#allocation1] ss:$2 sm:$0xff] %v674_v6  ;;  %v753_v27 = vunpack.c.l.b16 %v688_v9 }
  0x57   : > { %710 = vst [vmem:[#allocation1 + $0x10] ss:$2 sm:$0xff] %v675_v7  ;;  %v754_v32 = vunpack.c.l.b16 %v693_v10 }
  0x58   : > { %v1393_v11 = vld [vmem:[#allocation2 + $0x8] sm:$0xf]  ;;  %v769_v37 = vrot.slane %v753_v27, 1 }
  0x59   : > { %v1413_v13 = vunpack.c.l.b16 %v1393_v11  ;;  %v698_v18 = vld.sshfl [vmem:[#allocation1 + $0x20] sm:$0xff pattern:$0x75643120] }
  0x5a   : > { %v703_v20 = vld.sshfl [vmem:[#allocation1 + $0x30] sm:$0xff pattern:$0x75643120]  ;;  %714 = vst [vmem:[#allocation1 + $0x20] ss:$2 sm:$0xff] %v676_v12  ;;  %v755_v29 = vunpack.c.l.b16 %v698_v18  ;;  %v770_v43 = vsel %vm527_vm1, %v754_v32, %v769_v37 }
  0x5b   : > { %v5472_v19 = vpack.c.b16 %v1413_v13, %v1413_v13  ;;  %718 = vst [vmem:[#allocation1 + $0x30] ss:$2 sm:$0xff] %v677_v16  ;;  %v756_v33 = vunpack.c.l.b16 %v703_v20  ;;  %v805_v11 = vld [vmem:[%s5420_s22 + $0x2] sm:$0x1] }
  0x5c   : > { %v771_v40 = vrot.slane %v755_v29, 7 }
  0x5d   : > { %v1425_v23 = vshll.u32 %v5472_v19, 16  ;;  %v707_v24 = vld.sshfl [vmem:[#allocation1] sm:$0xff pattern:$0x75643120]  ;;  %v773_v44 = vrot.slane %v756_v33, 6  ;;  %v1429_v0 = vshrl.u32 %v5472_v19, 16 }
  0x5e   : > { %v711_v25 = vld.sshfl [vmem:[#allocation1 + $0x10] sm:$0xff pattern:$0x75643120]  ;;  %722 = vst [vmem:[#allocation1] ss:$2 sm:$0xff] %v678_v17  ;;  %v757_v36 = vunpack.c.l.b16 %v707_v24  ;;  %v772_v48 = vsel %vm530_vm2, %v771_v40, %v770_v43 }
  0x5f   : > { %v1427_v26 = vrot.slane %v1425_v23, 1  ;;  %726 = vst [vmem:[#allocation1 + $0x10] ss:$2 sm:$0xff] %v679_v21  ;;  %v758_v39 = vunpack.c.l.b16 %v711_v25  ;;  %v774_v52 = vsel %vm533_vm3, %v773_v44, %v772_v48  ;;  %v807_v24 = vld [vmem:[%s5420_s22 + $0x6] sm:$0x1] }
  0x60   : > { %v775_v45 = vrot.slane %v757_v36, 5  ;;  %v808_v25 = vld [vmem:[%s5420_s22 + $0x8] sm:$0x1] }
  0x61   : > { %v1428_v30 = vsel %vm1416_vm9, %v1423_v22, %v1427_v26  ;;  %v715_v35 = vld.sshfl [vmem:[#allocation1 + $0x20] sm:$0xff pattern:$0x75643120]  ;;  %v777_v49 = vrot.slane %v758_v39, 4  ;;  %v1431_v14 = vor.u32 %v1429_v0, %v1427_v26  ;;  %v4657_v26 = vld [vmem:[%s6554_s2 + $0x14] sm:$0xf] }
  0x62   : > { %4664 = vmatmul.msk.bf16.vlgmr.msra.gmra.mxu0 %vm1432_vm10, %v1428_v30  ;;  %v719_v38 = vld.sshfl [vmem:[#allocation1 + $0x30] sm:$0xff pattern:$0x75643120]  ;;  %730 = vst [vmem:[#allocation1 + $0x20] ss:$2 sm:$0xff] %v680_v28  ;;  %v759_v42 = vunpack.c.l.b16 %v715_v35  ;;  %v776_v54 = vsel %vm536_vm4, %v775_v45, %v774_v52  ;;  %v1491_v29 = vsel %vm1439_vm0, %v4657_v26, 0 }
  0x63   : > { %734 = vst [vmem:[#allocation1 + $0x30] ss:$2 sm:$0xff] %v681_v31  ;;  %v760_v47 = vunpack.c.l.b16 %v719_v38  ;;  %v778_v58 = vsel %vm539_vm5, %v777_v49, %v776_v54  ;;  %v806_v22 = vld [vmem:[%s5420_s22 + $0x4] sm:$0x1]  ;;  %1500 = vmatpush.bf16.msra.mxu1 %v1491_v29  ;;  %v810_v45 = vld [vmem:[%s5420_s22 + $0xc] sm:$0x1] }
  0x64   : > { %v779_v53 = vrot.slane %v759_v42, 3  ;;  %v813_v52 = vld [vmem:[%s5420_s22 + $0x12] sm:$0x1]  ;;  %v4708_v0 = vld [vmem:[%s6554_s2 + $0x20] sm:$0xf] }
  0x65   : > { %v723_v46 = vld.sshfl [vmem:[#allocation1] sm:$0xff pattern:$0x75643120]  ;;  %v781_v55 = vrot.slane %v760_v47, 2  ;;  %v812_v47 = vld [vmem:[%s5420_s22 + $0x10] sm:$0x1] }
  0x66   : > { %v727_v50 = vld.sshfl [vmem:[#allocation1 + $0x10] sm:$0xff pattern:$0x75643120]  ;;  %738 = vst [vmem:[#allocation1] ss:$2 sm:$0xff] %v682_v34  ;;  %v761_v51 = vunpack.c.l.b16 %v723_v46  ;;  %v780_v63 = vsel %vm542_vm6, %v779_v53, %v778_v58 }
  0x67   : > { %742 = vst [vmem:[#allocation1 + $0x10] ss:$2 sm:$0xff] %v683_v41  ;;  %v762_v57 = vunpack.c.l.b16 %v727_v50  ;;  %v782_v3 = vsel %vm545_vm7, %v781_v55, %v780_v63  ;;  %v809_v34 = vld [vmem:[%s5420_s22 + $0xa] sm:$0x1]  ;;  %v811_v46 = vld [vmem:[%s5420_s22 + $0xe] sm:$0x1] }
  0x68   : > { %v783_v60 = vrot.slane %v761_v51, 1  ;;  %v797_v8 = vpack.c.b16 %v782_v3, %v782_v3  ;;  %v5056_v51 = vld [vmem:[#allocation2] sm:$0xff]  ;;  %v907_v26 = vld [vmem:[%s5390_s18 + $0x4] sm:$0x2]  ;;  %v908_v29 = vld [vmem:[%s5390_s18 + $0x6] sm:$0x2] }
  0x69   : > { %v731_v1 = vld.sshfl [vmem:[#allocation1 + $0x20] sm:$0xff pattern:$0x75643120] }
  0x6a   : > { %v735_v6 = vld.sshfl [vmem:[#allocation1 + $0x30] sm:$0xff pattern:$0x75643120]  ;;  %746 = vst [vmem:[#allocation1 + $0x20] ss:$2 sm:$0xff] %v684_v56  ;;  %v763_v7 = vunpack.c.l.b16 %v731_v1  ;;  %v784_v10 = vsel %vm527_vm1, %v762_v57, %v783_v60 }
  0x6b   : > { %750 = vst [vmem:[#allocation1 + $0x30] ss:$2 sm:$0xff] %v685_v62  ;;  %v764_v9 = vunpack.c.l.b16 %v735_v6  ;;  %v814_v6 = vld [vmem:[%s5420_s22 + $0x14] sm:$0x1] }
  0x6c   : > { %v785_v13 = vrot.slane %v763_v7, 7  ;;  %802 = vst.msk [vmem:[#allocation2 + $0x10] sm:$0xf] %vm565_vm8, %v797_v8  ;;  %v815_v8 = vld [vmem:[%s5420_s22 + $0x16] sm:$0x1] }
  0x6d   : > { %v739_v12 = vld.sshfl [vmem:[#allocation1] sm:$0xff pattern:$0x75643120]  ;;  %v787_v17 = vrot.slane %v764_v9, 6 }
  0x6e   : > { %v743_v15 = vld.sshfl [vmem:[#allocation1 + $0x10] sm:$0xff pattern:$0x75643120]  ;;  %v765_v16 = vunpack.c.l.b16 %v739_v12  ;;  %817 = vst [vmem:[#allocation1] ss:$2 sm:$0xff] %v804_v5  ;;  %v786_v19 = vsel %vm530_vm2, %v785_v13, %v784_v10  ;;  %v1787_v5 = vsel %vm1439_vm0, %v4708_v0, 0 }
  0x6f   : > { %v766_v18 = vunpack.c.l.b16 %v743_v15  ;;  %822 = vst [vmem:[#allocation1 + $0x10] ss:$2 sm:$0xff] %v805_v11  ;;  %v788_v20 = vsel %vm533_vm3, %v787_v17, %v786_v19  ;;  %1796 = vmatpush.bf16.msra.mxu0 %v1787_v5  ;;  %v905_v15 = vld [vmem:[%s5390_s18] sm:$0x2]  ;;  %v1377_v19 = vld [vmem:[#allocation2 + $0x8] sm:$0x7] }
  0x70   : > { %v789_v21 = vrot.slane %v765_v16, 5  ;;  %v914_v0 = vld [vmem:[%s5390_s18 + $0x12] sm:$0x2] }
  0x71   : > { %v791_v23 = vrot.slane %v766_v18, 4  ;;  %v747_v27 = vld.sshfl [vmem:[#allocation1 + $0x20] sm:$0xff pattern:$0x75643120] }
  0x72   : > { %4665 = vmatmul.msk.bf16.gmra.mxu0 %vm1432_vm10, %v1431_v14  ;;  %v790_v28 = vsel %vm536_vm4, %v789_v21, %v788_v20  ;;  %v751_v30 = vld.sshfl [vmem:[#allocation1 + $0x30] sm:$0xff pattern:$0x75643120]  ;;  %v767_v31 = vunpack.c.l.b16 %v747_v27  ;;  %827 = vst [vmem:[#allocation1 + $0x20] ss:$2 sm:$0xff] %v806_v22  ;;  %v640_v27 = vunpack.c.l.b16 %v5454_v61 }
  0x73   : > { %v768_v32 = vunpack.c.l.b16 %v751_v30  ;;  %v792_v33 = vsel %vm539_vm5, %v791_v23, %v790_v28  ;;  %832 = vst [vmem:[#allocation1 + $0x30] ss:$2 sm:$0xff] %v807_v24  ;;  %v906_v18 = vld [vmem:[%s5390_s18 + $0x2] sm:$0x2]  ;;  %v1616_v24 = vunpack.c.l.b16 %v1377_v19 }
  0x74   : > { %v793_v35 = vrot.slane %v767_v31, 3  ;;  %v641_v31 = vunpack.c.l.b16 %v5459_v2 }
  0x75   : > { %v818_v36 = vld.sshfl [vmem:[#allocation1] sm:$0xff pattern:$0x75643120]  ;;  %v795_v37 = vrot.slane %v768_v32, 2  ;;  %v1618_v61 = vpack.c.b16 %v1616_v24, %v1616_v24  ;;  %v917_v24 = vld [vmem:[%s5390_s18 + $0x18] sm:$0x2] }
  0x76   : > { %v823_v38 = vld.sshfl [vmem:[#allocation1 + $0x10] sm:$0xff pattern:$0x75643120]  ;;  %836 = vst [vmem:[#allocation1] ss:$2 sm:$0xff] %v808_v25  ;;  %v867_v39 = vunpack.c.l.b16 %v818_v36  ;;  %v794_v40 = vsel %vm542_vm6, %v793_v35, %v792_v33  ;;  %v639_v33 = vunpack.c.l.b16 %v5451_v59  ;;  %v657_v35 = vrot.slane %v640_v27, 7 }
  0x77   : > { %840 = vst [vmem:[#allocation1 + $0x10] ss:$2 sm:$0xff] %v809_v34  ;;  %v796_v41 = vsel %vm545_vm7, %v795_v37, %v794_v40  ;;  %v868_v42 = vunpack.c.l.b16 %v823_v38  ;;  %v642_v34 = vunpack.c.l.b16 %v5464_v4  ;;  %v909_v36 = vld [vmem:[%s5390_s18 + $0x8] sm:$0x2]  ;;  %v659_v37 = vrot.slane %v641_v31, 6 }
  0x78   : > { %v879_v43 = vrot.slane %v867_v39, 1  ;;  %v798_v44 = vpack.c.b16 %v796_v41, %v796_v41  ;;  %v910_v38 = vld [vmem:[%s5390_s18 + $0xa] sm:$0x2]  ;;  %v1753_v39 = vld [vmem:[#allocation2 + $0x8] sm:$0xf]  ;;  %v658_v40 = vsel %vm527_vm1, %v657_v35, %v639_v33 }
  0x79   : > { %v828_v48 = vld.sshfl [vmem:[#allocation1 + $0x20] sm:$0xff pattern:$0x75643120]  ;;  %v661_v41 = vrot.slane %v642_v34, 5 }
  0x7a   : > { %803 = vst.msk [vmem:[#allocation2 + $0x14] sm:$0xf] %vm565_vm8, %v798_v44  ;;  %v833_v49 = vld.sshfl [vmem:[#allocation1 + $0x30] sm:$0xff pattern:$0x75643120]  ;;  %v869_v50 = vunpack.c.l.b16 %v828_v48  ;;  %v880_v54 = vsel %vm527_vm1, %v868_v42, %v879_v43  ;;  %v660_v43 = vsel %vm530_vm2, %v659_v37, %v658_v40 }
  0x7b   : > { %844 = vst [vmem:[#allocation1 + $0x20] ss:$2 sm:$0xff] %v810_v45  ;;  %v870_v53 = vunpack.c.l.b16 %v833_v49  ;;  %v662_v4 = vsel %vm533_vm3, %v661_v41, %v660_v43  ;;  %v911_v44 = vld [vmem:[%s5390_s18 + $0xc] sm:$0x2]  ;;  %v912_v45 = vld [vmem:[%s5390_s18 + $0xe] sm:$0x2] }
  0x7c   : > { %848 = vst [vmem:[#allocation1 + $0x30] ss:$2 sm:$0xff] %v811_v46  ;;  %v881_v56 = vrot.slane %v869_v50, 7  ;;  %v4714_v46 = vld [vmem:[#allocation2] sm:$0xe]  ;;  %v664_v49 = vpack.c.b16 %v662_v4, %v662_v4 }
  0x7d   : > { %v837_v55 = vld.sshfl [vmem:[#allocation1] sm:$0xff pattern:$0x75643120]  ;;  %v883_v60 = vrot.slane %v870_v53, 6  ;;  %v919_v37 = vld [vmem:[%s5390_s18 + $0x1c] sm:$0x2] }
  0x7e   : > { %v841_v57 = vld.sshfl [vmem:[#allocation1 + $0x10] sm:$0xff pattern:$0x75643120]  ;;  %852 = vst [vmem:[#allocation1] ss:$2 sm:$0xff] %v812_v47  ;;  %v871_v58 = vunpack.c.l.b16 %v837_v55  ;;  %v882_v63 = vsel %vm530_vm2, %v881_v56, %v880_v54 }
  0x7f   : > { %856 = vst [vmem:[#allocation1 + $0x10] ss:$2 sm:$0xff] %v813_v52  ;;  %v872_v62 = vunpack.c.l.b16 %v841_v57  ;;  %v884_v1 = vsel %vm533_vm3, %v883_v60, %v882_v63  ;;  %v5064_v47 = vld [vmem:[#allocation2] sm:$0xf0]  ;;  %v1388_v48 = vld [vmem:[%s6554_s2 + $0x4] sm:$0xf]  ;;  %v1773_v52 = vunpack.c.l.b16 %v1753_v39 }
  0x80   : > { %v885_v3 = vrot.slane %v871_v58, 5  ;;  %v1661_v53 = vsel %vm1439_vm0, %v1388_v48, 0  ;;  %669 = vst.msk [vmem:[#allocation2 + $0xc] sm:$0x3] %vm668_vm11, %v664_v49  ;;  %v913_v60 = vld [vmem:[%s5390_s18 + $0x10] sm:$0x2] }
  0x81   : > { %v887_v7 = vrot.slane %v872_v62, 4  ;;  %v5061_v30 = vld [vmem:[#allocation2 + $0x10] sm:$0xff]  ;;  %1670 = vmatpush.bf16.msrb.mxu1 %v1661_v53  ;;  %v4715_v62 = vor.u32 %v5064_v47, %v4714_v46  ;;  %v5565_v63 = vpack.c.b16 %v1773_v52, %v1773_v52 }
  0x82   : > { %4688 = vmatmul.msk.bf16.vlgmr.msrb.gmra.mxu0 %vm1432_vm10, %v5056_v51  ;;  %v886_v9 = vsel %vm536_vm4, %v885_v3, %v884_v1  ;;  %v845_v10 = vld.sshfl [vmem:[#allocation1 + $0x20] sm:$0xff pattern:$0x75643120]  ;;  %v1472_v42 = vshll.u32 %v5061_v30, 16  ;;  %v1470_v51 = vshrl.u32 %v5061_v30, 16 }
  0x83   : > { %v849_v11 = vld.sshfl [vmem:[#allocation1 + $0x30] sm:$0xff pattern:$0x75643120]  ;;  %860 = vst [vmem:[#allocation1 + $0x20] ss:$2 sm:$0xff] %v814_v6  ;;  %v873_v12 = vunpack.c.l.b16 %v845_v10  ;;  %v888_v14 = vsel %vm539_vm5, %v887_v7, %v886_v9  ;;  %v1777_v9 = vrot.slane %v4715_v62, 1 }
  0x84   : > { %864 = vst [vmem:[#allocation1 + $0x30] ss:$2 sm:$0xff] %v815_v8  ;;  %v874_v13 = vunpack.c.l.b16 %v849_v11  ;;  %v1474_v55 = vrot.slane %v1472_v42, 1  ;;  %v915_v8 = vld [vmem:[%s5390_s18 + $0x14] sm:$0x2]  ;;  %v1778_v10 = vrot.slane %v5565_v63, 1 }
  0x85   : > { %v889_v16 = vrot.slane %v873_v12, 3  ;;  %v5529_v17 = vld.sshfl [vmem:[#allocation1] sm:$0xff pattern:$0x75643120]  ;;  %v920_v41 = vld [vmem:[%s5390_s18 + $0x1e] sm:$0x2] }
  0x86   : > { %v891_v20 = vrot.slane %v874_v13, 2  ;;  %v5532_v21 = vld.sshfl [vmem:[#allocation1 + $0x10] sm:$0xff pattern:$0x75643120]  ;;  %922 = vst [vmem:[#allocation1] ss:$2 sm:$0xff] %v905_v15  ;;  %v1475_v3 = vor.u32 %v1474_v55, %v1470_v51 }
  0x87   : > { %v890_v22 = vsel %vm542_vm6, %v889_v16, %v888_v14  ;;  %927 = vst [vmem:[#allocation1 + $0x10] ss:$2 sm:$0xff] %v906_v18  ;;  %v916_v13 = vld [vmem:[%s5390_s18 + $0x16] sm:$0x2]  ;;  %v4736_v16 = vld [vmem:[%s6554_s2 + $0x30] sm:$0xf] }
  0x88   : > { %v892_v23 = vsel %vm545_vm7, %v891_v20, %v890_v22  ;;  %v1989_v19 = vsel %vm1439_vm0, %v4736_v16, 0  ;;  %v1040_v55 = vld [vmem:[%s5420_s22 + $0x2] sm:$0x2]  ;;  %v1042_v16 = vld [vmem:[%s5420_s22 + $0x6] sm:$0x2] }
  0x89   : > { %v899_v25 = vpack.c.b16 %v892_v23, %v892_v23  ;;  %v1779_v23 = vsel %vm1776_vm12, %v1777_v9, %v1778_v10  ;;  %1998 = vmatpush.bf16.msrb.mxu0 %v1989_v19 }
  0x8a   : > { %v5538_v28 = vld.sshfl [vmem:[#allocation1 + $0x20] sm:$0xff pattern:$0x75643120] }
  0x8b   : > { %903 = vst.msk [vmem:[#allocation2 + $0x18] sm:$0xf] %vm565_vm8, %v899_v25  ;;  %v5543_v32 = vld.sshfl [vmem:[#allocation1 + $0x30] sm:$0xff pattern:$0x75643120] }
  0x8c   : > { %932 = vst [vmem:[#allocation1 + $0x20] ss:$2 sm:$0xff] %v907_v26 }
  0x8d   : > { %937 = vst [vmem:[#allocation1 + $0x30] ss:$2 sm:$0xff] %v908_v29  ;;  %v923_v2 = vld.sshfl [vmem:[#allocation1] sm:$0xff pattern:$0x75643120] }
  0x8e   : > { %v5551_v59 = vld.sshfl [vmem:[#allocation1 + $0x10] sm:$0xff pattern:$0x75643120]  ;;  %941 = vst [vmem:[#allocation1] ss:$2 sm:$0xff] %v909_v36  ;;  %v988_v11 = vunpack.c.l.b16 %v923_v2 }
  0x8f   : > { %945 = vst [vmem:[#allocation1 + $0x10] ss:$2 sm:$0xff] %v910_v38  ;;  %v989_v15 = vunpack.c.l.b16 %v5551_v59  ;;  %v918_v29 = vld [vmem:[%s5390_s18 + $0x1a] sm:$0x2] }
  0x90   : > { %v1004_v27 = vrot.slane %v988_v11, 2 }
  0x91   : > { %v1005_v34 = vrot.slane %v989_v15, 1 }
  0x92   : > { %4689 = vmatmul.msk.bf16.gmra.mxu0 %vm1432_vm10, %v1618_v61  ;;  %v1396_v50 = vld [vmem:[#allocation2 + $0x18] sm:$0xf] }
  0x93   : > { %v1466_v54 = vunpack.c.l.b16 %v1396_v50  ;;  %v933_v56 = vld.sshfl [vmem:[#allocation1 + $0x20] sm:$0xff pattern:$0x75643120]  ;;  %v1006_v39 = vsel %vm527_vm1, %v1005_v34, %v1004_v27 }
  0x94   : > { %v938_v57 = vld.sshfl [vmem:[#allocation1 + $0x30] sm:$0xff pattern:$0x75643120]  ;;  %949 = vst [vmem:[#allocation1 + $0x20] ss:$2 sm:$0xff] %v911_v44  ;;  %v990_v25 = vunpack.c.l.b16 %v933_v56 }
  0x95   : > { %v5562_v58 = vpack.c.b16 %v1466_v54, %v1466_v54  ;;  %953 = vst [vmem:[#allocation1 + $0x30] ss:$2 sm:$0xff] %v912_v45  ;;  %v942_v1 = vld.sshfl [vmem:[#allocation1] sm:$0xff pattern:$0x75643120]  ;;  %v991_v18 = vunpack.c.l.b16 %v938_v57 }
  0x96   : > { %v946_v6 = vld.sshfl [vmem:[#allocation1 + $0x10] sm:$0xff pattern:$0x75643120]  ;;  %957 = vst [vmem:[#allocation1] ss:$2 sm:$0xff] %v913_v60  ;;  %v992_v22 = vunpack.c.l.b16 %v942_v1  ;;  %v1007_v2 = vsel %vm530_vm2, %v990_v25, %v1006_v39 }
  0x97   : > { %v1477_v5 = vshll.u32 %v5562_v58, 16  ;;  %961 = vst [vmem:[#allocation1 + $0x10] ss:$2 sm:$0xff] %v914_v0  ;;  %v993_v26 = vunpack.c.l.b16 %v946_v6  ;;  %v1008_v61 = vrot.slane %v991_v18, 7  ;;  %v1481_v46 = vshrl.u32 %v5562_v58, 16 }
  0x98   : > { %v1010_v40 = vrot.slane %v992_v22, 6  ;;  %v1039_v54 = vld [vmem:[%s5420_s22] sm:$0x2]  ;;  %v4742_v56 = vld [vmem:[#allocation2] sm:$0xe] }
  0x99   : > { %v5569_v7 = vrot.slane %v1477_v5, 1  ;;  %v1012_v42 = vrot.slane %v993_v26, 5  ;;  %v1009_v59 = vsel %vm533_vm3, %v1008_v61, %v1007_v2  ;;  %v5068_v57 = vld [vmem:[#allocation2] sm:$0xf0]  ;;  %v4746_v60 = vld [vmem:[#allocation2 + $0x8] sm:$0xf] }
  0x9a   : > { %v1011_v48 = vsel %vm536_vm4, %v1010_v40, %v1009_v59  ;;  %v1041_v0 = vld [vmem:[%s5420_s22 + $0x4] sm:$0x2]  ;;  %v1045_v40 = vld [vmem:[%s5420_s22 + $0xc] sm:$0x2] }
  0x9b   : > { %v1480_v12 = vsel %vm1416_vm9, %v1475_v3, %v5569_v7  ;;  %v950_v14 = vld.sshfl [vmem:[#allocation1 + $0x20] sm:$0xff pattern:$0x75643120]  ;;  %v1013_v50 = vsel %vm539_vm5, %v1012_v42, %v1011_v48  ;;  %v1483_v1 = vor.u32 %v1481_v46, %v5569_v7  ;;  %v5069_v3 = vld [vmem:[#allocation2 + $0x8] sm:$0x10] }
  0x9c   : > { %4670 = vmatmul.msk.bf16.vlgmr.msra.gmra.mxu1 %vm1432_vm10, %v1480_v12  ;;  %965 = vst [vmem:[#allocation1 + $0x20] ss:$2 sm:$0xff] %v915_v8  ;;  %v954_v20 = vld.sshfl [vmem:[#allocation1 + $0x30] sm:$0xff pattern:$0x75643120]  ;;  %v994_v31 = vunpack.c.l.b16 %v950_v14  ;;  %v4747_v7 = vor.u32 %v5069_v3, %v4746_v60 }
  0x9d   : > { %969 = vst [vmem:[#allocation1 + $0x30] ss:$2 sm:$0xff] %v916_v13  ;;  %v958_v30 = vld.sshfl [vmem:[#allocation1] sm:$0xff pattern:$0x75643120]  ;;  %v995_v33 = vunpack.c.l.b16 %v954_v20  ;;  %v4743_v13 = vor.u32 %v5068_v57, %v4742_v56 }
  0x9e   : > { %v962_v35 = vld.sshfl [vmem:[#allocation1 + $0x10] sm:$0xff pattern:$0x75643120]  ;;  %v996_v36 = vunpack.c.l.b16 %v958_v30  ;;  %973 = vst [vmem:[#allocation1] ss:$2 sm:$0xff] %v917_v24  ;;  %v1014_v4 = vrot.slane %v994_v31, 4 }
  0x9f   : > { %v997_v38 = vunpack.c.l.b16 %v962_v35  ;;  %977 = vst [vmem:[#allocation1 + $0x10] ss:$2 sm:$0xff] %v918_v29  ;;  %v1016_v44 = vrot.slane %v995_v33, 3  ;;  %v4658_v20 = vld [vmem:[%s6554_s2 + $0x18] sm:$0xf]  ;;  %v1966_v27 = vshrl.u32 %v4743_v13, 16 }
  0xa0   : > { %v1018_v45 = vrot.slane %v996_v36, 2  ;;  %v1015_v53 = vsel %vm542_vm6, %v1014_v4, %v1013_v50  ;;  %v1541_v24 = vsel %vm1439_vm0, %v4658_v20, 0  ;;  %v1043_v33 = vld [vmem:[%s5420_s22 + $0x8] sm:$0x2]  ;;  %v1969_v34 = vshll.u32 %v4743_v13, 16 }
  0xa1   : > { %v1019_v51 = vrot.slane %v997_v38, 1  ;;  %v1017_v58 = vsel %vm545_vm7, %v1016_v44, %v1015_v53  ;;  %1550 = vmatpush.bf16.msra.mxu2 %v1541_v24  ;;  %v1044_v35 = vld [vmem:[%s5420_s22 + $0xa] sm:$0x2]  ;;  %v1974_v36 = vshrl.u32 %v4747_v7, 16  ;;  %v1977_v61 = vshll.u32 %v4747_v7, 16 }
  0xa2   : > { %4716 = vmatmul.msk.bf16.vlgmr.msra.gmra.mxu0 %vm1432_vm10, %v1779_v23  ;;  %v1032_v9 = vpack.c.b16 %v1017_v58, %v1017_v58  ;;  %v1968_v2 = vrot.slane %v1966_v27, 1  ;;  %v4709_v53 = vld [vmem:[%s6554_s2 + $0x24] sm:$0xf]  ;;  %v1048_v57 = vld [vmem:[%s5420_s22 + $0x12] sm:$0x2] }
  0xa3   : > { %v966_v43 = vld.sshfl [vmem:[#allocation1 + $0x20] sm:$0xff pattern:$0x75643120]  ;;  %v1020_v62 = vsel %vm527_vm1, %v1019_v51, %v1018_v45  ;;  %v1976_v48 = vrot.slane %v1974_v36, 1  ;;  %v1979_v63 = vrot.slane %v1977_v61, 2  ;;  %v1825_v56 = vsel %vm1439_vm0, %v4709_v53, 0 }
  0xa4   : > { %981 = vst [vmem:[#allocation1 + $0x20] ss:$2 sm:$0xff] %v919_v37  ;;  %v998_v47 = vunpack.c.l.b16 %v966_v43  ;;  %v970_v49 = vld.sshfl [vmem:[#allocation1 + $0x30] sm:$0xff pattern:$0x75643120]  ;;  %1834 = vmatpush.bf16.msra.mxu1 %v1825_v56 }
  0xa5   : > { %985 = vst [vmem:[#allocation1 + $0x30] ss:$2 sm:$0xff] %v920_v41  ;;  %v999_v52 = vunpack.c.l.b16 %v970_v49  ;;  %v974_v5 = vld.sshfl [vmem:[#allocation1] sm:$0xff pattern:$0x75643120] }
  0xa6   : > { %v1021_v6 = vsel %vm530_vm2, %v998_v47, %v1020_v62  ;;  %v978_v11 = vld.sshfl [vmem:[#allocation1 + $0x10] sm:$0xff pattern:$0x75643120]  ;;  %v1000_v12 = vunpack.c.l.b16 %v974_v5  ;;  %1052 = vst [vmem:[#allocation1] ss:$2 sm:$0xff] %v1039_v54  ;;  %v1971_v47 = vrot.slane %v1969_v34, 2  ;;  %v5633_v5 = vor.u32 %v1979_v63, %v1976_v48 }
  0xa7   : > { %v1022_v8 = vrot.slane %v999_v52, 7  ;;  %v1001_v14 = vunpack.c.l.b16 %v978_v11  ;;  %1037 = vst.msk [vmem:[#allocation2 + $0x20] sm:$0xf] %vm565_vm8, %v1032_v9  ;;  %v1046_v43 = vld [vmem:[%s5420_s22 + $0xe] sm:$0x2]  ;;  %v5057_v54 = vld [vmem:[#allocation2 + $0x10] sm:$0xff] }
  0xa8   : > { %v1024_v19 = vrot.slane %v1000_v12, 6  ;;  %1057 = vst [vmem:[#allocation1 + $0x10] ss:$2 sm:$0xff] %v1040_v55  ;;  %v1047_v51 = vld [vmem:[%s5420_s22 + $0x10] sm:$0x2]  ;;  %v1972_v3 = vor.u32 %v1971_v47, %v1968_v2  ;;  %v877_v2 = vunpack.c.l.b16 %v5538_v28 }
  0xa9   : > { %v1023_v15 = vsel %vm533_vm3, %v1022_v8, %v1021_v6  ;;  %v1026_v23 = vrot.slane %v1001_v14, 5  ;;  %v1050_v6 = vld [vmem:[%s5420_s22 + $0x16] sm:$0x2]  ;;  %v1140_v24 = vld [vmem:[%s5390_s18] sm:$0x2] }
  0xaa   : > { %v1025_v26 = vsel %vm536_vm4, %v1024_v19, %v1023_v15  ;;  %v1981_v19 = vsel %vm1964_vm13, %v1972_v3, %v5633_v5  ;;  %v1145_v63 = vld [vmem:[%s5390_s18 + $0xa] sm:$0x2]  ;;  %v1756_v28 = vld [vmem:[#allocation2 + $0x18] sm:$0xf] }
  0xab   : > { %v982_v18 = vld.sshfl [vmem:[#allocation1 + $0x20] sm:$0xff pattern:$0x75643120]  ;;  %v1027_v30 = vsel %vm539_vm5, %v1026_v23, %v1025_v26 }
  0xac   : > { %4671 = vmatmul.msk.bf16.gmra.mxu1 %vm1432_vm10, %v1483_v1  ;;  %v1002_v22 = vunpack.c.l.b16 %v982_v18  ;;  %1062 = vst [vmem:[#allocation1 + $0x20] ss:$2 sm:$0xff] %v1041_v0  ;;  %v986_v25 = vld.sshfl [vmem:[#allocation1 + $0x30] sm:$0xff pattern:$0x75643120] }
  0xad   : > { %v1003_v29 = vunpack.c.l.b16 %v986_v25  ;;  %1067 = vst [vmem:[#allocation1 + $0x30] ss:$2 sm:$0xff] %v1042_v16  ;;  %v1053_v39 = vld.sshfl [vmem:[#allocation1] sm:$0xff pattern:$0x75643120] }
  0xae   : > { %v1028_v31 = vrot.slane %v1002_v22, 4  ;;  %1071 = vst [vmem:[#allocation1] ss:$2 sm:$0xff] %v1043_v33  ;;  %v1102_v41 = vunpack.c.l.b16 %v1053_v39  ;;  %v1049_v0 = vld [vmem:[%s5420_s22 + $0x14] sm:$0x2] }
  0xaf   : > { %v1030_v38 = vrot.slane %v1003_v29, 3  ;;  %v1058_v59 = vld.sshfl [vmem:[#allocation1 + $0x10] sm:$0xff pattern:$0x75643120]  ;;  %v4780_v23 = vld [vmem:[%s6554_s2 + $0x40] sm:$0xf] }
  0xb0   : > { %v1029_v37 = vsel %vm542_vm6, %v1028_v31, %v1027_v30  ;;  %1075 = vst [vmem:[#allocation1 + $0x10] ss:$2 sm:$0xff] %v1044_v35  ;;  %v1103_v45 = vunpack.c.l.b16 %v1058_v59  ;;  %v1114_v46 = vrot.slane %v1102_v41, 2  ;;  %v2225_v29 = vsel %vm1439_vm0, %v4780_v23, 0  ;;  %v1380_v30 = vld [vmem:[#allocation2 + $0x18] sm:$0x7] }
  0xb1   : > { %v1031_v42 = vsel %vm545_vm7, %v1030_v38, %v1029_v37  ;;  %v1141_v31 = vld [vmem:[%s5390_s18 + $0x2] sm:$0x2]  ;;  %2234 = vmatpush.bf16.msra.mxu0 %v2225_v29  ;;  %v1142_v35 = vld [vmem:[%s5390_s18 + $0x4] sm:$0x2]  ;;  %v1651_v37 = vunpack.c.l.b16 %v1380_v30  ;;  %v875_v38 = vunpack.c.l.b16 %v5529_v17  ;;  %v1143_v39 = vld [vmem:[%s5390_s18 + $0x6] sm:$0x2] }
  0xb2   : > { %4717 = vmatmul.msk.bf16.gmra.mxu0 %vm1432_vm10, %v1778_v10  ;;  %v1033_v4 = vpack.c.b16 %v1031_v42, %v1031_v42  ;;  %v1115_v50 = vrot.slane %v1103_v45, 1  ;;  %v876_v42 = vunpack.c.l.b16 %v5532_v21  ;;  %v895_v17 = vrot.slane %v877_v2, 7  ;;  %v1146_v21 = vld [vmem:[%s5390_s18 + $0xc] sm:$0x2]  ;;  %v4737_v30 = vld [vmem:[%s6554_s2 + $0x34] sm:$0xf] }
  0xb3   : > { %v1063_v44 = vld.sshfl [vmem:[#allocation1 + $0x20] sm:$0xff pattern:$0x75643120]  ;;  %v893_v59 = vrot.slane %v875_v38, 1 }
  0xb4   : > { %1079 = vst [vmem:[#allocation1 + $0x20] ss:$2 sm:$0xff] %v1045_v40  ;;  %v1104_v10 = vunpack.c.l.b16 %v1063_v44  ;;  %v1068_v49 = vld.sshfl [vmem:[#allocation1 + $0x30] sm:$0xff pattern:$0x75643120]  ;;  %v1116_v55 = vsel %vm527_vm1, %v1115_v50, %v1114_v46 }
  0xb5   : > { %1038 = vst.msk [vmem:[#allocation2 + $0x24] sm:$0xf] %vm565_vm8, %v1033_v4  ;;  %v1105_v52 = vunpack.c.l.b16 %v1068_v49  ;;  %v1072_v60 = vld.sshfl [vmem:[#allocation1] sm:$0xff pattern:$0x75643120]  ;;  %v1653_v4 = vpack.c.b16 %v1651_v37, %v1651_v37  ;;  %v894_v44 = vsel %vm527_vm1, %v876_v42, %v893_v59 }
  0xb6   : > { %1083 = vst [vmem:[#allocation1 + $0x30] ss:$2 sm:$0xff] %v1046_v43  ;;  %v1117_v58 = vsel %vm530_vm2, %v1104_v10, %v1116_v55  ;;  %v1106_v1 = vunpack.c.l.b16 %v1072_v60  ;;  %v878_v43 = vunpack.c.l.b16 %v5543_v32  ;;  %v1144_v46 = vld [vmem:[%s5390_s18 + $0x8] sm:$0x2]  ;;  %v896_v48 = vsel %vm530_vm2, %v895_v17, %v894_v44  ;;  %v1147_v50 = vld [vmem:[%s5390_s18 + $0xe] sm:$0x2] }
  0xb7   : > { %v1118_v62 = vrot.slane %v1105_v52, 7  ;;  %1087 = vst [vmem:[#allocation1] ss:$2 sm:$0xff] %v1047_v51  ;;  %v1076_v8 = vld.sshfl [vmem:[#allocation1 + $0x10] sm:$0xff pattern:$0x75643120]  ;;  %v1812_v60 = vunpack.c.l.b16 %v1756_v28 }
  0xb8   : > { %1091 = vst [vmem:[#allocation1 + $0x10] ss:$2 sm:$0xff] %v1048_v57  ;;  %v1107_v12 = vunpack.c.l.b16 %v1076_v8  ;;  %v1120_v13 = vrot.slane %v1106_v1, 6  ;;  %v897_v45 = vrot.slane %v878_v43, 6  ;;  %v5065_v55 = vld [vmem:[#allocation2 + $0x10] sm:$0xf0] }
  0xb9   : > { %v1119_v9 = vsel %vm533_vm3, %v1118_v62, %v1117_v58  ;;  %v1389_v62 = vld [vmem:[%s6554_s2 + $0x8] sm:$0xf]  ;;  %v1149_v8 = vld [vmem:[%s5390_s18 + $0x12] sm:$0x2]  ;;  %v1152_v37 = vld [vmem:[%s5390_s18 + $0x18] sm:$0x2] }
  0xba   : > { %v1121_v16 = vsel %vm536_vm4, %v1120_v13, %v1119_v9  ;;  %v1122_v18 = vrot.slane %v1107_v12, 5  ;;  %v898_v10 = vsel %vm533_vm3, %v897_v45, %v896_v48  ;;  %v1696_v3 = vsel %vm1439_vm0, %v1389_v62, 0 }
  0xbb   : > { %v1080_v11 = vld.sshfl [vmem:[#allocation1 + $0x20] sm:$0xff pattern:$0x75643120]  ;;  %v900_v32 = vpack.c.b16 %v898_v10, %v898_v10  ;;  %1705 = vmatpush.bf16.msrb.mxu2 %v1696_v3  ;;  %v5688_v13 = vpack.c.b16 %v1812_v60, %v1812_v60  ;;  %v5070_v60 = vld [vmem:[#allocation2 + $0x10] sm:$0xf0] }
  0xbc   : > { %4694 = vmatmul.msk.bf16.vlgmr.msrb.gmra.mxu1 %vm1432_vm10, %v5057_v54  ;;  %1095 = vst [vmem:[#allocation1 + $0x20] ss:$2 sm:$0xff] %v1049_v0  ;;  %v1108_v14 = vunpack.c.l.b16 %v1080_v11  ;;  %v1123_v22 = vsel %vm539_vm5, %v1122_v18, %v1121_v16  ;;  %v5062_v41 = vld [vmem:[#allocation2 + $0x20] sm:$0xff]  ;;  %v4720_v54 = vld [vmem:[#allocation2 + $0x10] sm:$0xe] }
  0xbd   : > { %v1084_v15 = vld.sshfl [vmem:[#allocation1 + $0x30] sm:$0xff pattern:$0x75643120]  ;;  %v1522_v47 = vshll.u32 %v5062_v41, 16  ;;  %v1520_v53 = vshrl.u32 %v5062_v41, 16  ;;  %v4721_v12 = vor.u32 %v5065_v55, %v4720_v54 }
  0xbe   : > { %1099 = vst [vmem:[#allocation1 + $0x30] ss:$2 sm:$0xff] %v1050_v6  ;;  %v1109_v7 = vunpack.c.l.b16 %v1084_v15  ;;  %v1124_v20 = vrot.slane %v1108_v14, 4  ;;  %v5646_v25 = vld.sshfl [vmem:[#allocation1] sm:$0xff pattern:$0x75643120] }
  0xbf   : > { %v5652_v33 = vld.sshfl [vmem:[#allocation1 + $0x10] sm:$0xff pattern:$0x75643120]  ;;  %1157 = vst [vmem:[#allocation1] ss:$2 sm:$0xff] %v1140_v24  ;;  %v1524_v57 = vrot.slane %v1522_v47, 1 }
  0xc0   : > { %v1125_v26 = vsel %vm542_vm6, %v1124_v20, %v1123_v22  ;;  %v1126_v27 = vrot.slane %v1109_v7, 3  ;;  %1162 = vst [vmem:[#allocation1 + $0x10] ss:$2 sm:$0xff] %v1141_v31  ;;  %v1148_v6 = vld [vmem:[%s5390_s18 + $0x10] sm:$0x2]  ;;  %v1815_v24 = vrot.slane %v4721_v12, 1 }
  0xc1   : > { %904 = vst.msk [vmem:[#allocation2 + $0x1c] sm:$0x3] %vm668_vm11, %v900_v32  ;;  %v1525_v9 = vor.u32 %v1524_v57, %v1520_v53  ;;  %v4786_v14 = vld [vmem:[#allocation2] sm:$0xc]  ;;  %v5076_v15 = vld [vmem:[#allocation2] sm:$0xf0] }
  0xc2   : > { %4748 = vmatmul.msk.bf16.vlgmr.msrb.gmra.mxu0 %vm1432_vm10, %v1981_v19  ;;  %v1127_v34 = vsel %vm545_vm7, %v1126_v27, %v1125_v26  ;;  %v4790_v16 = vld [vmem:[#allocation2 + $0x8] sm:$0xf]  ;;  %v5077_v18 = vld [vmem:[#allocation2 + $0x8] sm:$0x10]  ;;  %v1150_v22 = vld [vmem:[%s5390_s18 + $0x14] sm:$0x2]  ;;  %v4787_v27 = vor.u32 %v5076_v15, %v4786_v14 }
  0xc3   : > { %v5656_v36 = vld.sshfl [vmem:[#allocation1 + $0x20] sm:$0xff pattern:$0x75643120]  ;;  %v1134_v61 = vpack.c.b16 %v1127_v34, %v1127_v34  ;;  %v1816_v26 = vrot.slane %v5688_v13, 1  ;;  %v4791_v29 = vor.u32 %v5077_v18, %v4790_v16  ;;  %v2043_v34 = vsel %vm1439_vm0, %v4737_v30, 0 }
  0xc4   : > { %1167 = vst [vmem:[#allocation1 + $0x20] ss:$2 sm:$0xff] %v1142_v35  ;;  %2052 = vmatpush.bf16.msrb.mxu1 %v2043_v34  ;;  %v2215_v42 = vrot.slane %v4787_v27, 2  ;;  %v1155_v32 = vld [vmem:[%s5390_s18 + $0x1e] sm:$0x2] }
  0xc5   : > { %v5660_v40 = vld.sshfl [vmem:[#allocation1 + $0x30] sm:$0xff pattern:$0x75643120]  ;;  %1138 = vst.msk [vmem:[#allocation2 + $0x28] sm:$0xf] %vm565_vm8, %v1134_v61  ;;  %v5705_v43 = vrot.slane %v4791_v29, 2 }
  0xc6   : > { %1172 = vst [vmem:[#allocation1 + $0x30] ss:$2 sm:$0xff] %v1143_v39  ;;  %v1158_v49 = vld.sshfl [vmem:[#allocation1] sm:$0xff pattern:$0x75643120]  ;;  %v1817_v39 = vsel %vm1776_vm12, %v1815_v24, %v1816_v26 }
  0xc7   : > { %v1163_v51 = vld.sshfl [vmem:[#allocation1 + $0x10] sm:$0xff pattern:$0x75643120]  ;;  %1176 = vst [vmem:[#allocation1] ss:$2 sm:$0xff] %v1144_v46  ;;  %v1223_v61 = vunpack.c.l.b16 %v1158_v49  ;;  %v2217_v10 = vsel %vm2214_vm14, %v2215_v42, %v5705_v43 }
  0xc8   : > { %1180 = vst [vmem:[#allocation1 + $0x10] ss:$2 sm:$0xff] %v1145_v63  ;;  %v1224_v38 = vunpack.c.l.b16 %v1163_v51  ;;  %v4824_v49 = vld [vmem:[%s6554_s2 + $0x50] sm:$0xf]  ;;  %v4752_v53 = vld [vmem:[#allocation2 + $0x10] sm:$0xe] }
  0xc9   : > { %v1239_v2 = vrot.slane %v1223_v61, 3  ;;  %v2433_v54 = vsel %vm1439_vm0, %v4824_v49, 0  ;;  %v4756_v12 = vld [vmem:[#allocation2 + $0x18] sm:$0xf]  ;;  %v5071_v18 = vld [vmem:[#allocation2 + $0x18] sm:$0x10] }
  0xca   : > { %v1240_v17 = vrot.slane %v1224_v38, 2  ;;  %2442 = vmatpush.bf16.msrb.mxu0 %v2433_v54  ;;  %v4757_v42 = vor.u32 %v5071_v18, %v4756_v12  ;;  %v5058_v18 = vld [vmem:[#allocation2 + $0x20] sm:$0xff] }
  0xcb   : > { %v1168_v58 = vld.sshfl [vmem:[#allocation1 + $0x20] sm:$0xff pattern:$0x75643120] }
  0xcc   : > { %4695 = vmatmul.msk.bf16.gmra.mxu1 %vm1432_vm10, %v1653_v4  ;;  %v1399_v52 = vld [vmem:[#allocation2 + $0x28] sm:$0xf]  ;;  %1184 = vst [vmem:[#allocation1 + $0x20] ss:$2 sm:$0xff] %v1146_v21  ;;  %v1225_v41 = vunpack.c.l.b16 %v1168_v58  ;;  %v1153_v4 = vld [vmem:[%s5390_s18 + $0x1a] sm:$0x2]  ;;  %v1241_v45 = vsel %vm527_vm1, %v1240_v17, %v1239_v2 }
  0xcd   : > { %v1516_v56 = vunpack.c.l.b16 %v1399_v52  ;;  %v5678_v0 = vld.sshfl [vmem:[#allocation1 + $0x30] sm:$0xff pattern:$0x75643120]  ;;  %v1154_v21 = vld [vmem:[%s5390_s18 + $0x1c] sm:$0x2] }
  0xce   : > { %1188 = vst [vmem:[#allocation1 + $0x30] ss:$2 sm:$0xff] %v1147_v50  ;;  %v1177_v19 = vld.sshfl [vmem:[#allocation1] sm:$0xff pattern:$0x75643120]  ;;  %v1226_v47 = vunpack.c.l.b16 %v5678_v0  ;;  %v1242_v48 = vrot.slane %v1225_v41, 1 }
  0xcf   : > { %v5680_v1 = vpack.c.b16 %v1516_v56, %v1516_v56  ;;  %v5690_v20 = vld.sshfl [vmem:[#allocation1 + $0x10] sm:$0xff pattern:$0x75643120]  ;;  %1192 = vst [vmem:[#allocation1] ss:$2 sm:$0xff] %v1148_v6  ;;  %v1227_v44 = vunpack.c.l.b16 %v1177_v19  ;;  %v4753_v19 = vor.u32 %v5070_v60, %v4752_v53  ;;  %v2028_v53 = vshrl.u32 %v4757_v42, 16 }
  0xd0   : > { %1196 = vst [vmem:[#allocation1 + $0x10] ss:$2 sm:$0xff] %v1149_v8  ;;  %v1228_v50 = vunpack.c.l.b16 %v5690_v20  ;;  %v1243_v51 = vsel %vm530_vm2, %v1242_v48, %v1241_v45  ;;  %v1274_v6 = vld [vmem:[%s5420_s22] sm:$0x2]  ;;  %v1277_v2 = vld [vmem:[%s5420_s22 + $0x6] sm:$0x2] }
  0xd1   : > { %v1527_v11 = vshll.u32 %v5680_v1, 16  ;;  %v1531_v28 = vshrl.u32 %v5680_v1, 16  ;;  %v1245_v52 = vrot.slane %v1227_v44, 7  ;;  %v1244_v3 = vsel %vm533_vm3, %v1226_v47, %v1243_v51  ;;  %v5084_v17 = vld [vmem:[#allocation2] sm:$0xf0] }
  0xd2   : > { %4749 = vmatmul.msk.bf16.gmra.mxu0 %vm1432_vm10, %v5633_v5  ;;  %v1151_v5 = vld [vmem:[%s5390_s18 + $0x16] sm:$0x2]  ;;  %v1247_v16 = vrot.slane %v1228_v50, 6  ;;  %v4834_v47 = vld [vmem:[#allocation2 + $0x8] sm:$0xf] }
  0xd3   : > { %v1529_v7 = vrot.slane %v1527_v11, 1  ;;  %v1185_v31 = vld.sshfl [vmem:[#allocation1 + $0x20] sm:$0xff pattern:$0x75643120]  ;;  %v1246_v15 = vsel %vm536_vm4, %v1245_v52, %v1244_v3  ;;  %v5085_v48 = vld [vmem:[#allocation2 + $0x8] sm:$0x30] }
  0xd4   : > { %1200 = vst [vmem:[#allocation1 + $0x20] ss:$2 sm:$0xff] %v1150_v22  ;;  %v1229_v56 = vunpack.c.l.b16 %v1185_v31  ;;  %v1275_v11 = vld [vmem:[%s5420_s22 + $0x2] sm:$0x2]  ;;  %v4659_v31 = vld [vmem:[%s6554_s2 + $0x1c] sm:$0xf]  ;;  %v4835_v54 = vor.u32 %v5085_v48, %v4834_v47 }
  0xd5   : > { %v1530_v23 = vsel %vm1416_vm9, %v1525_v9, %v1529_v7  ;;  %v1189_v35 = vld.sshfl [vmem:[#allocation1 + $0x30] sm:$0xff pattern:$0x75643120]  ;;  %v1533_v8 = vor.u32 %v1531_v28, %v1529_v7  ;;  %v1248_v7 = vsel %vm539_vm5, %v1247_v16, %v1246_v15  ;;  %v1591_v38 = vsel %vm1439_vm0, %v4659_v31, 0  ;;  %v4710_v48 = vld [vmem:[%s6554_s2 + $0x28] sm:$0xf] }
  0xd6   : > { %4676 = vmatmul.msk.bf16.vlgmr.msra.gmra.mxu2 %vm1432_vm10, %v1530_v23  ;;  %1204 = vst [vmem:[#allocation1 + $0x30] ss:$2 sm:$0xff] %v1151_v5  ;;  %v1193_v59 = vld.sshfl [vmem:[#allocation1] sm:$0xff pattern:$0x75643120]  ;;  %v1230_v57 = vunpack.c.l.b16 %v1189_v35  ;;  %v1249_v22 = vrot.slane %v1229_v56, 5  ;;  %1600 = vmatpush.bf16.msra.mxu3 %v1591_v38 }
  0xd7   : > { %1208 = vst [vmem:[#allocation1] ss:$2 sm:$0xff] %v1152_v37  ;;  %v1197_v46 = vld.sshfl [vmem:[#allocation1 + $0x10] sm:$0xff pattern:$0x75643120]  ;;  %v1231_v62 = vunpack.c.l.b16 %v1193_v59 }
  0xd8   : > { %1212 = vst [vmem:[#allocation1 + $0x10] ss:$2 sm:$0xff] %v1153_v4  ;;  %v1232_v0 = vunpack.c.l.b16 %v1197_v46  ;;  %v1251_v23 = vrot.slane %v1230_v57, 4  ;;  %v1250_v35 = vsel %vm542_vm6, %v1249_v22, %v1248_v7  ;;  %v1276_v37 = vld [vmem:[%s5420_s22 + $0x4] sm:$0x2]  ;;  %v2020_v46 = vshrl.u32 %v4753_v19, 16 }
  0xd9   : > { %v1253_v5 = vrot.slane %v1231_v62, 3  ;;  %v4830_v59 = vld [vmem:[#allocation2] sm:$0xc]  ;;  %v2421_v7 = vshll.u32 %v4835_v54, 16 }
  0xda   : > { %v1254_v27 = vrot.slane %v1232_v0, 2  ;;  %v4831_v50 = vor.u32 %v5084_v17, %v4830_v59  ;;  %v1279_v57 = vld [vmem:[%s5420_s22 + $0xa] sm:$0x2]  ;;  %v2022_v60 = vrot.slane %v2020_v46, 1 }
  0xdb   : > { %v1201_v55 = vld.sshfl [vmem:[#allocation1 + $0x20] sm:$0xff pattern:$0x75643120]  ;;  %v2423_v59 = vrot.slane %v2421_v7, 3 }
  0xdc   : > { %4722 = vmatmul.msk.bf16.vlgmr.msra.gmra.mxu1 %vm1432_vm10, %v1817_v39  ;;  %v1233_v1 = vunpack.c.l.b16 %v1201_v55  ;;  %1216 = vst [vmem:[#allocation1 + $0x20] ss:$2 sm:$0xff] %v1154_v21  ;;  %v1252_v39 = vsel %vm545_vm7, %v1251_v23, %v1250_v35  ;;  %v1255_v41 = vsel %vm527_vm1, %v1254_v27, %v1253_v5  ;;  %v2413_v12 = vshll.u32 %v4831_v50, 16  ;;  %v1280_v23 = vld [vmem:[%s5420_s22 + $0xc] sm:$0x2] }
  0xdd   : > { %v1205_v58 = vld.sshfl [vmem:[#allocation1 + $0x30] sm:$0xff pattern:$0x75643120]  ;;  %v1267_v45 = vpack.c.b16 %v1252_v39, %v1252_v39  ;;  %v1281_v5 = vld [vmem:[%s5420_s22 + $0xe] sm:$0x2] }
  0xde   : > { %v1209_v9 = vld.sshfl [vmem:[#allocation1] sm:$0xff pattern:$0x75643120]  ;;  %1220 = vst [vmem:[#allocation1 + $0x30] ss:$2 sm:$0xff] %v1155_v32  ;;  %v1234_v20 = vunpack.c.l.b16 %v1205_v58  ;;  %v1256_v29 = vrot.slane %v1233_v1, 1 }
  0xdf   : > { %v5711_v63 = vpop.f32.mrf.mxu0  ;;  %v1235_v14 = vunpack.c.l.b16 %v1209_v9  ;;  %v1213_v24 = vld.sshfl [vmem:[#allocation1 + $0x10] sm:$0xff pattern:$0x75643120]  ;;  %1287 = vst [vmem:[#allocation1] ss:$2 sm:$0xff] %v1274_v6  ;;  %v2023_v32 = vshll.u32 %v4753_v19, 16 }
  0xe0   : > { %v1236_v34 = vunpack.c.l.b16 %v1213_v24  ;;  %1292 = vst [vmem:[#allocation1 + $0x10] ss:$2 sm:$0xff] %v1275_v11  ;;  %v1257_v4 = vsel %vm530_vm2, %v1256_v29, %v1255_v41  ;;  %v2031_v58 = vshll.u32 %v4757_v42, 16  ;;  %v2030_v19 = vrot.slane %v2028_v53, 1 }
  0xe1   : > { %v1259_v61 = vrot.slane %v1235_v14, 7  ;;  %v1258_v28 = vsel %vm533_vm3, %v1234_v20, %v1257_v4  ;;  %1272 = vst.msk [vmem:[#allocation2 + $0x30] sm:$0xf] %vm565_vm8, %v1267_v45  ;;  %v2418_v14 = vshrl.u32 %v4835_v54, 16  ;;  %v2415_v35 = vrot.slane %v2413_v12, 3 }
  0xe2   : > { %4792 = vmatmul.msk.bf16.vlgmr.msra.gmra.mxu0 %vm1432_vm10, %v2217_v10  ;;  %v1261_v44 = vrot.slane %v1236_v34, 6  ;;  %v1278_v10 = vld [vmem:[%s5420_s22 + $0x8] sm:$0x2]  ;;  %v2033_v20 = vrot.slane %v2031_v58, 2 }
  0xe3   : > { %v1217_v21 = vld.sshfl [vmem:[#allocation1 + $0x20] sm:$0xff pattern:$0x75643120]  ;;  %v1260_v49 = vsel %vm536_vm4, %v1259_v61, %v1258_v28  ;;  %v2420_v61 = vrot.slane %v2418_v14, 2 }
  0xe4   : > { %v1237_v52 = vunpack.c.l.b16 %v1217_v21  ;;  %1297 = vst [vmem:[#allocation1 + $0x20] ss:$2 sm:$0xff] %v1276_v37  ;;  %v1262_v56 = vsel %vm539_vm5, %v1261_v44, %v1260_v49  ;;  %v5762_v39 = vor.u32 %v2033_v20, %v2030_v19  ;;  %v1390_v44 = vld [vmem:[%s6554_s2 + $0xc] sm:$0xf]  ;;  %v1863_v21 = vsel %vm1439_vm0, %v4710_v48, 0 }
  0xe5   : > { %v1221_v51 = vld.sshfl [vmem:[#allocation1 + $0x30] sm:$0xff pattern:$0x75643120]  ;;  %v1731_v47 = vsel %vm1439_vm0, %v1390_v44, 0  ;;  %1872 = vmatpush.bf16.msra.mxu2 %v1863_v21  ;;  %v5780_v53 = vor.u32 %v2423_v59, %v2420_v61  ;;  %v1113_v20 = vunpack.c.l.b16 %v5660_v40  ;;  %v4800_v44 = vld [vmem:[#allocation2 + $0x18] sm:$0xf] }
  0xe6   : > { %4677 = vmatmul.msk.bf16.gmra.mxu2 %vm1432_vm10, %v1533_v8  ;;  %v1238_v55 = vunpack.c.l.b16 %v1221_v51  ;;  %1302 = vst [vmem:[#allocation1 + $0x30] ss:$2 sm:$0xff] %v1277_v2  ;;  %v1263_v62 = vrot.slane %v1237_v52, 5  ;;  %v1288_v0 = vld.sshfl [vmem:[#allocation1] sm:$0xff pattern:$0x75643120]  ;;  %1740 = vmatpush.bf16.msrb.mxu3 %v1731_v47 }
  0xe7   : > { %v5731_v30 = vpop.f32.mrf.mxu0  ;;  %v1293_v6 = vld.sshfl [vmem:[#allocation1 + $0x10] sm:$0xff pattern:$0x75643120]  ;;  %1306 = vst [vmem:[#allocation1] ss:$2 sm:$0xff] %v1278_v10  ;;  %v1337_v13 = vunpack.c.l.b16 %v1288_v0  ;;  %v2025_v8 = vrot.slane %v2023_v32, 2 }
  0xe8   : > { %v1265_v3 = vrot.slane %v1238_v55, 4  ;;  %v1264_v9 = vsel %vm542_vm6, %v1263_v62, %v1262_v56  ;;  %1310 = vst [vmem:[#allocation1 + $0x10] ss:$2 sm:$0xff] %v1279_v57  ;;  %v1338_v11 = vunpack.c.l.b16 %v1293_v6  ;;  %v1383_v51 = vld [vmem:[#allocation2 + $0x28] sm:$0x7] }
  0xe9   : > { %v1349_v16 = vrot.slane %v1337_v13, 3  ;;  %v1759_v19 = vld [vmem:[#allocation2 + $0x28] sm:$0xf] }
  0xea   : > { %v1266_v15 = vsel %vm545_vm7, %v1265_v3, %v1264_v9  ;;  %v1350_v24 = vrot.slane %v1338_v11, 2  ;;  %v1686_v3 = vunpack.c.l.b16 %v1383_v51  ;;  %v1850_v7 = vunpack.c.l.b16 %v1759_v19  ;;  %v5092_v51 = vld [vmem:[#allocation2] sm:$0xf0]  ;;  %v4762_v19 = vld [vmem:[#allocation2 + $0x20] sm:$0xe] }
  0xeb   : > { %v1268_v22 = vpack.c.b16 %v1266_v15, %v1266_v15  ;;  %v1298_v27 = vld.sshfl [vmem:[#allocation1 + $0x20] sm:$0xff pattern:$0x75643120]  ;;  %v1110_v15 = vunpack.c.l.b16 %v5646_v25 }
  0xec   : > { %4723 = vmatmul.msk.bf16.gmra.mxu1 %vm1432_vm10, %v1816_v26  ;;  %v2410_v26 = vshrl.u32 %v4831_v50, 16  ;;  %v1339_v34 = vunpack.c.l.b16 %v1298_v27  ;;  %1314 = vst [vmem:[#allocation1 + $0x20] ss:$2 sm:$0xff] %v1280_v23  ;;  %v1351_v38 = vsel %vm527_vm1, %v1350_v24, %v1349_v16  ;;  %v4781_v50 = vld [vmem:[%s6554_s2 + $0x44] sm:$0xf]  ;;  %v1688_v12 = vpack.c.b16 %v1686_v3, %v1686_v3 }
  0xed   : > { %1273 = vst.msk [vmem:[#allocation2 + $0x34] sm:$0xf] %vm565_vm8, %v1268_v22  ;;  %v1303_v31 = vld.sshfl [vmem:[#allocation1 + $0x30] sm:$0xff pattern:$0x75643120]  ;;  %v2265_v55 = vsel %vm1439_vm0, %v4781_v50, 0  ;;  %v1111_v16 = vunpack.c.l.b16 %v5652_v33  ;;  %v1112_v33 = vunpack.c.l.b16 %v5656_v36 }
  0xee   : > { %v2412_v29 = vrot.slane %v2410_v26, 2  ;;  %v1340_v37 = vunpack.c.l.b16 %v1303_v31  ;;  %v1307_v41 = vld.sshfl [vmem:[#allocation1] sm:$0xff pattern:$0x75643120]  ;;  %1318 = vst [vmem:[#allocation1 + $0x30] ss:$2 sm:$0xff] %v1281_v5  ;;  %2274 = vmatpush.bf16.msra.mxu1 %v2265_v55 }
  0xef   : > { %v5752_v1 = vpop.f32.mrf.mxu0  ;;  %v1352_v2 = vrot.slane %v1339_v34, 1  ;;  %v1311_v17 = vld.sshfl [vmem:[#allocation1 + $0x10] sm:$0xff pattern:$0x75643120]  ;;  %v1341_v4 = vunpack.c.l.b16 %v1307_v41  ;;  %v1128_v22 = vrot.slane %v1110_v15, 2  ;;  %v1129_v23 = vrot.slane %v1111_v16, 1 }
  0xf0   : > { %v1342_v45 = vunpack.c.l.b16 %v1311_v17  ;;  %v2416_v52 = vor.u32 %v2415_v35, %v2412_v29  ;;  %v1132_v27 = vrot.slane %v1113_v20, 7  ;;  %v4726_v31 = vld [vmem:[#allocation2 + $0x20] sm:$0xe]  ;;  %v5066_v34 = vld [vmem:[#allocation2 + $0x20] sm:$0xf0] }
  0xf1   : > { %v1353_v46 = vsel %vm530_vm2, %v1352_v2, %v1351_v38  ;;  %v1355_v10 = vrot.slane %v1341_v4, 7  ;;  %v1130_v5 = vsel %vm527_vm1, %v1129_v23, %v1128_v22  ;;  %v4727_v38 = vor.u32 %v5066_v34, %v4726_v31  ;;  %v5078_v4 = vld [vmem:[#allocation2 + $0x10] sm:$0xf0]  ;;  %v4766_v20 = vld [vmem:[#allocation2 + $0x28] sm:$0xf] }
  0xf2   : > { %4793 = vmatmul.msk.bf16.gmra.mxu0 %vm1432_vm10, %v5705_v43  ;;  %v2026_v43 = vor.u32 %v2025_v8, %v2022_v60  ;;  %v1354_v28 = vsel %vm533_vm3, %v1340_v37, %v1353_v46  ;;  %v1357_v32 = vrot.slane %v1342_v45, 6  ;;  %v2425_v6 = vsel %vm2408_vm15, %v2416_v52, %v5780_v53  ;;  %v5079_v45 = vld [vmem:[#allocation2 + $0x18] sm:$0x10]  ;;  %v4878_v52 = vld [vmem:[#allocation2 + $0x8] sm:$0xf] }
  0xf3   : > { %v1356_v54 = vsel %vm536_vm4, %v1355_v10, %v1354_v28  ;;  %v1315_v56 = vld.sshfl [vmem:[#allocation1 + $0x20] sm:$0xff pattern:$0x75643120]  ;;  %v1131_v40 = vsel %vm530_vm2, %v1112_v33, %v1130_v5  ;;  %v1853_v47 = vrot.slane %v4727_v38, 1  ;;  %v4801_v21 = vor.u32 %v5079_v45, %v4800_v44  ;;  %v4840_v5 = vld [vmem:[#allocation2 + $0x10] sm:$0xc] }
  0xf4   : > { %v2035_v49 = vsel %vm1964_vm13, %v2026_v43, %v5762_v39  ;;  %v1343_v60 = vunpack.c.l.b16 %v1315_v56  ;;  %v1358_v62 = vsel %vm539_vm5, %v1357_v32, %v1356_v54  ;;  %v1133_v35 = vsel %vm533_vm3, %v1132_v27, %v1131_v40  ;;  %v4874_v32 = vld [vmem:[#allocation2] sm:$0x8]  ;;  %v5093_v54 = vld [vmem:[#allocation2 + $0x8] sm:$0x30]  ;;  %v5087_v31 = vld [vmem:[#allocation2 + $0x18] sm:$0x30] }
  0xf5   : > { %v1319_v57 = vld.sshfl [vmem:[#allocation1 + $0x30] sm:$0xff pattern:$0x75643120]  ;;  %v1135_v61 = vpack.c.b16 %v1133_v35, %v1133_v35  ;;  %v5809_v43 = vpack.c.b16 %v1850_v7, %v1850_v7  ;;  %v2256_v56 = vrot.slane %v4801_v21, 2  ;;  %vm2658_vm4 = vcmask 1044480  }
  0xf6   : > { %4700 = vmatmul.msk.bf16.vlgmr.msrb.gmra.mxu2 %vm1432_vm10, %v5058_v18  ;;  %v1344_v58 = vunpack.c.l.b16 %v1319_v57  ;;  %v1359_v13 = vrot.slane %v1343_v60, 5  ;;  %v5063_v18 = vld [vmem:[#allocation2 + $0x30] sm:$0xff]  ;;  %v4711_v57 = vld [vmem:[%s6554_s2 + $0x2c] sm:$0xf] }
  0xf7   : > { %v1459_v42 = vpop.f32.mrf.mxu0  ;;  %v1572_v29 = vshll.u32 %v5063_v18, 16  ;;  %v1570_v2 = vshrl.u32 %v5063_v18, 16  ;;  %1139 = vst.msk [vmem:[#allocation2 + $0x2c] sm:$0x3] %vm668_vm11, %v1135_v61  ;;  %v1854_v48 = vrot.slane %v5809_v43, 1 }
  0xf8   : > { %v1361_v26 = vrot.slane %v1344_v58, 4  ;;  %v1360_v9 = vsel %vm542_vm6, %v1359_v13, %v1358_v62  ;;  %v4796_v42 = vld [vmem:[#allocation2 + $0x10] sm:$0xc]  ;;  %v4875_v58 = vor.u32 %v5092_v51, %v4874_v32  ;;  %v4879_v62 = vor.u32 %v5093_v54, %v4878_v52  ;;  %v1282_v51 = vld [vmem:[%s5420_s22 + $0x10] sm:$0x2] }
  0xf9   : > { %v1574_v36 = vrot.slane %v1572_v29, 1  ;;  %v1855_v50 = vsel %vm1776_vm12, %v1853_v47, %v1854_v48  ;;  %v4844_v29 = vld [vmem:[#allocation2 + $0x18] sm:$0xf]  ;;  %v1283_v52 = vld [vmem:[%s5420_s22 + $0x12] sm:$0x2] }
  0xfa   : > { %v1362_v11 = vsel %vm545_vm7, %v1361_v26, %v1360_v9  ;;  %v2659_v26 = vrot.slane %v4875_v58, 3  ;;  %v2660_v9 = vrot.slane %v4879_v62, 3  ;;  %v4845_v43 = vor.u32 %v5087_v31, %v4844_v29  ;;  %1322 = vst [vmem:[#allocation1] ss:$2 sm:$0xff] %v1282_v51  ;;  %v1285_v62 = vld [vmem:[%s5420_s22 + $0x16] sm:$0x2] }
  0xfb   : > { %v1369_v14 = vpack.c.b16 %v1362_v11, %v1362_v11  ;;  %v1575_v28 = vor.u32 %v1574_v36, %v1570_v2  ;;  %v4825_v11 = vld [vmem:[%s6554_s2 + $0x54] sm:$0xf]  ;;  %1326 = vst [vmem:[#allocation1 + $0x10] ss:$2 sm:$0xff] %v1283_v52  ;;  %v4888_v51 = vld [vmem:[#allocation2 + $0x18] sm:$0xf] }
  0xfc   : > { %4758 = vmatmul.msk.bf16.vlgmr.msrb.gmra.mxu1 %vm1432_vm10, %v2035_v49  ;;  %v2661_v16 = vsel %vm2658_vm4, %v2659_v26, %v2660_v9  ;;  %v2475_v44 = vshll.u32 %v4845_v43, 16  ;;  %1334 = vst [vmem:[#allocation1 + $0x30] ss:$2 sm:$0xff] %v1285_v62  ;;  %v5095_v52 = vld [vmem:[#allocation2 + $0x18] sm:$0x30]  ;;  %vm3031_vm7 = vcmask 59392  }
  0xfd   : > { %1373 = vst.msk [vmem:[#allocation2 + $0x38] sm:$0xf] %vm565_vm8, %v1369_v14  ;;  %v4783_v62 = vld [vmem:[%s6554_s2 + $0x4c] sm:$0xf] }
  0xfe   : > { %v5073_v22 = vld [vmem:[#allocation2 + $0x28] sm:$0x10] }
  0xff   : > { %v1637_v0 = vpop.f32.mrf.mxu0  ;;  %v4767_v7 = vor.u32 %v5073_v22, %v4766_v20 }
 0x100   : > { %v5789_v8 = vadd.f32 %v1637_v0, %v5711_v63  ;;  %v4868_v63 = vld [vmem:[%s6554_s2 + $0x60] sm:$0xf]  ;;  %v1901_v0 = vsel %vm1439_vm0, %v4711_v57, 0  ;;  %v4782_v57 = vld [vmem:[%s6554_s2 + $0x48] sm:$0xf] }
 0x101   : > { %v2669_v25 = vsel %vm1439_vm0, %v4868_v63, 0  ;;  %v5072_v63 = vld [vmem:[#allocation2 + $0x20] sm:$0xf0]  ;;  %v2082_v35 = vshrl.u32 %v4767_v7, 16  ;;  %v2085_v61 = vshll.u32 %v4767_v7, 16  ;;  %v2305_v58 = vsel %vm1439_vm0, %v4782_v57, 0 }
 0x102   : > { %4836 = vmatmul.msk.bf16.vlgmr.msrb.gmra.mxu0 %vm1432_vm10, %v2425_v6  ;;  %v4763_v33 = vor.u32 %v5072_v63, %v4762_v19 }
 0x103   : > { %2678 = vmatpush.bf16.msra.mxu0 %v2669_v25  ;;  %v2084_v36 = vrot.slane %v2082_v35, 1  ;;  %v1335_v7 = vld.sshfl [vmem:[#allocation1 + $0x30] sm:$0xff pattern:$0x75643120] }
 0x104   : > { %v1402_v37 = vld [vmem:[#allocation2 + $0x38] sm:$0xf]  ;;  %v2074_v34 = vshrl.u32 %v4763_v33, 16  ;;  %v2077_v40 = vshll.u32 %v4763_v33, 16  ;;  %v1348_v31 = vunpack.c.l.b16 %v1335_v7  ;;  %v5089_v7 = vld [vmem:[#allocation2 + $0x28] sm:$0x30] }
 0x105   : > { %v1566_v41 = vunpack.c.l.b16 %v1402_v37 }
 0x106   : > { %4701 = vmatmul.msk.bf16.gmra.mxu2 %vm1432_vm10, %v1688_v12  ;;  %v2487_v12 = vsel %vm1439_vm0, %v4825_v11, 0  ;;  %v2079_v2 = vrot.slane %v2077_v40, 2  ;;  %v1323_v11 = vld.sshfl [vmem:[#allocation1] sm:$0xff pattern:$0x75643120] }
 0x107   : > { %v5802_v24 = vpop.f32.mrf.mxu0  ;;  %v1568_v59 = vpack.c.b16 %v1566_v41, %v1566_v41  ;;  %2496 = vmatpush.bf16.msrb.mxu1 %v2487_v12  ;;  %v2076_v41 = vrot.slane %v2074_v34, 1  ;;  %v1762_v40 = vld [vmem:[#allocation2 + $0x38] sm:$0xf] }
 0x109   : > { %v1577_v10 = vshll.u32 %v1568_v59, 16  ;;  %v1581_v14 = vshrl.u32 %v1568_v59, 16 }
 0x10b   : > { %v1579_v49 = vrot.slane %v1577_v10, 1  ;;  %v5059_v10 = vld [vmem:[#allocation2 + $0x30] sm:$0xff] }
 0x10c   : > { %4759 = vmatmul.msk.bf16.gmra.mxu1 %vm1432_vm10, %v5762_v39  ;;  %v4797_v39 = vor.u32 %v5078_v4, %v4796_v42  ;;  %v2087_v42 = vrot.slane %v2085_v61, 2  ;;  %v2472_v4 = vshrl.u32 %v4845_v43, 16 }
 0x10d   : > { %v1583_v23 = vor.u32 %v1581_v14, %v1579_v49  ;;  %v1327_v14 = vld.sshfl [vmem:[#allocation1 + $0x10] sm:$0xff pattern:$0x75643120] }
 0x10e   : > { %v2255_v55 = vrot.slane %v4797_v39, 2  ;;  %v2474_v32 = vrot.slane %v2472_v4, 2 }
 0x10f   : > { %v1642_v17 = vpop.f32.mrf.mxu0 }
 0x110   : > { %v5815_v46 = vadd.f32 %v1642_v17, %v5752_v1  ;;  %v1580_v1 = vsel %vm1416_vm9, %v1575_v28, %v1579_v49  ;;  %v2257_v13 = vsel %vm2214_vm14, %v2255_v55, %v2256_v56  ;;  %v2088_v28 = vor.u32 %v2087_v42, %v2084_v36  ;;  %v4806_v36 = vld [vmem:[#allocation2 + $0x20] sm:$0xc]  ;;  %v5080_v42 = vld [vmem:[#allocation2 + $0x20] sm:$0xf0] }
 0x111   : > { %4682 = vmatmul.msk.bf16.vlgmr.msra.gmra.mxu3 %vm1432_vm10, %v1580_v1  ;;  %v1284_v1 = vld [vmem:[%s5420_s22 + $0x14] sm:$0x2]  ;;  %s6210_s22 = scalar_lea.vmem %s6558_s6, %s5054_s9 }
 0x112   : > { %4837 = vmatmul.msk.bf16.gmra.mxu0 %vm1432_vm10, %v5780_v53  ;;  %v4738_v53 = vld [vmem:[%s6554_s2 + $0x38] sm:$0xf]  ;;  %1910 = vmatpush.bf16.msra.mxu3 %v1901_v0  ;;  %1330 = vst [vmem:[#allocation1 + $0x20] ss:$2 sm:$0xff] %v1284_v1 }
 0x113   : > { %v2097_v3 = vsel %vm1439_vm0, %v4738_v53, 0 }
 0x114   : > { %2106 = vmatpush.bf16.msrb.mxu2 %v2097_v3  ;;  %v1386_v3 = vld [vmem:[#allocation2 + $0x38] sm:$0x7] }
 0x115   : > { %v1721_v19 = vunpack.c.l.b16 %v1386_v3  ;;  %v2345_v3 = vsel %vm1439_vm0, %v4783_v62, 0  ;;  %v4870_v62 = vld [vmem:[%s6554_s2 + $0x68] sm:$0xf] }
 0x116   : > { %4728 = vmatmul.msk.bf16.vlgmr.msra.gmra.mxu2 %vm1432_vm10, %v1855_v50  ;;  %v2477_v50 = vrot.slane %v2475_v44, 3 }
 0x117   : > { %v1644_v60 = vpop.f32.mrf.mxu0 }
 0x118   : > { %v2478_v55 = vor.u32 %v2477_v50, %v2474_v32  ;;  %2314 = vmatpush.bf16.msra.mxu2 %v2305_v58  ;;  %v5094_v50 = vld [vmem:[#allocation2 + $0x10] sm:$0xf0] }
 0x119   : > { %v5832_v6 = vpop.f32.mrf.mxu1  ;;  %v1331_v22 = vld.sshfl [vmem:[#allocation1 + $0x20] sm:$0xff pattern:$0x75643120] }
 0x11a   : > { %v1347_v33 = vunpack.c.l.b16 %v1331_v22  ;;  %v4850_v22 = vld [vmem:[#allocation2 + $0x20] sm:$0xc] }
 0x11c   : > { %4802 = vmatmul.msk.bf16.vlgmr.msra.gmra.mxu1 %vm1432_vm10, %v2257_v13  ;;  %v1366_v34 = vrot.slane %v1347_v33, 1  ;;  %v4854_v33 = vld [vmem:[#allocation2 + $0x28] sm:$0xf] }
 0x11f   : > { %v1798_v15 = vpop.f32.mrf.mxu0 }
 0x120   : > { %v5842_v18 = vadd.f32 %v1798_v15, %v5789_v8  ;;  %v5086_v8 = vld [vmem:[#allocation2 + $0x10] sm:$0xf0]  ;;  %v1345_v15 = vunpack.c.l.b16 %v1323_v11 }
 0x121   : > { %v5844_v25 = vpop.f32.mrf.mxu1  ;;  %4683 = vmatmul.msk.bf16.gmra.mxu3 %vm1432_vm10, %v1583_v23  ;;  %v4841_v38 = vor.u32 %v5086_v8, %v4840_v5  ;;  %v1723_v8 = vpack.c.b16 %v1721_v19, %v1721_v19  ;;  %v5074_v19 = vld [vmem:[#allocation2 + $0x30] sm:$0xf0] }
 0x122   : > { %4880 = vmatmul.msk.bf16.vlgmr.msra.gmra.mxu0 %vm1432_vm10, %v2661_v16  ;;  %v1346_v16 = vunpack.c.l.b16 %v1327_v14  ;;  %v1363_v63 = vrot.slane %v1345_v15, 3 }
 0x123   : > { %v2464_v59 = vshrl.u32 %v4841_v38, 16  ;;  %v2467_v17 = vshll.u32 %v4841_v38, 16  ;;  %v1888_v38 = vunpack.c.l.b16 %v1762_v40 }
 0x124   : > { %v1364_v23 = vrot.slane %v1346_v16, 2  ;;  %v4772_v16 = vld [vmem:[#allocation2 + $0x30] sm:$0xe] }
 0x125   : > { %v2466_v21 = vrot.slane %v2464_v59, 2  ;;  %v2469_v49 = vrot.slane %v2467_v17, 3  ;;  %v4810_v59 = vld [vmem:[#allocation2 + $0x28] sm:$0xf]  ;;  %v5081_v17 = vld [vmem:[#allocation2 + $0x28] sm:$0x10] }
 0x126   : > { %4729 = vmatmul.msk.bf16.gmra.mxu2 %vm1432_vm10, %v1854_v48  ;;  %v2080_v48 = vor.u32 %v2079_v2, %v2076_v41  ;;  %v1365_v5 = vsel %vm527_vm1, %v1364_v23, %v1363_v63  ;;  %v4732_v41 = vld [vmem:[#allocation2 + $0x30] sm:$0xe]  ;;  %v5067_v2 = vld [vmem:[#allocation2 + $0x30] sm:$0xf0]  ;;  %v4776_v63 = vld [vmem:[#allocation2 + $0x38] sm:$0xf] }
 0x127   : > { %v5849_v27 = vpop.f32.mrf.mxu0  ;;  %v1367_v35 = vsel %vm530_vm2, %v1366_v34, %v1365_v5  ;;  %v4733_v44 = vor.u32 %v5067_v2, %v4732_v41  ;;  %v5088_v23 = vld [vmem:[#allocation2 + $0x20] sm:$0xf0] }
 0x128   : > { %v2089_v54 = vsel %vm1964_vm13, %v2080_v48, %v2088_v28  ;;  %v1368_v61 = vsel %vm533_vm3, %v1348_v31, %v1367_v35  ;;  %v4773_v31 = vor.u32 %v5074_v19, %v4772_v16  ;;  %v4851_v40 = vor.u32 %v5088_v23, %v4850_v22  ;;  %v5082_v22 = vld [vmem:[#allocation2 + $0x30] sm:$0xf0]  ;;  %v4820_v23 = vld [vmem:[#allocation2 + $0x38] sm:$0xf] }
 0x129   : > { %v5851_v37 = vpop.f32.mrf.mxu1  ;;  %v1370_v43 = vpack.c.b16 %v1368_v61, %v1368_v61 }
 0x12a   : > { %v2128_v35 = vshrl.u32 %v4773_v31, 16  ;;  %v2518_v2 = vshrl.u32 %v4851_v40, 16 }
 0x12b   : > { %1374 = vst.msk [vmem:[#allocation2 + $0x3c] sm:$0x3] %vm668_vm11, %v1370_v43 }
 0x12c   : > { %4803 = vmatmul.msk.bf16.gmra.mxu1 %vm1432_vm10, %v2256_v56  ;;  %v4739_v56 = vld [vmem:[%s6554_s2 + $0x3c] sm:$0xf] }
 0x12d   : > { %v2151_v60 = vsel %vm1439_vm0, %v4739_v56, 0 }
 0x12f   : > { %v1803_v45 = vpop.f32.mrf.mxu0 }
 0x130   : > { %v5855_v47 = vadd.f32 %v1803_v45, %v5815_v46  ;;  %v2470_v46 = vor.u32 %v2469_v49, %v2466_v21  ;;  %v1890_v45 = vpack.c.b16 %v1888_v38, %v1888_v38  ;;  %v4884_v49 = vld [vmem:[#allocation2 + $0x10] sm:$0x8]  ;;  %v2131_v38 = vshll.u32 %v4773_v31, 16  ;;  %v5096_v31 = vld [vmem:[#allocation2 + $0x20] sm:$0xf0] }
 0x131   : > { %v1509_v39 = vpop.f32.mrf.mxu1  ;;  %4706 = vmatmul.msk.bf16.vlgmr.msrb.gmra.mxu3 %vm1432_vm10, %v5059_v10  ;;  %v4807_v10 = vor.u32 %v5080_v42, %v4806_v36  ;;  %v4885_v57 = vor.u32 %v5094_v50, %v4884_v49  ;;  %v2521_v36 = vshll.u32 %v4851_v40, 16 }
 0x132   : > { %4881 = vmatmul.msk.bf16.gmra.mxu0 %vm1432_vm10, %v2660_v9  ;;  %2160 = vmatpush.bf16.msrb.mxu3 %v2151_v60  ;;  %v2479_v13 = vsel %vm2408_vm15, %v2470_v46, %v2478_v55  ;;  %v4869_v9 = vld [vmem:[%s6554_s2 + $0x64] sm:$0xf]  ;;  %v4811_v39 = vor.u32 %v5081_v17, %v4810_v59  ;;  %v1892_v21 = vrot.slane %v1890_v45, 1 }
 0x133   : > { %v2709_v12 = vsel %vm1439_vm0, %v4869_v9, 0  ;;  %v2295_v1 = vrot.slane %v4807_v10, 2  ;;  %v2133_v10 = vrot.slane %v2131_v38, 2  ;;  %v2523_v49 = vrot.slane %v2521_v36, 3 }
 0x134   : > { %2718 = vmatpush.bf16.msra.mxu1 %v2709_v12  ;;  %v2296_v46 = vrot.slane %v4811_v39, 2 }
 0x136   : > { %4768 = vmatmul.msk.bf16.vlgmr.msrb.gmra.mxu2 %vm1432_vm10, %v2089_v54  ;;  %v2297_v60 = vsel %vm2214_vm14, %v2295_v1, %v2296_v46 }
 0x137   : > { %v1805_v53 = vpop.f32.mrf.mxu0 }
 0x139   : > { %v1672_v0 = vpop.f32.mrf.mxu1 }
 0x13a   : > { %v5875_v26 = vadd.f32 %v1672_v0, %v5832_v6 }
 0x13c   : > { %4846 = vmatmul.msk.bf16.vlgmr.msrb.gmra.mxu1 %vm1432_vm10, %v2479_v13 }
 0x13f   : > { %v2000_v20 = vpop.f32.mrf.mxu0 }
 0x140   : > { %v5883_v6 = vadd.f32 %v2000_v20, %v5842_v18  ;;  %v5075_v20 = vld [vmem:[#allocation2 + $0x38] sm:$0x10] }
 0x141   : > { %v5886_v29 = vpop.f32.mrf.mxu1  ;;  %4707 = vmatmul.msk.bf16.gmra.mxu3 %vm1432_vm10, %v1723_v8  ;;  %v4777_v34 = vor.u32 %v5075_v20, %v4776_v63  ;;  %v4816_v20 = vld [vmem:[#allocation2 + $0x30] sm:$0xc] }
 0x142   : > { %v4817_v38 = vor.u32 %v5082_v22, %v4816_v20 }
 0x143   : > { %v2136_v43 = vshrl.u32 %v4777_v34, 16  ;;  %v2139_v41 = vshll.u32 %v4777_v34, 16 }
 0x144   : > { %v2335_v36 = vrot.slane %v4817_v38, 2 }
 0x145   : > { %v2138_v39 = vrot.slane %v2136_v43, 1 }
 0x146   : > { %4769 = vmatmul.msk.bf16.gmra.mxu2 %vm1432_vm10, %v2088_v28  ;;  %v1891_v28 = vrot.slane %v4733_v44, 1  ;;  %v2130_v44 = vrot.slane %v2128_v35, 1 }
 0x147   : > { %v5892_v18 = vpop.f32.mrf.mxu0 }
 0x148   : > { %v1893_v53 = vsel %vm1776_vm12, %v1891_v28, %v1892_v21  ;;  %v2141_v28 = vrot.slane %v2139_v41, 2 }
 0x149   : > { %v1677_v4 = vpop.f32.mrf.mxu1 }
 0x14a   : > { %v5896_v48 = vadd.f32 %v1677_v4, %v5851_v37  ;;  %v4889_v37 = vor.u32 %v5095_v52, %v4888_v51  ;;  %v2134_v51 = vor.u32 %v2133_v10, %v2130_v44  ;;  %v2142_v52 = vor.u32 %v2141_v28, %v2138_v39 }
 0x14c   : > { %4847 = vmatmul.msk.bf16.gmra.mxu1 %vm1432_vm10, %v2478_v55  ;;  %v2699_v55 = vrot.slane %v4885_v57, 3  ;;  %v2700_v58 = vrot.slane %v4889_v37, 3 }
 0x14e   : > { %v2701_v12 = vsel %vm2658_vm4, %v2699_v55, %v2700_v58 }
 0x14f   : > { %v2005_v32 = vpop.f32.mrf.mxu0 }
 0x150   : > { %v5900_v54 = vadd.f32 %v2005_v32, %v5855_v47  ;;  %v4826_v47 = vld [vmem:[%s6554_s2 + $0x58] sm:$0xf] }
 0x151   : > { %v1679_v56 = vpop.f32.mrf.mxu1  ;;  %4734 = vmatmul.msk.bf16.vlgmr.msra.gmra.mxu3 %vm1432_vm10, %v1893_v53  ;;  %v2541_v13 = vsel %vm1439_vm0, %v4826_v47, 0  ;;  %v2143_v53 = vsel %vm1964_vm13, %v2134_v51, %v2142_v52 }
 0x152   : > { %2354 = vmatpush.bf16.msra.mxu3 %v2345_v3  ;;  %2550 = vmatpush.bf16.msrb.mxu2 %v2541_v13  ;;  %v2749_v3 = vsel %vm1439_vm0, %v4870_v62, 0 }
 0x156   : > { %4812 = vmatmul.msk.bf16.vlgmr.msra.gmra.mxu2 %vm1432_vm10, %v2297_v60  ;;  %v4827_v60 = vld [vmem:[%s6554_s2 + $0x5c] sm:$0xf] }
 0x157   : > { %v2007_v0 = vpop.f32.mrf.mxu0  ;;  %2758 = vmatpush.bf16.msra.mxu2 %v2749_v3 }
 0x159   : > { %v1552_v9 = vpop.f32.mrf.mxu2  ;;  %v1836_v11 = vpop.f32.mrf.mxu1 }
 0x15a   : > { %v1924_v14 = vadd.f32 %v1836_v11, %v5875_v26  ;;  %v4855_v26 = vor.u32 %v5089_v7, %v4854_v33  ;;  %v5083_v33 = vld [vmem:[#allocation2 + $0x38] sm:$0x10]  ;;  %v4894_v7 = vld [vmem:[#allocation2 + $0x20] sm:$0x8] }
 0x15b   : > { %v4821_v43 = vor.u32 %v5083_v33, %v4820_v23  ;;  %v4895_v41 = vor.u32 %v5096_v31, %v4894_v7  ;;  %v4871_v31 = vld [vmem:[%s6554_s2 + $0x6c] sm:$0xf] }
 0x15c   : > { %4890 = vmatmul.msk.bf16.vlgmr.msra.gmra.mxu1 %vm1432_vm10, %v2701_v12  ;;  %v2526_v42 = vshrl.u32 %v4855_v26, 16  ;;  %v2529_v59 = vshll.u32 %v4855_v26, 16  ;;  %v2789_v38 = vsel %vm1439_vm0, %v4871_v31, 0 }
 0x15e   : > { %v2528_v32 = vrot.slane %v2526_v42, 2  ;;  %v2531_v50 = vrot.slane %v2529_v59, 3  ;;  %v2336_v42 = vrot.slane %v4821_v43, 2 }
 0x15f   : > { %v5917_v15 = vpop.f32.mrf.mxu0 }
 0x160   : > { %v2532_v56 = vor.u32 %v2531_v50, %v2528_v32  ;;  %v2337_v28 = vsel %vm2214_vm14, %v2335_v36, %v2336_v42  ;;  %v2365_v50 = vadd.f32 %v5917_v15, %v5883_v6 }
 0x161   : > { %v5919_v5 = vpop.f32.mrf.mxu2  ;;  %v5921_v8 = vpop.f32.mrf.mxu1  ;;  %4735 = vmatmul.msk.bf16.gmra.mxu3 %vm1432_vm10, %v1892_v21  ;;  %v2520_v21 = vrot.slane %v2518_v2, 2 }
 0x166   : > { %4813 = vmatmul.msk.bf16.gmra.mxu2 %vm1432_vm10, %v2296_v46  ;;  %v2524_v46 = vor.u32 %v2523_v49, %v2520_v21 }
 0x167   : > { %v5925_v61 = vpop.f32.mrf.mxu0 }
 0x169   : > { %v1557_v17 = vpop.f32.mrf.mxu2  ;;  %v1841_v4 = vpop.f32.mrf.mxu1 }
 0x16a   : > { %v1926_v45 = vadd.f32 %v1841_v4, %v5896_v48  ;;  %v2533_v48 = vsel %vm2408_vm15, %v2524_v46, %v2532_v56  ;;  %v2739_v4 = vrot.slane %v4895_v41, 3 }
 0x16c   : > { %4891 = vmatmul.msk.bf16.gmra.mxu1 %vm1432_vm10, %v2700_v58  ;;  %v2595_v58 = vsel %vm1439_vm0, %v4827_v60, 0  ;;  %v5091_v60 = vld [vmem:[#allocation2 + $0x38] sm:$0x30] }
 0x16f   : > { %v5929_v1 = vpop.f32.mrf.mxu0 }
 0x171   : > { %v1559_v57 = vpop.f32.mrf.mxu2  ;;  %v1843_v37 = vpop.f32.mrf.mxu1  ;;  %4778 = vmatmul.msk.bf16.vlgmr.msrb.gmra.mxu3 %vm1432_vm10, %v2143_v53  ;;  %v5090_v53 = vld [vmem:[#allocation2 + $0x30] sm:$0xf0] }
 0x172   : > { %2604 = vmatpush.bf16.msrb.mxu3 %v2595_v58  ;;  %v4860_v37 = vld [vmem:[#allocation2 + $0x30] sm:$0xc] }
 0x173   : > { %v4861_v62 = vor.u32 %v5090_v53, %v4860_v37 }
 0x175   : > { %v2575_v22 = vshll.u32 %v4861_v62, 16 }
 0x176   : > { %4856 = vmatmul.msk.bf16.vlgmr.msrb.gmra.mxu2 %vm1432_vm10, %v2533_v48 }
 0x177   : > { %v2243_v55 = vpop.f32.mrf.mxu0  ;;  %v2577_v41 = vrot.slane %v2575_v22, 3 }
 0x179   : > { %v1707_v47 = vpop.f32.mrf.mxu2  ;;  %v2054_v0 = vpop.f32.mrf.mxu1 }
 0x17a   : > { %v1708_v13 = vadd.f32 %v1707_v47, %v1552_v9  ;;  %v5943_v11 = vadd.f32 %v2054_v0, %v1924_v14  ;;  %v4898_v9 = vld [vmem:[#allocation2 + $0x28] sm:$0xf]  ;;  %v5097_v14 = vld [vmem:[#allocation2 + $0x28] sm:$0x30] }
 0x17b   : > { %v4899_v2 = vor.u32 %v5097_v14, %v4898_v9 }
 0x17d   : > { %v2740_v44 = vrot.slane %v4899_v2, 3 }
 0x17f   : > { %v2444_v12 = vpop.f32.mrf.mxu0  ;;  %v2741_v21 = vsel %vm2658_vm4, %v2739_v4, %v2740_v44 }
 0x181   : > { %v5945_v16 = vpop.f32.mrf.mxu2  ;;  %v5947_v19 = vpop.f32.mrf.mxu1  ;;  %4779 = vmatmul.msk.bf16.gmra.mxu3 %vm1432_vm10, %v2142_v52 }
 0x186   : > { %4857 = vmatmul.msk.bf16.gmra.mxu2 %vm1432_vm10, %v2532_v56 }
 0x187   : > { %v2446_v63 = vpop.f32.mrf.mxu0 }
 0x189   : > { %v1712_v34 = vpop.f32.mrf.mxu2  ;;  %v2059_v40 = vpop.f32.mrf.mxu1 }
 0x18a   : > { %v1713_v26 = vadd.f32 %v1712_v34, %v1557_v17  ;;  %v5951_v35 = vadd.f32 %v2059_v40, %v1926_v45  ;;  %v1640_v17 = vadd.f32 %v5802_v24, %v5731_v30  ;;  %v2615_v30 = vadd.f32 %v2444_v12, %v2365_v50  ;;  %v5169_v24 = vld [vmem:[%s6555_s3] ss:$0 sm:$0xff] }
 0x18b   : > { %v2572_v12 = vshrl.u32 %v4861_v62, 16 }
 0x18c   : > { %v1922_v32 = vadd.f32 %v5849_v27, %v1640_v17  ;;  %v4864_v27 = vld [vmem:[#allocation2 + $0x38] sm:$0xf] }
 0x18d   : > { %v4865_v47 = vor.u32 %v5091_v60, %v4864_v27  ;;  %v2574_v40 = vrot.slane %v2572_v12, 2 }
 0x18e   : > { %v2172_v56 = vadd.f32 %v5892_v18, %v1922_v32 }
 0x18f   : > { %v2449_v59 = vpop.f32.mrf.mxu0  ;;  %v2583_v23 = vshll.u32 %v4865_v47, 16 }
 0x190   : > { %v2366_v6 = vadd.f32 %v5925_v61, %v2172_v56  ;;  %v2580_v61 = vshrl.u32 %v4865_v47, 16 }
 0x191   : > { %v1714_v10 = vpop.f32.mrf.mxu2  ;;  %v2061_v39 = vpop.f32.mrf.mxu1  ;;  %4822 = vmatmul.msk.bf16.vlgmr.msra.gmra.mxu3 %vm1432_vm10, %v2337_v28  ;;  %v2585_v36 = vrot.slane %v2583_v23, 3 }
 0x192   : > { %v2616_v3 = vadd.f32 %v2446_v63, %v2366_v6  ;;  %v2367_v63 = vadd.f32 %v5929_v1, %v5900_v54  ;;  %v2582_v2 = vrot.slane %v2580_v61, 2  ;;  %2798 = vmatpush.bf16.msra.mxu3 %v2789_v38  ;;  %v2578_v1 = vor.u32 %v2577_v41, %v2574_v40 }
 0x194   : > { %v5959_v49 = vpop.f32.mrf.mxu3  ;;  %v2586_v39 = vor.u32 %v2585_v36, %v2582_v2 }
 0x196   : > { %4900 = vmatmul.msk.bf16.vlgmr.msra.gmra.mxu2 %vm1432_vm10, %v2741_v21  ;;  %v2981_v21 = vlaneseq }
 0x197   : > { %v2451_v45 = vpop.f32.mrf.mxu0 }
 0x199   : > { %v1874_v51 = vpop.f32.mrf.mxu2  ;;  %v5964_v52 = vpop.f32.mrf.mxu1 }
 0x19a   : > { %v5966_v46 = vadd.f32 %v1874_v51, %v1708_v13 }
 0x19c   : > { %v5972_v55 = vpop.f32.mrf.mxu3 }
 0x19f   : > { %v2680_v57 = vpop.f32.mrf.mxu0 }
 0x1a0   : > { %v2809_v48 = vadd.f32 %v2680_v57, %v2615_v30  ;;  %v2587_v30 = vsel %vm2408_vm15, %v2578_v1, %v2586_v39  ;;  %v2982_v57 = vshrl.u32 %v2981_v21, 7  ;;  %v4908_v1 = vld [vmem:[#allocation2 + $0x38] sm:$0xf] }
 0x1a1   : > { %v5975_v15 = vpop.f32.mrf.mxu2  ;;  %v5977_v58 = vpop.f32.mrf.mxu1  ;;  %4823 = vmatmul.msk.bf16.gmra.mxu3 %vm1432_vm10, %v2336_v42 }
 0x1a2   : > { %v5979_v18 = vadd.f32 %v5169_v24, %v2809_v48  ;;  %v6004_v60 = vadd.s32 4294967293, %v2982_v57  ;;  %v2984_v36 = vadd.s32 16, %v2982_v57 }
 0x1a4   : > { %v2849_v0 = vmin.f32 %v5979_v18, 20.0  ;;  %v5984_v7 = vpop.f32.mrf.mxu3  ;;  %vm2990_vm1 = vcmp.ge.s32.totalorder %v6004_v60, 0  ;;  %vm2957_vm2 = vcmp.gt.f32.partialorder %v5979_v18, 20.0 }
 0x1a6   : > { %v2861_v13 = vmul.f32 1.442695, %v2849_v0  ;;  %4901 = vmatmul.msk.bf16.gmra.mxu2 %vm1432_vm10, %v2740_v44  ;;  %v2617_v44 = vadd.f32 %v2449_v59, %v2367_v63 }
 0x1a7   : > { %v2682_v20 = vpop.f32.mrf.mxu0 }
 0x1a8   : > { %5177 = vpow2.f32 %v2861_v13  ;;  %v2810_v33 = vadd.f32 %v2682_v20, %v2616_v3 }
 0x1a9   : > { %v1879_v9 = vpop.f32.mrf.mxu2  ;;  %v5991_v14 = vpop.f32.mrf.mxu1 }
 0x1aa   : > { %v5993_v34 = vadd.f32 %v5169_v24, %v2810_v33  ;;  %v5996_v43 = vadd.f32 %v1879_v9, %v1713_v26 }
 0x1ac   : > { %v2850_v42 = vmin.f32 %v5993_v34, 20.0  ;;  %v1609_v32 = vpop.f32.mrf.mxu3  ;;  %vm2958_vm3 = vcmp.gt.f32.partialorder %v5993_v34, 20.0 }
 0x1ae   : > { %v5178_v4 = vpop.eup %5177  ;;  %v2863_v10 = vmul.f32 1.442695, %v2850_v42 }
 0x1af   : > { %v2885_v54 = vadd.f32 2.0, %v5178_v4  ;;  %v2685_v28 = vpop.f32.mrf.mxu0 }
 0x1b0   : > { %5179 = vpow2.f32 %v2863_v10  ;;  %v2811_v17 = vadd.f32 %v2685_v28, %v2617_v44  ;;  %v6031_v44 = vadd.s32 4294967293, %v2984_v36  ;;  %v4904_v10 = vld [vmem:[#allocation2 + $0x30] sm:$0x8]  ;;  %v5099_v28 = vld [vmem:[#allocation2 + $0x38] sm:$0x30] }
 0x1b1   : > { %v2897_v45 = vmul.f32 %v5178_v4, %v2885_v54  ;;  %v1881_v26 = vpop.f32.mrf.mxu2  ;;  %v2283_v50 = vpop.f32.mrf.mxu1  ;;  %4866 = vmatmul.msk.bf16.vlgmr.msrb.gmra.mxu3 %vm1432_vm10, %v2587_v30  ;;  %v5098_v54 = vld [vmem:[#allocation2 + $0x30] sm:$0xf0]  ;;  %v4909_v30 = vor.u32 %v5099_v28, %v4908_v1 }
 0x1b2   : > { %v5999_v51 = vadd.f32 %v5169_v24, %v2811_v17  ;;  %vm2995_vm5 = vcmp.lt.s32.totalorder %v6031_v44, 16 }
 0x1b3   : > { %v2921_v56 = vadd.f32 2.0, %v2897_v45  ;;  %v2909_v24 = vmul.f32 %v2897_v45, %v5979_v18 }
 0x1b4   : > { %v2851_v59 = vmin.f32 %v5999_v51, 20.0  ;;  %v1742_v62 = vpop.f32.mrf.mxu3  ;;  %vm2959_vm6 = vcmp.gt.f32.partialorder %v5999_v51, 20.0 }
 0x1b5   : > { %5181 = vrcp.f32 %v2921_v56  ;;  %v6008_v47 = vadd.f32 %v1742_v62, %v5959_v49  ;;  %v4905_v56 = vor.u32 %v5098_v54, %v4904_v10 }
 0x1b6   : > { %v5180_v37 = vpop.eup %5179  ;;  %v2865_v53 = vmul.f32 1.442695, %v2851_v59 }
 0x1b7   : > { %v2886_v48 = vadd.f32 2.0, %v5180_v37  ;;  %v2687_v27 = vpop.f32.mrf.mxu0 }
 0x1b8   : > { %5183 = vpow2.f32 %v2865_v53  ;;  %v2779_v53 = vrot.slane %v4905_v56, 3 }
 0x1b9   : > { %v2898_v6 = vmul.f32 %v5180_v37, %v2886_v48  ;;  %v2108_v0 = vpop.f32.mrf.mxu2  ;;  %v6010_v3 = vpop.f32.mrf.mxu1  ;;  %v2780_v48 = vrot.slane %v4909_v30, 3 }
 0x1ba   : > { %v6013_v20 = vadd.f32 %v2108_v0, %v5966_v46 }
 0x1bb   : > { %v5182_v13 = vpop.eup %5181  ;;  %v2922_v12 = vadd.f32 2.0, %v2898_v6  ;;  %v2910_v46 = vmul.f32 %v2898_v6, %v5993_v34 }
 0x1bc   : > { %v2945_v22 = vmul.f32 %v5182_v13, %v2909_v24  ;;  %v6020_v9 = vpop.f32.mrf.mxu3  ;;  %v2781_v24 = vsel %vm2658_vm4, %v2779_v53, %v2780_v48  ;;  %v1675_v13 = vadd.f32 %v5886_v29, %v5844_v25 }
 0x1bd   : > { %5185 = vrcp.f32 %v2922_v12 }
 0x1be   : > { %v5184_v61 = vpop.eup %5183  ;;  %v2969_v23 = vsel %vm2957_vm2, %v5979_v18, %v2945_v22  ;;  %v1925_v22 = vadd.f32 %v5921_v8, %v1675_v13 }
 0x1bf   : > { %v3005_v49 = vsel %vm2990_vm1, %v2969_v23, 0.0  ;;  %v2887_v33 = vadd.f32 2.0, %v5184_v61 }
 0x1c0   : > { %v3017_v31 = vpack.c.bf16 %v3005_v49, %v3005_v49  ;;  %v5170_v49 = vld [vmem:[%s6555_s3 + $0x1] ss:$0 sm:$0xff] }
 0x1c1   : > { %v2899_v63 = vmul.f32 %v5184_v61, %v2887_v33  ;;  %v6024_v40 = vpop.f32.mrf.mxu2  ;;  %v6026_v38 = vpop.f32.mrf.mxu1  ;;  %4867 = vmatmul.msk.bf16.gmra.mxu3 %vm1432_vm10, %v2586_v39 }
 0x1c2   : > { %3029 = vst.msk [vmem:[#allocation3] sm:$0xf] %vm565_vm8, %v3017_v31 }
 0x1c3   : > { %v5186_v41 = vpop.eup %5185  ;;  %v2923_v2 = vadd.f32 2.0, %v2899_v63  ;;  %v2911_v17 = vmul.f32 %v2899_v63, %v5999_v51 }
 0x1c4   : > { %v2946_v18 = vmul.f32 %v5186_v41, %v2910_v46  ;;  %v1747_v21 = vpop.f32.mrf.mxu3  ;;  %v3050_v46 = vld [vmem:[#allocation4] sm:$0xf] }
 0x1c5   : > { %5187 = vrcp.f32 %v2923_v2  ;;  %v6036_v45 = vadd.f32 %v1747_v21, %v5984_v7 }
 0x1c6   : > { %v2970_v42 = vsel %vm2958_vm3, %v5993_v34, %v2946_v18  ;;  %v3067_v34 = vld [vmem:[#allocation4 + $0x10] sm:$0xf] }
 0x1c7   : > { %v3018_v4 = vpack.c.bf16 %v2970_v42, %v2970_v42  ;;  %v3095_v57 = vsel %vm1439_vm0, %v3067_v34, 0 }
 0x1c8   : > { %3104 = vmatpush.bf16.msrb.mxu0 %v3095_v57 }
 0x1c9   : > { %3030 = vst.msk [vmem:[#allocation3 + $0x4] sm:$0xf] %vm565_vm8, %v3018_v4  ;;  %v2113_v32 = vpop.f32.mrf.mxu2  ;;  %v6038_v26 = vpop.f32.mrf.mxu1 }
 0x1ca   : > { %v6041_v50 = vadd.f32 %v2113_v32, %v5996_v43 }
 0x1cb   : > { %v5188_v39 = vpop.eup %5187 }
 0x1cc   : > { %v2947_v59 = vmul.f32 %v5188_v39, %v2911_v17  ;;  %v1749_v27 = vpop.f32.mrf.mxu3 }
 0x1ce   : > { %v2971_v7 = vsel %vm2959_vm6, %v5999_v51, %v2947_v59  ;;  %v2368_v51 = vadd.f32 %v5964_v52, %v5943_v11  ;;  %v3240_v52 = vsel %vm1439_vm0, %v3050_v46, 0 }
 0x1cf   : > { %v3007_v37 = vsel %vm2995_vm5, %v2971_v7, 0.0  ;;  %3249 = vmatpush.bf16.msra.mxu0 %v3240_v52 }
 0x1d0   : > { %v3019_v43 = vpack.c.bf16 %v3007_v37, %v3007_v37  ;;  %v5104_v0 = vld [vmem:[#allocation3] sm:$0xff]  ;;  %v2618_v61 = vadd.f32 %v6010_v3, %v2368_v51  ;;  %v2175_v3 = vadd.f32 %v5947_v19, %v1925_v22 }
 0x1d1   : > { %v2115_v6 = vpop.f32.mrf.mxu2  ;;  %v2505_v62 = vpop.f32.mrf.mxu1  ;;  %4910 = vmatmul.msk.bf16.vlgmr.msra.gmra.mxu3 %vm1432_vm10, %v2781_v24  ;;  %v3082_v12 = vshll.u32 %v5104_v0, 16  ;;  %v3080_v36 = vshrl.u32 %v5104_v0, 16  ;;  %v5100_v0 = vld [vmem:[#allocation3] sm:$0xff] }
 0x1d2   : > { %3032 = vst.msk [vmem:[#allocation3 + $0x8] sm:$0x7] %vm3031_vm7, %v3019_v43  ;;  %v2369_v42 = vadd.f32 %v5977_v58, %v2175_v3  ;;  %v2370_v58 = vadd.f32 %v5991_v14, %v5951_v35  ;;  %v3344_v43 = vld [vmem:[#allocation4 + $0x20] sm:$0xf] }
 0x1d3   : > { %v3084_v41 = vrot.slane %v3082_v12, 1  ;;  %v3363_v27 = vsel %vm1439_vm0, %v3344_v43, 0 }
 0x1d4   : > { %v1912_v23 = vpop.f32.mrf.mxu3  ;;  %v2619_v54 = vadd.f32 %v6026_v38, %v2369_v42  ;;  %v2620_v56 = vadd.f32 %v6038_v26, %v2370_v58 }
 0x1d5   : > { %v6062_v31 = vadd.f32 %v1912_v23, %v6008_v47  ;;  %v3085_v4 = vor.u32 %v3084_v41, %v3080_v36 }
 0x1d9   : > { %v3056_v33 = vld [vmem:[#allocation3 + $0x8] sm:$0x1]  ;;  %v6064_v25 = vpop.f32.mrf.mxu2  ;;  %v2720_v29 = vpop.f32.mrf.mxu1 }
 0x1da   : > { %v3076_v63 = vunpack.c.l.b16 %v3056_v33  ;;  %v2812_v11 = vadd.f32 %v2720_v29, %v2618_v61  ;;  %v3333_v22 = vld [vmem:[#allocation3 + $0x8] sm:$0x1] }
 0x1db   : > { %v3353_v29 = vunpack.c.l.b16 %v3333_v22 }
 0x1dc   : > { %v3078_v8 = vpack.c.b16 %v3076_v63, %v3076_v63  ;;  %v2840_v2 = vadd.f32 %v5170_v49, %v2812_v11  ;;  %v6070_v1 = vpop.f32.mrf.mxu3 }
 0x1dd   : > { %v3355_v42 = vpack.c.b16 %v3353_v29, %v3353_v29 }
 0x1de   : > { %v3087_v18 = vshll.u32 %v3078_v8, 16  ;;  %v2852_v47 = vmin.f32 %v2840_v2, 20.0  ;;  %vm2960_vm11 = vcmp.gt.f32.partialorder %v2840_v2, 20.0  ;;  %v5108_v8 = vld [vmem:[#allocation3] sm:$0xf0] }
 0x1e0   : > { %v3089_v10 = vrot.slane %v3087_v18, 1  ;;  %v2867_v28 = vmul.f32 1.442695, %v2852_v47  ;;  %v3493_v47 = vld [vmem:[#allocation4 + $0x30] sm:$0xf] }
 0x1e1   : > { %v6072_v21 = vpop.f32.mrf.mxu2  ;;  %v2722_v17 = vpop.f32.mrf.mxu1  ;;  %4911 = vmatmul.msk.bf16.gmra.mxu3 %vm1432_vm10, %v2780_v48 }
 0x1e2   : > { %v3090_v32 = vsel %vm1416_vm9, %v3085_v4, %v3089_v10  ;;  %5189 = vpow2.f32 %v2867_v28  ;;  %v2813_v19 = vadd.f32 %v2722_v17, %v2619_v54  ;;  %v4954_v10 = vld [vmem:[#allocation3] sm:$0xe]  ;;  %v3526_v54 = vsel %vm1439_vm0, %v3493_v47, 0  ;;  %v3482_v28 = vld [vmem:[#allocation3 + $0x8] sm:$0x3] }
 0x1e3   : > { %4916 = vmatmul.msk.bf16.vlgmr.msrb.gmra.mxu0 %vm1432_vm10, %v3090_v32 }
 0x1e4   : > { %v6076_v34 = vadd.f32 %v5170_v49, %v2813_v19  ;;  %v1917_v30 = vpop.f32.mrf.mxu3  ;;  %3372 = vmatpush.bf16.msrb.mxu0 %v3363_v27 }
 0x1e5   : > { %v6084_v7 = vadd.f32 %v1917_v30, %v6036_v45 }
 0x1e6   : > { %v2853_v38 = vmin.f32 %v6076_v34, 20.0  ;;  %vm2961_vm2 = vcmp.gt.f32.partialorder %v6076_v34, 20.0 }
 0x1e8   : > { %v5190_v39 = vpop.eup %5189  ;;  %v2869_v57 = vmul.f32 1.442695, %v2853_v38  ;;  %v3502_v38 = vunpack.c.l.b16 %v3482_v28  ;;  %v3687_v28 = vld [vmem:[#allocation3 + $0x8] sm:$0x3] }
 0x1e9   : > { %v2888_v59 = vadd.f32 2.0, %v5190_v39  ;;  %v6086_v37 = vpop.f32.mrf.mxu2  ;;  %v2725_v53 = vpop.f32.mrf.mxu1 }
 0x1ea   : > { %5191 = vpow2.f32 %v2869_v57  ;;  %v2814_v48 = vadd.f32 %v2725_v53, %v2620_v56  ;;  %v3504_v27 = vpack.c.b16 %v3502_v38, %v3502_v38 }
 0x1eb   : > { %v2900_v35 = vmul.f32 %v5190_v39, %v2888_v59  ;;  %v5112_v59 = vld [vmem:[#allocation3] sm:$0xf0] }
 0x1ec   : > { %v6089_v14 = vadd.f32 %v5170_v49, %v2814_v48  ;;  %v1919_v24 = vpop.f32.mrf.mxu3 }
 0x1ed   : > { %v2924_v6 = vadd.f32 2.0, %v2900_v35  ;;  %v2912_v23 = vmul.f32 %v2900_v35, %v2840_v2  ;;  %v3068_v35 = vld [vmem:[#allocation4 + $0x14] sm:$0xf] }
 0x1ee   : > { %v2854_v26 = vmin.f32 %v6089_v14, 20.0  ;;  %vm2962_vm3 = vcmp.gt.f32.partialorder %v6089_v14, 20.0 }
 0x1ef   : > { %5193 = vrcp.f32 %v2924_v6  ;;  %v4974_v6 = vld [vmem:[#allocation3] sm:$0xe] }
 0x1f0   : > { %v5192_v62 = vpop.eup %5191  ;;  %v2871_v45 = vmul.f32 1.442695, %v2854_v26  ;;  %v3135_v26 = vsel %vm1439_vm0, %v3068_v35, 0 }
 0x1f1   : > { %v2889_v13 = vadd.f32 2.0, %v5192_v62  ;;  %v2323_v51 = vpop.f32.mrf.mxu2  ;;  %v2727_v12 = vpop.f32.mrf.mxu1  ;;  %3144 = vmatpush.bf16.msrb.mxu1 %v3135_v26 }
 0x1f2   : > { %5195 = vpow2.f32 %v2871_v45  ;;  %v3514_v45 = vshrl.u32 %v3504_v27, 16 }
 0x1f3   : > { %4936 = vmatmul.msk.bf16.vlgmr.msra.gmra.mxu0 %vm1432_vm10, %v5100_v0  ;;  %v2901_v61 = vmul.f32 %v5192_v62, %v2889_v13  ;;  %v4975_v62 = vor.u32 %v5112_v59, %v4974_v6  ;;  %v3517_v0 = vshll.u32 %v3504_v27, 16  ;;  %v6138_v59 = vld [vmem:[%s6555_s3 + $0x2] ss:$0 sm:$0xff]  ;;  %v5116_v27 = vld [vmem:[#allocation3] sm:$0xf0] }
 0x1f4   : > { %v2162_v52 = vpop.f32.mrf.mxu3  ;;  %3535 = vmatpush.bf16.msra.mxu0 %v3526_v54  ;;  %v3516_v29 = vrot.slane %v3514_v45, 1  ;;  %v3847_v6 = vld [vmem:[#allocation4 + $0x50] sm:$0xf] }
 0x1f5   : > { %v5194_v33 = vpop.eup %5193  ;;  %v2925_v49 = vadd.f32 2.0, %v2901_v61  ;;  %v6096_v36 = vadd.f32 %v2162_v52, %v6062_v31  ;;  %v2913_v32 = vmul.f32 %v2901_v61, %v6076_v34  ;;  %v3357_v31 = vrot.slane %v3355_v42, 1 }
 0x1f6   : > { %v2948_v63 = vmul.f32 %v5194_v33, %v2912_v23  ;;  %v3506_v51 = vshrl.u32 %v4975_v62, 16  ;;  %v3509_v12 = vshll.u32 %v4975_v62, 16 }
 0x1f7   : > { %5197 = vrcp.f32 %v2925_v49 }
 0x1f8   : > { %v5196_v46 = vpop.eup %5195  ;;  %v2972_v11 = vsel %vm2960_vm11, %v2840_v2, %v2948_v63  ;;  %v4955_v2 = vor.u32 %v5108_v8, %v4954_v10  ;;  %v3519_v63 = vrot.slane %v3517_v0, 2  ;;  %v3508_v8 = vrot.slane %v3506_v51, 1  ;;  %v3051_v10 = vld [vmem:[#allocation4 + $0x4] sm:$0xf] }
 0x1f9   : > { %v3008_v41 = vsel %vm2990_vm1, %v2972_v11, 0.0  ;;  %v2890_v3 = vadd.f32 2.0, %v5196_v46  ;;  %v6098_v18 = vpop.f32.mrf.mxu2 }
 0x1fa   : > { %v3020_v4 = vpack.c.bf16 %v3008_v41, %v3008_v41  ;;  %v3356_v56 = vrot.slane %v4955_v2, 1  ;;  %v3511_v41 = vrot.slane %v3509_v12, 2 }
 0x1fb   : > { %v2902_v17 = vmul.f32 %v5196_v46, %v2890_v3  ;;  %v3698_v46 = vld [vmem:[#allocation4 + $0x40] sm:$0xf] }
 0x1fc   : > { %3033 = vst.msk [vmem:[#allocation3 + $0xc] sm:$0xf] %vm565_vm8, %v3020_v4  ;;  %v6105_v57 = vpop.f32.mrf.mxu3  ;;  %v3358_v48 = vsel %vm1776_vm12, %v3356_v56, %v3357_v31  ;;  %v3717_v52 = vsel %vm1439_vm0, %v3698_v46, 0  ;;  %v3512_v42 = vor.u32 %v3511_v41, %v3508_v8  ;;  %v3345_v8 = vld [vmem:[#allocation4 + $0x24] sm:$0xf] }
 0x1fd   : > { %v5198_v19 = vpop.eup %5197  ;;  %v2926_v58 = vadd.f32 2.0, %v2902_v17 }
 0x1fe   : > { %v2949_v39 = vmul.f32 %v5198_v19, %v2913_v32  ;;  %v3707_v19 = vunpack.c.l.b16 %v3687_v28 }
 0x1ff   : > { %5199 = vrcp.f32 %v2926_v58  ;;  %v2371_v58 = vadd.f32 %v6064_v25, %v6013_v20 }
 0x200   : > { %v2973_v30 = vsel %vm2961_vm2, %v6076_v34, %v2949_v39  ;;  %v2914_v34 = vmul.f32 %v2902_v17, %v6089_v14  ;;  %v3265_v17 = vsel %vm1439_vm0, %v3051_v10, 0  ;;  %v1710_v39 = vadd.f32 %v5945_v16, %v5919_v5  ;;  %v4994_v16 = vld [vmem:[#allocation3] sm:$0xc] }
 0x201   : > { %v3021_v53 = vpack.c.bf16 %v2973_v30, %v2973_v30  ;;  %v6107_v43 = vpop.f32.mrf.mxu2  ;;  %3274 = vmatpush.bf16.msra.mxu1 %v3265_v17  ;;  %v2621_v56 = vadd.f32 %v6098_v18, %v2371_v58  ;;  %v3709_v25 = vpack.c.b16 %v3707_v19, %v3707_v19  ;;  %v3880_v18 = vsel %vm1439_vm0, %v3847_v6, 0 }
 0x202   : > { %v1928_v35 = vadd.f32 %v5975_v15, %v1710_v39  ;;  %v4052_v39 = vld [vmem:[#allocation4 + $0x60] sm:$0xf] }
 0x203   : > { %4956 = vmatmul.msk.bf16.vlgmr.msrb.gmra.mxu0 %vm1432_vm10, %v3358_v48  ;;  %3034 = vst.msk [vmem:[#allocation3 + $0x10] sm:$0xf] %vm565_vm8, %v3021_v53  ;;  %v3711_v15 = vrot.slane %v3709_v25, 2 }
 0x204   : > { %v2167_v61 = vpop.f32.mrf.mxu3  ;;  %3726 = vmatpush.bf16.msrb.mxu0 %v3717_v52  ;;  %v2178_v45 = vadd.f32 %v6024_v40, %v1928_v35  ;;  %v5120_v40 = vld [vmem:[#allocation3] sm:$0xf0] }
 0x205   : > { %v5200_v24 = vpop.eup %5199  ;;  %v6119_v33 = vadd.f32 %v2167_v61, %v6084_v7 }
 0x206   : > { %v2950_v13 = vmul.f32 %v5200_v24, %v2914_v34  ;;  %v3836_v34 = vld [vmem:[#allocation3 + $0x8] sm:$0x7]  ;;  %v4995_v24 = vor.u32 %v5116_v27, %v4994_v16  ;;  %v2372_v12 = vadd.f32 %v6072_v21, %v2178_v45  ;;  %v3394_v21 = vsel %vm1439_vm0, %v3345_v8, 0 }
 0x207   : > { %v3856_v51 = vunpack.c.l.b16 %v3836_v34  ;;  %v3494_v34 = vld [vmem:[#allocation4 + $0x34] sm:$0xf] }
 0x208   : > { %v2974_v22 = vsel %vm2962_vm3, %v6089_v14, %v2950_v13  ;;  %v3520_v14 = vor.u32 %v3519_v63, %v3516_v29  ;;  %v3710_v61 = vrot.slane %v4995_v24, 2 }
 0x209   : > { %v3010_v23 = vsel %vm2995_vm5, %v2974_v22, 0.0  ;;  %v6121_v49 = vpop.f32.mrf.mxu2  ;;  %v3858_v52 = vpack.c.b16 %v3856_v51, %v3856_v51 }
 0x20a   : > { %v3022_v11 = vpack.c.bf16 %v3010_v23, %v3010_v23  ;;  %v5105_v3 = vld [vmem:[#allocation3 + $0xc] sm:$0xff]  ;;  %v3521_v7 = vsel %vm1964_vm13, %v3512_v42, %v3520_v14  ;;  %v2622_v23 = vadd.f32 %v6107_v43, %v2372_v12  ;;  %v5014_v14 = vld [vmem:[#allocation3] sm:$0xc] }
 0x20b   : > { %v3122_v54 = vshll.u32 %v5105_v3, 16  ;;  %v3120_v53 = vshrl.u32 %v5105_v3, 16  ;;  %v5015_v3 = vor.u32 %v5120_v40, %v5014_v14  ;;  %v3868_v42 = vshrl.u32 %v3858_v52, 16  ;;  %v5109_v12 = vld [vmem:[#allocation3 + $0xc] sm:$0xf0] }
 0x20c   : > { %3035 = vst.msk [vmem:[#allocation3 + $0x14] sm:$0x7] %vm3031_vm7, %v3022_v11  ;;  %v2169_v47 = vpop.f32.mrf.mxu3  ;;  %v3712_v11 = vsel %vm2214_vm14, %v3710_v61, %v3711_v15  ;;  %v4041_v15 = vld [vmem:[#allocation3 + $0x8] sm:$0x7]  ;;  %v4959_v40 = vld [vmem:[#allocation3 + $0xc] sm:$0xe] }
 0x20d   : > { %v3124_v38 = vrot.slane %v3122_v54, 1  ;;  %v3871_v47 = vshll.u32 %v3858_v52, 16  ;;  %v3860_v10 = vshrl.u32 %v5015_v3, 16  ;;  %v3863_v54 = vshll.u32 %v5015_v3, 16 }
 0x20e   : > { %v4960_v8 = vor.u32 %v5109_v12, %v4959_v40 }
 0x20f   : > { %v3125_v62 = vor.u32 %v3124_v38, %v3120_v53  ;;  %v3873_v38 = vrot.slane %v3871_v47, 3  ;;  %v4071_v53 = vsel %vm1439_vm0, %v4052_v39, 0  ;;  %v3865_v27 = vrot.slane %v3863_v54, 3 }
 0x211   : > { %v2559_v4 = vpop.f32.mrf.mxu2 }
 0x212   : > { %v2373_v4 = vadd.f32 %v6086_v37, %v6041_v50  ;;  %v5101_v37 = vld [vmem:[#allocation3 + $0xc] sm:$0xff] }
 0x213   : > { %4976 = vmatmul.msk.bf16.vlgmr.msra.gmra.mxu0 %vm1432_vm10, %v3521_v7  ;;  %v3059_v2 = vld [vmem:[#allocation3 + $0x14] sm:$0x1] }
 0x214   : > { %v3116_v32 = vunpack.c.l.b16 %v3059_v2  ;;  %v6133_v30 = vpop.f32.mrf.mxu3  ;;  %3889 = vmatpush.bf16.msra.mxu0 %v3880_v18  ;;  %v2623_v17 = vadd.f32 %v6121_v49, %v2373_v4  ;;  %v3336_v25 = vld [vmem:[#allocation3 + $0x14] sm:$0x1] }
 0x215   : > { %v3384_v18 = vunpack.c.l.b16 %v3336_v25 }
 0x216   : > { %v3118_v31 = vpack.c.b16 %v3116_v32, %v3116_v32 }
 0x217   : > { %v3386_v61 = vpack.c.b16 %v3384_v18, %v3384_v18  ;;  %v3699_v18 = vld [vmem:[#allocation4 + $0x44] sm:$0xf] }
 0x218   : > { %v3127_v48 = vshll.u32 %v3118_v31, 16  ;;  %v3870_v31 = vrot.slane %v3868_v42, 2  ;;  %v5124_v42 = vld [vmem:[#allocation3] sm:$0xf0] }
 0x219   : > { %v2760_v20 = vpop.f32.mrf.mxu2  ;;  %v3388_v3 = vrot.slane %v3386_v61, 1 }
 0x21a   : > { %v2815_v26 = vadd.f32 %v2760_v20, %v2621_v56  ;;  %v3129_v5 = vrot.slane %v3127_v48, 1  ;;  %v3862_v48 = vrot.slane %v3860_v10, 2  ;;  %v3874_v20 = vor.u32 %v3873_v38, %v3870_v31 }
 0x21c   : > { %v6144_v0 = vadd.f32 %v6138_v59, %v2815_v26  ;;  %v3130_v13 = vsel %vm1416_vm9, %v3125_v62, %v3129_v5  ;;  %v6151_v29 = vpop.f32.mrf.mxu3  ;;  %v3866_v26 = vor.u32 %v3865_v27, %v3862_v48 }
 0x21d   : > { %4921 = vmatmul.msk.bf16.vlgmr.msrb.gmra.mxu1 %vm1432_vm10, %v3130_v13 }
 0x21e   : > { %v2855_v22 = vmin.f32 %v6144_v0, 20.0  ;;  %3403 = vmatpush.bf16.msrb.mxu1 %v3394_v21  ;;  %v3875_v45 = vsel %vm2408_vm15, %v3866_v26, %v3874_v20  ;;  %vm2963_vm6 = vcmp.gt.f32.partialorder %v6144_v0, 20.0 }
 0x220   : > { %v2873_v63 = vmul.f32 1.442695, %v2855_v22 }
 0x221   : > { %v2762_v46 = vpop.f32.mrf.mxu2 }
 0x222   : > { %5201 = vpow2.f32 %v2873_v63  ;;  %v2816_v41 = vadd.f32 %v2762_v46, %v2622_v23  ;;  %v4061_v46 = vunpack.c.l.b16 %v4041_v15 }
 0x223   : > { %4996 = vmatmul.msk.bf16.vlgmr.msrb.gmra.mxu0 %vm1432_vm10, %v3712_v11  ;;  %v3485_v11 = vld [vmem:[#allocation3 + $0x14] sm:$0x3] }
 0x224   : > { %v6157_v43 = vadd.f32 %v6138_v59, %v2816_v41  ;;  %v6163_v2 = vpop.f32.mrf.mxu3  ;;  %4080 = vmatpush.bf16.msrb.mxu0 %v4071_v53  ;;  %v3547_v47 = vunpack.c.l.b16 %v3485_v11  ;;  %v4063_v10 = vpack.c.b16 %v4061_v46, %v4061_v46 }
 0x226   : > { %v2856_v7 = vmin.f32 %v6157_v43, 20.0  ;;  %v3549_v38 = vpack.c.b16 %v3547_v47, %v3547_v47  ;;  %v4065_v53 = vrot.slane %v4063_v10, 3  ;;  %vm2964_vm11 = vcmp.gt.f32.partialorder %v6157_v43, 20.0  ;;  %v3848_v47 = vld [vmem:[#allocation4 + $0x54] sm:$0xf] }
 0x228   : > { %v5202_v28 = vpop.eup %5201  ;;  %v2875_v32 = vmul.f32 1.442695, %v2856_v7  ;;  %v3562_v26 = vshll.u32 %v3549_v38, 16 }
 0x229   : > { %v2891_v19 = vadd.f32 2.0, %v5202_v28  ;;  %v2765_v58 = vpop.f32.mrf.mxu2 }
 0x22a   : > { %5203 = vpow2.f32 %v2875_v32  ;;  %v2817_v56 = vadd.f32 %v2765_v58, %v2623_v17  ;;  %v5034_v17 = vld [vmem:[#allocation3] sm:$0x8]  ;;  %v5113_v58 = vld [vmem:[#allocation3 + $0xc] sm:$0xf0] }
 0x22b   : > { %v2903_v50 = vmul.f32 %v5202_v28, %v2891_v19  ;;  %v3387_v28 = vrot.slane %v4960_v8, 1  ;;  %v5035_v19 = vor.u32 %v5124_v42, %v5034_v17  ;;  %v3690_v8 = vld [vmem:[#allocation3 + $0x14] sm:$0x3] }
 0x22c   : > { %v6167_v35 = vadd.f32 %v6138_v59, %v2817_v56  ;;  %v2363_v5 = vpop.f32.mrf.mxu3  ;;  %v3571_v59 = vsel %vm1439_vm0, %v3494_v34, 0 }
 0x22d   : > { %v2927_v49 = vadd.f32 2.0, %v2903_v50  ;;  %4941 = vmatmul.msk.bf16.vlgmr.msra.gmra.mxu1 %vm1432_vm10, %v5101_v37  ;;  %v2915_v22 = vmul.f32 %v2903_v50, %v6144_v0  ;;  %v3389_v31 = vsel %vm1776_vm12, %v3387_v28, %v3388_v3  ;;  %v4979_v50 = vld [vmem:[#allocation3 + $0xc] sm:$0xe]  ;;  %v4064_v27 = vrot.slane %v5035_v19, 3 }
 0x22e   : > { %v2857_v6 = vmin.f32 %v6167_v35, 20.0  ;;  %3580 = vmatpush.bf16.msra.mxu1 %v3571_v59  ;;  %v4980_v48 = vor.u32 %v5113_v58, %v4979_v50  ;;  %vm2965_vm2 = vcmp.gt.f32.partialorder %v6167_v35, 20.0  ;;  %v4999_v19 = vld [vmem:[#allocation3 + $0xc] sm:$0xc]  ;;  %v3839_v58 = vld [vmem:[#allocation3 + $0x14] sm:$0x7] }
 0x22f   : > { %5205 = vrcp.f32 %v2927_v49  ;;  %v3069_v49 = vld [vmem:[#allocation4 + $0x18] sm:$0xf]  ;;  %v5318_v50 = vmov 0  }
 0x230   : > { %v5204_v62 = vpop.eup %5203  ;;  %v2877_v16 = vmul.f32 1.442695, %v2857_v6  ;;  %v3559_v6 = vshrl.u32 %v3549_v38, 16  ;;  %v3551_v34 = vshrl.u32 %v4980_v48, 16  ;;  %5168 = vset.pattern.permute.xlu0 %v5318_v50 }
 0x231   : > { %v2892_v24 = vadd.f32 2.0, %v5204_v62  ;;  %v2767_v13 = vpop.f32.mrf.mxu2 }
 0x232   : > { %5207 = vpow2.f32 %v2877_v16  ;;  %v4066_v16 = vsel %vm2658_vm4, %v4064_v27, %v4065_v53  ;;  %v3561_v59 = vrot.slane %v3559_v6, 1  ;;  %v3564_v13 = vrot.slane %v3562_v26, 2  ;;  %v6220_v53 = vld [vmem:[%s6555_s3 + $0x3] ss:$0 sm:$0xff] }
 0x233   : > { %5016 = vmatmul.msk.bf16.vlgmr.msra.gmra.mxu0 %vm1432_vm10, %v3875_v45  ;;  %v2904_v51 = vmul.f32 %v5204_v62, %v2892_v24  ;;  %v3175_v62 = vsel %vm1439_vm0, %v3069_v49, 0  ;;  %v3554_v24 = vshll.u32 %v4980_v48, 16  ;;  %v3748_v45 = vsel %vm1439_vm0, %v3699_v18, 0 }
 0x234   : > { %v6177_v21 = vpop.f32.mrf.mxu3  ;;  %3184 = vmatpush.bf16.msrb.mxu2 %v3175_v62  ;;  %v3553_v12 = vrot.slane %v3551_v34, 1  ;;  %v3901_v49 = vunpack.c.l.b16 %v3839_v58 }
 0x235   : > { %v5206_v23 = vpop.eup %5205  ;;  %v2928_v63 = vadd.f32 2.0, %v2904_v51 }
 0x236   : > { %v2951_v52 = vmul.f32 %v5206_v23, %v2915_v22  ;;  %v3556_v22 = vrot.slane %v3554_v24, 2  ;;  %v3903_v34 = vpack.c.b16 %v3901_v49, %v3901_v49 }
 0x237   : > { %5209 = vrcp.f32 %v2928_v63  ;;  %v3565_v63 = vor.u32 %v3564_v13, %v3561_v59 }
 0x238   : > { %v5208_v41 = vpop.eup %5207  ;;  %v2975_v14 = vsel %vm2963_vm6, %v6144_v0, %v2951_v52  ;;  %v2916_v0 = vmul.f32 %v2904_v51, %v6157_v43  ;;  %v3557_v11 = vor.u32 %v3556_v22, %v3553_v12  ;;  %v3913_v22 = vshrl.u32 %v3903_v34, 16 }
 0x239   : > { %v3011_v4 = vsel %vm2990_vm1, %v2975_v14, 0.0  ;;  %v2893_v7 = vadd.f32 2.0, %v5208_v41  ;;  %v3052_v14 = vld [vmem:[#allocation4 + $0x8] sm:$0xf] }
 0x23a   : > { %v3023_v54 = vpack.c.bf16 %v3011_v4, %v3011_v4  ;;  %v3566_v52 = vsel %vm1964_vm13, %v3557_v11, %v3565_v63  ;;  %v3290_v42 = vsel %vm1439_vm0, %v3052_v14, 0  ;;  %v2376_v14 = vadd.f32 %v6163_v2, %v6119_v33  ;;  %v3070_v2 = vld [vmem:[#allocation4 + $0x1c] sm:$0xf] }
 0x23b   : > { %v2905_v32 = vmul.f32 %v5208_v41, %v2893_v7  ;;  %3299 = vmatpush.bf16.msra.mxu2 %v3290_v42  ;;  %v3925_v7 = vsel %vm1439_vm0, %v3848_v47, 0 }
 0x23c   : > { %3036 = vst.msk [vmem:[#allocation3 + $0x18] sm:$0xf] %vm565_vm8, %v3023_v54  ;;  %v6187_v25 = vpop.f32.mrf.mxu3  ;;  %v5117_v54 = vld [vmem:[#allocation3 + $0xc] sm:$0xf0] }
 0x23d   : > { %v5210_v39 = vpop.eup %5209  ;;  %v2929_v56 = vadd.f32 2.0, %v2905_v32  ;;  %4961 = vmatmul.msk.bf16.vlgmr.msrb.gmra.mxu1 %vm1432_vm10, %v3389_v31  ;;  %v5000_v38 = vor.u32 %v5117_v54, %v4999_v19 }
 0x23e   : > { %v2952_v37 = vmul.f32 %v5210_v39, %v2916_v0  ;;  %3757 = vmatpush.bf16.msrb.mxu1 %v3748_v45  ;;  %v1745_v39 = vadd.f32 %v6020_v9, %v5972_v55  ;;  %v5019_v45 = vld [vmem:[#allocation3 + $0xc] sm:$0xc] }
 0x23f   : > { %5211 = vrcp.f32 %v2929_v56 }
 0x240   : > { %v2976_v20 = vsel %vm2964_vm11, %v6157_v43, %v2952_v37  ;;  %v2917_v43 = vmul.f32 %v2905_v32, %v6167_v35  ;;  %v2374_v32 = vadd.f32 %v6133_v30, %v6096_v36  ;;  %v4300_v37 = vld [vmem:[%s6210_s22] sm:$0xff] }
 0x241   : > { %v3024_v5 = vpack.c.bf16 %v2976_v20, %v2976_v20  ;;  %4304 = vperm.xlu0 %5168, %v4300_v37   ;;  %v1931_v20 = vadd.f32 %v6070_v1, %v1745_v39 }
 0x242   : > { %v2624_v56 = vadd.f32 %v6177_v21, %v2374_v32  ;;  %v3741_v21 = vrot.slane %v5000_v38, 2 }
 0x243   : > { %5036 = vmatmul.msk.bf16.vlgmr.msrb.gmra.mxu0 %vm1432_vm10, %v4066_v16  ;;  %3037 = vst.msk [vmem:[#allocation3 + $0x1c] sm:$0xf] %vm565_vm8, %v3024_v5  ;;  %v2181_v26 = vadd.f32 %v6105_v57, %v1931_v20  ;;  %v5121_v5 = vld [vmem:[#allocation3 + $0xc] sm:$0xf0] }
 0x244   : > { %v6197_v23 = vpop.f32.mrf.mxu3 }
 0x245   : > { %v5212_v15 = vpop.eup %5211  ;;  %v2375_v24 = vadd.f32 %v6151_v29, %v2181_v26 }
 0x246   : > { %v2953_v51 = vmul.f32 %v5212_v15, %v2917_v43  ;;  %v5020_v43 = vor.u32 %v5121_v5, %v5019_v45  ;;  %v4301_v15 = vld [vmem:[%s6210_s22 + $0x8] sm:$0xff]  ;;  %v5125_v5 = vld [vmem:[#allocation3 + $0xc] sm:$0xf0] }
 0x247   : > { %v2625_v57 = vadd.f32 %v6187_v25, %v2375_v24 }
 0x248   : > { %v2977_v61 = vsel %vm2965_vm2, %v6167_v35, %v2953_v51  ;;  %v3738_v35 = vunpack.c.l.b16 %v3690_v8  ;;  %v3346_v51 = vld [vmem:[#allocation4 + $0x28] sm:$0xf]  ;;  %v3908_v11 = vshll.u32 %v5020_v43, 16  ;;  %v3915_v8 = vrot.slane %v3913_v22, 2 }
 0x249   : > { %v3013_v40 = vsel %vm2995_vm5, %v2977_v61, 0.0  ;;  %v3916_v61 = vshll.u32 %v3903_v34, 16  ;;  %4309 = vperm.xlu0 %5168, %v4301_v15   ;;  %v3425_v29 = vsel %vm1439_vm0, %v3346_v51, 0 }
 0x24a   : > { %v3025_v46 = vpack.c.bf16 %v3013_v40, %v3013_v40  ;;  %v5106_v41 = vld [vmem:[#allocation3 + $0x18] sm:$0xff]  ;;  %v3740_v17 = vpack.c.b16 %v3738_v35, %v3738_v35  ;;  %v4053_v40 = vld [vmem:[#allocation4 + $0x64] sm:$0xf]  ;;  %v3910_v42 = vrot.slane %v3908_v11, 3 }
 0x24b   : > { %v3162_v4 = vshll.u32 %v5106_v41, 16  ;;  %v3160_v36 = vshrl.u32 %v5106_v41, 16  ;;  %v3918_v41 = vrot.slane %v3916_v61, 3  ;;  %v5102_v33 = vld [vmem:[#allocation3 + $0x18] sm:$0xff] }
 0x24c   : > { %3038 = vst.msk [vmem:[#allocation3 + $0x20] sm:$0x7] %vm3031_vm7, %v3025_v46  ;;  %v2613_v3 = vpop.f32.mrf.mxu3  ;;  %v3742_v27 = vrot.slane %v3740_v17, 2  ;;  %v3905_v46 = vshrl.u32 %v5020_v43, 16  ;;  %v5110_v26 = vld [vmem:[#allocation3 + $0x18] sm:$0xf0] }
 0x24d   : > { %4981 = vmatmul.msk.bf16.vlgmr.msra.gmra.mxu1 %vm1432_vm10, %v3566_v52  ;;  %v3164_v31 = vrot.slane %v3162_v4, 1  ;;  %v4102_v52 = vsel %vm1439_vm0, %v4053_v40, 0  ;;  %v2626_v4 = vadd.f32 %v6197_v23, %v2376_v14  ;;  %v3919_v17 = vor.u32 %v3918_v41, %v3915_v8  ;;  %v4964_v43 = vld [vmem:[#allocation3 + $0x18] sm:$0xe] }
 0x24e   : > { %3934 = vmatpush.bf16.msra.mxu1 %v3925_v7  ;;  %v3743_v18 = vsel %vm2214_vm14, %v3741_v21, %v3742_v27  ;;  %v3907_v35 = vrot.slane %v3905_v46, 2  ;;  %v3215_v23 = vsel %vm1439_vm0, %v3070_v2, 0 }
 0x24f   : > { %v3165_v55 = vor.u32 %v3164_v31, %v3160_v36  ;;  %v3495_v31 = vld [vmem:[#allocation4 + $0x38] sm:$0xf]  ;;  %3224 = vmatpush.bf16.msrb.mxu3 %v3215_v23 }
 0x250   : > { %v3911_v58 = vor.u32 %v3910_v42, %v3907_v35  ;;  %v3616_v50 = vsel %vm1439_vm0, %v3495_v31, 0 }
 0x252   : > { %v3920_v39 = vsel %vm2408_vm15, %v3911_v58, %v3919_v17 }
 0x253   : > { %v3062_v10 = vld [vmem:[#allocation3 + $0x20] sm:$0x1] }
 0x254   : > { %v3156_v28 = vunpack.c.l.b16 %v3062_v10  ;;  %v2800_v48 = vpop.f32.mrf.mxu3 }
 0x255   : > { %v2818_v6 = vadd.f32 %v2800_v48, %v2624_v56  ;;  %v4044_v56 = vld [vmem:[#allocation3 + $0x14] sm:$0x7]  ;;  %v3339_v48 = vld [vmem:[#allocation3 + $0x20] sm:$0x1] }
 0x256   : > { %v3158_v0 = vpack.c.b16 %v3156_v28, %v3156_v28  ;;  %v4092_v27 = vunpack.c.l.b16 %v4044_v56 }
 0x257   : > { %v6226_v62 = vadd.f32 %v6220_v53, %v2818_v6 }
 0x258   : > { %v3167_v30 = vshll.u32 %v3158_v0, 16 }
 0x259   : > { %v2858_v1 = vmin.f32 %v6226_v62, 20.0  ;;  %vm2966_vm3 = vcmp.gt.f32.partialorder %v6226_v62, 20.0 }
 0x25a   : > { %v3169_v9 = vrot.slane %v3167_v30, 1 }
 0x25b   : > { %v2879_v59 = vmul.f32 1.442695, %v2858_v1  ;;  %v3488_v1 = vld [vmem:[#allocation3 + $0x20] sm:$0x3] }
 0x25c   : > { %v3170_v16 = vsel %vm1416_vm9, %v3165_v55, %v3169_v9  ;;  %v2802_v12 = vpop.f32.mrf.mxu3  ;;  %v3415_v55 = vunpack.c.l.b16 %v3339_v48  ;;  %v3592_v61 = vunpack.c.l.b16 %v3488_v1  ;;  %v5118_v1 = vld [vmem:[#allocation3 + $0x18] sm:$0xf0] }
 0x25d   : > { %4926 = vmatmul.msk.bf16.vlgmr.msrb.gmra.mxu2 %vm1432_vm10, %v3170_v16  ;;  %5001 = vmatmul.msk.bf16.vlgmr.msrb.gmra.mxu1 %vm1432_vm10, %v3743_v18  ;;  %5213 = vpow2.f32 %v2879_v59  ;;  %v2819_v63 = vadd.f32 %v2802_v12, %v2625_v57  ;;  %v4094_v16 = vpack.c.b16 %v4092_v27, %v4092_v27  ;;  %v5039_v57 = vld [vmem:[#allocation3 + $0xc] sm:$0x8]  ;;  %v4965_v59 = vor.u32 %v5110_v26, %v4964_v43 }
 0x25e   : > { %3434 = vmatpush.bf16.msrb.mxu2 %v3425_v29  ;;  %4111 = vmatpush.bf16.msrb.mxu1 %v4102_v52  ;;  %v3417_v24 = vpack.c.b16 %v3415_v55, %v3415_v55 }
 0x25f   : > { %v6239_v25 = vadd.f32 %v6220_v53, %v2819_v63  ;;  %v4096_v22 = vrot.slane %v4094_v16, 3  ;;  %v3418_v8 = vrot.slane %v4965_v59, 1  ;;  %v5004_v59 = vld [vmem:[#allocation3 + $0x18] sm:$0xc] }
 0x260   : > { %v3106_v13 = vpop.f32.mrf.mxu0  ;;  %v3419_v46 = vrot.slane %v3417_v24, 1 }
 0x261   : > { %v2859_v3 = vmin.f32 %v6239_v25, 20.0 }
 0x262   : > { %v3420_v42 = vsel %vm1776_vm12, %v3418_v8, %v3419_v46 }
 0x263   : > { %v5214_v47 = vpop.eup %5213  ;;  %v2881_v7 = vmul.f32 1.442695, %v2859_v3  ;;  %v5114_v3 = vld [vmem:[#allocation3 + $0x18] sm:$0xf0] }
 0x264   : > { %v2894_v54 = vadd.f32 2.0, %v5214_v47  ;;  %v2805_v28 = vpop.f32.mrf.mxu3 }
 0x265   : > { %5215 = vpow2.f32 %v2881_v7  ;;  %v2820_v32 = vadd.f32 %v2805_v28, %v2626_v4  ;;  %v3053_v4 = vld [vmem:[#allocation4 + $0xc] sm:$0xf]  ;;  %v3700_v7 = vld [vmem:[#allocation4 + $0x48] sm:$0xf] }
 0x266   : > { %v2906_v19 = vmul.f32 %v5214_v47, %v2894_v54  ;;  %v3594_v47 = vpack.c.b16 %v3592_v61, %v3592_v61  ;;  %v4984_v54 = vld [vmem:[#allocation3 + $0x18] sm:$0xe]  ;;  %v3315_v28 = vsel %vm1439_vm0, %v3053_v4, 0  ;;  %v3779_v17 = vsel %vm1439_vm0, %v3700_v7, 0  ;;  %v3347_v61 = vld [vmem:[#allocation4 + $0x2c] sm:$0xf] }
 0x267   : > { %v6246_v0 = vadd.f32 %v6220_v53, %v2820_v32  ;;  %v4985_v32 = vor.u32 %v5114_v3, %v4984_v54  ;;  %3324 = vmatpush.bf16.msra.mxu3 %v3315_v28  ;;  %v5122_v3 = vld [vmem:[#allocation3 + $0x18] sm:$0xf0] }
 0x268   : > { %v3108_v10 = vpop.f32.mrf.mxu0  ;;  %v2930_v38 = vadd.f32 2.0, %v2906_v19  ;;  %v2918_v21 = vmul.f32 %v2906_v19, %v6226_v62  ;;  %v3604_v2 = vshrl.u32 %v3594_v47, 16  ;;  %v3607_v31 = vshll.u32 %v3594_v47, 16 }
 0x269   : > { %v2860_v37 = vmin.f32 %v6246_v0, 20.0  ;;  %vm2968_vm6 = vcmp.gt.f32.partialorder %v6246_v0, 20.0 }
 0x26a   : > { %5217 = vrcp.f32 %v2930_v38  ;;  %v3596_v38 = vshrl.u32 %v4985_v32, 16 }
 0x26b   : > { %v5216_v53 = vpop.eup %5215  ;;  %v2883_v36 = vmul.f32 1.442695, %v2860_v37  ;;  %v3609_v37 = vrot.slane %v3607_v31, 2 }
 0x26c   : > { %v2895_v49 = vadd.f32 2.0, %v5216_v53  ;;  %v2807_v20 = vpop.f32.mrf.mxu3 }
 0x26d   : > { %4946 = vmatmul.msk.bf16.vlgmr.msra.gmra.mxu2 %vm1432_vm10, %v5102_v33  ;;  %5021 = vmatmul.msk.bf16.vlgmr.msra.gmra.mxu1 %vm1432_vm10, %v3920_v39  ;;  %5219 = vpow2.f32 %v2883_v36  ;;  %v3599_v39 = vshll.u32 %v4985_v32, 16 }
 0x26e   : > { %3625 = vmatpush.bf16.msra.mxu2 %v3616_v50  ;;  %v2907_v9 = vmul.f32 %v5216_v53, %v2895_v49  ;;  %v3606_v50 = vrot.slane %v3604_v2, 1  ;;  %v3598_v53 = vrot.slane %v3596_v38, 1 }
 0x26f   : > { %v3601_v36 = vrot.slane %v3599_v39, 2  ;;  %v3496_v39 = vld [vmem:[#allocation4 + $0x3c] sm:$0xf] }
 0x270   : > { %v3251_v30 = vpop.f32.mrf.mxu0  ;;  %v5218_v18 = vpop.eup %5217  ;;  %v2931_v34 = vadd.f32 2.0, %v2907_v9  ;;  %v2919_v14 = vmul.f32 %v2907_v9, %v6239_v25  ;;  %v3610_v49 = vor.u32 %v3609_v37, %v3606_v50 }
 0x271   : > { %v6254_v6 = vadd.f32 %v3251_v30, %v3106_v13  ;;  %v2954_v45 = vmul.f32 %v5218_v18, %v2918_v21  ;;  %v5040_v13 = vor.u32 %v5125_v5, %v5039_v57  ;;  %v3602_v55 = vor.u32 %v3601_v36, %v3598_v53  ;;  %v3849_v21 = vld [vmem:[#allocation4 + $0x58] sm:$0xf]  ;;  %v3693_v5 = vld [vmem:[#allocation3 + $0x20] sm:$0x3] }
 0x272   : > { %5221 = vrcp.f32 %v2931_v34  ;;  %v3970_v16 = vsel %vm1439_vm0, %v3849_v21, 0  ;;  %v3769_v18 = vunpack.c.l.b16 %v3693_v5 }
 0x273   : > { %v5220_v15 = vpop.eup %5219  ;;  %v2978_v51 = vsel %vm2966_vm3, %v6226_v62, %v2954_v45  ;;  %v4095_v41 = vrot.slane %v5040_v13, 3  ;;  %v3611_v9 = vsel %vm1964_vm13, %v3602_v55, %v3610_v49  ;;  %v3842_v13 = vld [vmem:[#allocation3 + $0x20] sm:$0x7] }
 0x274   : > { %v3014_v29 = vsel %vm2990_vm1, %v2978_v51, 0.0  ;;  %v2896_v63 = vadd.f32 2.0, %v5220_v15  ;;  %vm2967_vm1 = vcmp.gt.f32.partialorder %v6239_v25, 20.0  ;;  %v3771_v45 = vpack.c.b16 %v3769_v18, %v3769_v18 }
 0x275   : > { %v3026_v11 = vpack.c.bf16 %v3014_v29, %v3014_v29  ;;  %v4097_v60 = vsel %vm2658_vm4, %v4095_v41, %v4096_v22  ;;  %v3456_v41 = vsel %vm1439_vm0, %v3347_v61, 0 }
 0x276   : > { %v2908_v52 = vmul.f32 %v5220_v15, %v2896_v63  ;;  %v5005_v15 = vor.u32 %v5118_v1, %v5004_v59  ;;  %v3773_v29 = vrot.slane %v3771_v45, 2  ;;  %v3946_v63 = vunpack.c.l.b16 %v3842_v13  ;;  %v5044_v1 = vld [vmem:[#allocation3 + $0x18] sm:$0x8]  ;;  %v3701_v13 = vld [vmem:[#allocation4 + $0x4c] sm:$0xf] }
 0x277   : > { %3039 = vst.msk [vmem:[#allocation3 + $0x24] sm:$0xf] %vm565_vm8, %v3026_v11 }
 0x278   : > { %v3253_v12 = vpop.f32.mrf.mxu0  ;;  %v5222_v62 = vpop.eup %5221  ;;  %v2932_v35 = vadd.f32 2.0, %v2908_v52  ;;  %v2920_v23 = vmul.f32 %v2908_v52, %v6246_v0  ;;  %v3772_v8 = vrot.slane %v5005_v15, 2 }
 0x279   : > { %v6261_v40 = vadd.f32 %v3253_v12, %v3108_v10  ;;  %v2955_v10 = vmul.f32 %v5222_v62, %v2919_v14 }
 0x27a   : > { %5223 = vrcp.f32 %v2932_v35  ;;  %v3774_v62 = vsel %vm2214_vm14, %v3772_v8, %v3773_v29  ;;  %v3948_v35 = vpack.c.b16 %v3946_v63, %v3946_v63 }
 0x27b   : > { %v2979_v19 = vsel %vm2967_vm1, %v6239_v25, %v2955_v10 }
 0x27c   : > { %v3027_v33 = vpack.c.bf16 %v2979_v19, %v2979_v19  ;;  %v3958_v10 = vshrl.u32 %v3948_v35, 16  ;;  %v3961_v54 = vshll.u32 %v3948_v35, 16 }
 0x27d   : > { %4966 = vmatmul.msk.bf16.vlgmr.msrb.gmra.mxu2 %vm1432_vm10, %v3420_v42  ;;  %5041 = vmatmul.msk.bf16.vlgmr.msrb.gmra.mxu1 %vm1432_vm10, %v4097_v60  ;;  %v4054_v42 = vld [vmem:[#allocation4 + $0x68] sm:$0xf] }
 0x27e   : > { %3788 = vmatpush.bf16.msrb.mxu2 %v3779_v17  ;;  %3040 = vst.msk [vmem:[#allocation3 + $0x28] sm:$0xf] %vm565_vm8, %v3027_v33  ;;  %v5024_v60 = vld [vmem:[#allocation3 + $0x18] sm:$0xc]  ;;  %v4133_v47 = vsel %vm1439_vm0, %v4054_v42, 0  ;;  %v3960_v19 = vrot.slane %v3958_v10, 2 }
 0x27f   : > { %v5025_v4 = vor.u32 %v5122_v3, %v5024_v60  ;;  %v3963_v33 = vrot.slane %v3961_v54, 3  ;;  %v4969_v18 = vld [vmem:[#allocation3 + $0x24] sm:$0xe] }
 0x280   : > { %v6273_v58 = vpop.f32.mrf.mxu0  ;;  %v5224_v56 = vpop.eup %5223  ;;  %v4989_v3 = vld [vmem:[#allocation3 + $0x24] sm:$0xe] }
 0x281   : > { %v2956_v48 = vmul.f32 %v5224_v56, %v2920_v23  ;;  %v3950_v17 = vshrl.u32 %v5025_v4, 16  ;;  %v3953_v32 = vshll.u32 %v5025_v4, 16  ;;  %v3964_v23 = vor.u32 %v3963_v33, %v3960_v19 }
 0x282   : > { %v3472_v15 = vadd.f32 %v6273_v58, %v6254_v6 }
 0x283   : > { %v2980_v25 = vsel %vm2968_vm6, %v6246_v0, %v2956_v48  ;;  %v3952_v2 = vrot.slane %v3950_v17, 2  ;;  %v3955_v31 = vrot.slane %v3953_v32, 3  ;;  %v3661_v48 = vsel %vm1439_vm0, %v3496_v39, 0 }
 0x284   : > { %v3016_v27 = vsel %vm2995_vm5, %v2980_v25, 0.0 }
 0x285   : > { %v3028_v20 = vpack.c.bf16 %v3016_v27, %v3016_v27  ;;  %v5107_v26 = vld [vmem:[#allocation3 + $0x24] sm:$0xff]  ;;  %v3956_v37 = vor.u32 %v3955_v31, %v3952_v2  ;;  %v4047_v27 = vld [vmem:[#allocation3 + $0x20] sm:$0x7] }
 0x286   : > { %v3202_v44 = vshll.u32 %v5107_v26, 16  ;;  %v3200_v51 = vshrl.u32 %v5107_v26, 16  ;;  %v5103_v56 = vld [vmem:[#allocation3 + $0x24] sm:$0xff]  ;;  %v4123_v55 = vunpack.c.l.b16 %v4047_v27 }
 0x287   : > { %3041 = vst.msk [vmem:[#allocation3 + $0x2c] sm:$0x7] %vm3031_vm7, %v3028_v20  ;;  %v3965_v36 = vsel %vm2408_vm15, %v3956_v37, %v3964_v23  ;;  %v5111_v21 = vld [vmem:[#allocation3 + $0x24] sm:$0xf0] }
 0x288   : > { %v6279_v30 = vpop.f32.mrf.mxu0  ;;  %v3204_v57 = vrot.slane %v3202_v44, 1  ;;  %v4125_v44 = vpack.c.b16 %v4123_v55, %v4123_v55 }
 0x289   : > { %v3473_v60 = vadd.f32 %v6279_v30, %v6261_v40 }
 0x28a   : > { %v3205_v46 = vor.u32 %v3204_v57, %v3200_v51  ;;  %v4127_v51 = vrot.slane %v4125_v44, 3 }
 0x28d   : > { %4986 = vmatmul.msk.bf16.vlgmr.msra.gmra.mxu2 %vm1432_vm10, %v3611_v9 }
 0x28e   : > { %3979 = vmatpush.bf16.msra.mxu2 %v3970_v16  ;;  %v3065_v34 = vld [vmem:[#allocation3 + $0x2c] sm:$0x1]  ;;  %v5126_v16 = vld [vmem:[#allocation3 + $0x18] sm:$0xf0] }
 0x28f   : > { %v3196_v24 = vunpack.c.l.b16 %v3065_v34  ;;  %v3342_v25 = vld [vmem:[#allocation3 + $0x2c] sm:$0x1]  ;;  %v5045_v45 = vor.u32 %v5126_v16, %v5044_v1  ;;  %v5119_v16 = vld [vmem:[#allocation3 + $0x24] sm:$0xf0] }
 0x290   : > { %v6287_v0 = vpop.f32.mrf.mxu0  ;;  %v3446_v20 = vunpack.c.l.b16 %v3342_v25  ;;  %v3491_v34 = vld [vmem:[#allocation3 + $0x2c] sm:$0x3] }
 0x291   : > { %v3198_v43 = vpack.c.b16 %v3196_v24, %v3196_v24  ;;  %v4970_v24 = vor.u32 %v5111_v21, %v4969_v18  ;;  %v3637_v59 = vunpack.c.l.b16 %v3491_v34  ;;  %v3677_v61 = vadd.f32 %v6287_v0, %v3472_v15  ;;  %v5173_v0 = vld [vmem:[%s6557_s5] ss:$0 sm:$0xff]  ;;  %v3696_v27 = vld [vmem:[#allocation3 + $0x2c] sm:$0x3]  ;;  %v5009_v34 = vld [vmem:[#allocation3 + $0x24] sm:$0xc] }
 0x292   : > { %v3448_v5 = vpack.c.b16 %v3446_v20, %v3446_v20  ;;  %v4126_v63 = vrot.slane %v5045_v45, 3  ;;  %v5010_v1 = vor.u32 %v5119_v16, %v5009_v34  ;;  %v4050_v34 = vld [vmem:[#allocation3 + $0x2c] sm:$0x7] }
 0x293   : > { %v3207_v12 = vshll.u32 %v3198_v43, 16  ;;  %v3639_v8 = vpack.c.b16 %v3637_v59, %v3637_v59 }
 0x294   : > { %v3450_v43 = vrot.slane %v3448_v5, 1 }
 0x295   : > { %v3209_v11 = vrot.slane %v3207_v12, 1  ;;  %v3449_v12 = vrot.slane %v4970_v24, 1  ;;  %v3649_v35 = vshrl.u32 %v3639_v8, 16  ;;  %v3652_v42 = vshll.u32 %v3639_v8, 16  ;;  %v3845_v24 = vld [vmem:[#allocation3 + $0x2c] sm:$0x7] }
 0x296   : > { %v3991_v59 = vunpack.c.l.b16 %v3845_v24 }
 0x297   : > { %v3210_v14 = vsel %vm1416_vm9, %v3205_v46, %v3209_v11  ;;  %v5115_v46 = vld [vmem:[#allocation3 + $0x24] sm:$0xf0]  ;;  %v3810_v11 = vsel %vm1439_vm0, %v3701_v13, 0  ;;  %v3651_v17 = vrot.slane %v3649_v35, 1  ;;  %v3654_v32 = vrot.slane %v3652_v42, 2 }
 0x298   : > { %v6289_v22 = vpop.f32.mrf.mxu0  ;;  %4931 = vmatmul.msk.bf16.vlgmr.msrb.gmra.mxu3 %vm1432_vm10, %v3210_v14  ;;  %v4128_v14 = vsel %vm2658_vm4, %v4126_v63, %v4127_v51  ;;  %v4990_v6 = vor.u32 %v5115_v46, %v4989_v3  ;;  %v4055_v13 = vld [vmem:[#allocation4 + $0x6c] sm:$0xf]  ;;  %v3803_v51 = vrot.slane %v5010_v1, 2  ;;  %v3993_v3 = vpack.c.b16 %v3991_v59, %v3991_v59  ;;  %v5127_v59 = vld [vmem:[#allocation3 + $0x24] sm:$0xf0] }
 0x299   : > { %3465 = vmatpush.bf16.msrb.mxu3 %v3456_v41  ;;  %v3678_v10 = vadd.f32 %v6289_v22, %v3473_v60  ;;  %v3655_v40 = vor.u32 %v3654_v32, %v3651_v17  ;;  %v4154_v1 = vunpack.c.l.b16 %v4050_v34 }
 0x29a   : > { %v3146_v52 = vpop.f32.mrf.mxu1  ;;  %v3641_v4 = vshrl.u32 %v4990_v6, 16  ;;  %v4003_v35 = vshrl.u32 %v3993_v3, 16  ;;  %v4006_v42 = vshll.u32 %v3993_v3, 16 }
 0x29c   : > { %v3643_v2 = vrot.slane %v3641_v4, 1 }
 0x29d   : > { %5006 = vmatmul.msk.bf16.vlgmr.msrb.gmra.mxu2 %vm1432_vm10, %v3774_v62 }
 0x29e   : > { %4142 = vmatpush.bf16.msrb.mxu2 %v4133_v47 }
 0x2a0   : > { %v3728_v7 = vpop.f32.mrf.mxu0 }
 0x2a1   : > { %v3826_v41 = vadd.f32 %v3728_v7, %v3677_v61  ;;  %v3644_v7 = vshll.u32 %v4990_v6, 16 }
 0x2a2   : > { %v3148_v28 = vpop.f32.mrf.mxu1 }
 0x2a3   : > { %v3646_v31 = vrot.slane %v3644_v7, 2 }
 0x2a5   : > { %v3647_v22 = vor.u32 %v3646_v31, %v3643_v2  ;;  %v4005_v31 = vrot.slane %v4003_v35, 2 }
 0x2a8   : > { %v6297_v38 = vpop.f32.mrf.mxu0  ;;  %4951 = vmatmul.msk.bf16.vlgmr.msra.gmra.mxu3 %vm1432_vm10, %v5103_v56  ;;  %v3850_v56 = vld [vmem:[#allocation4 + $0x5c] sm:$0xf] }
 0x2a9   : > { %3670 = vmatpush.bf16.msra.mxu3 %v3661_v48  ;;  %v3827_v19 = vadd.f32 %v6297_v38, %v3678_v10  ;;  %v3656_v38 = vsel %vm1964_vm13, %v3647_v22, %v3655_v40 }
 0x2aa   : > { %v3276_v50 = vpop.f32.mrf.mxu1 }
 0x2ab   : > { %v6300_v53 = vadd.f32 %v3276_v50, %v3146_v52  ;;  %v3451_v52 = vsel %vm1776_vm12, %v3449_v12, %v3450_v43  ;;  %v5123_v12 = vld [vmem:[#allocation3 + $0x24] sm:$0xf0] }
 0x2ad   : > { %5026 = vmatmul.msk.bf16.vlgmr.msra.gmra.mxu2 %vm1432_vm10, %v3965_v36  ;;  %v4015_v36 = vsel %vm1439_vm0, %v3850_v56, 0 }
 0x2b0   : > { %v3891_v49 = vpop.f32.mrf.mxu0 }
 0x2b1   : > { %v4031_v58 = vadd.f32 %v3891_v49, %v3826_v41 }
 0x2b2   : > { %v3278_v9 = vpop.f32.mrf.mxu1 }
 0x2b3   : > { %v6305_v26 = vadd.f32 %v3278_v9, %v3148_v28  ;;  %v3800_v9 = vunpack.c.l.b16 %v3696_v27  ;;  %v6342_v46 = vpop.permute.xlu0 %4304 }
 0x2b5   : > { %v3802_v44 = vpack.c.b16 %v3800_v9, %v3800_v9 }
 0x2b8   : > { %v3893_v57 = vpop.f32.mrf.mxu0  ;;  %4971 = vmatmul.msk.bf16.vlgmr.msrb.gmra.mxu3 %vm1432_vm10, %v3451_v52 }
 0x2b9   : > { %3819 = vmatpush.bf16.msrb.mxu3 %v3810_v11  ;;  %v4032_v39 = vadd.f32 %v3893_v57, %v3827_v19  ;;  %v3804_v57 = vrot.slane %v3802_v44, 2  ;;  %v4164_v11 = vsel %vm1439_vm0, %v4055_v13, 0  ;;  %vm4350_vm0 = vcmask 57344  }
 0x2ba   : > { %v6310_v29 = vpop.f32.mrf.mxu1 }
 0x2bb   : > { %v3805_v41 = vsel %vm2214_vm14, %v3803_v51, %v3804_v57  ;;  %v6365_v40 = vpop.permute.xlu0 %4309  ;;  %v3474_v13 = vadd.f32 %v6310_v29, %v6300_v53  ;;  %v5049_v51 = vld [vmem:[#allocation3 + $0x24] sm:$0x8] }
 0x2bd   : > { %5046 = vmatmul.msk.bf16.vlgmr.msrb.gmra.mxu2 %vm1432_vm10, %v4128_v14  ;;  %v5029_v14 = vld [vmem:[#allocation3 + $0x24] sm:$0xc] }
 0x2c0   : > { %v4082_v62 = vpop.f32.mrf.mxu0 }
 0x2c1   : > { %v4180_v47 = vadd.f32 %v4082_v62, %v4031_v58  ;;  %v5030_v58 = vor.u32 %v5123_v12, %v5029_v14 }
 0x2c2   : > { %v6323_v54 = vpop.f32.mrf.mxu1 }
 0x2c3   : > { %v6325_v28 = vadd.f32 %v5173_v0, %v4180_v47  ;;  %v3995_v47 = vshrl.u32 %v5030_v58, 16  ;;  %v3998_v17 = vshll.u32 %v5030_v58, 16  ;;  %v3475_v53 = vadd.f32 %v6323_v54, %v6305_v26 }
 0x2c5   : > { %v4212_v33 = vmin.f32 %v6325_v28, 20.0  ;;  %vm4284_vm8 = vcmp.gt.f32.partialorder %v6325_v28, 20.0  ;;  %v4000_v22 = vrot.slane %v3998_v17, 3 }
 0x2c7   : > { %v4220_v23 = vmul.f32 1.442695, %v4212_v33 }
 0x2c8   : > { %v4084_v30 = vpop.f32.mrf.mxu0  ;;  %4991 = vmatmul.msk.bf16.vlgmr.msra.gmra.mxu3 %vm1432_vm10, %v3656_v38 }
 0x2c9   : > { %5225 = vpow2.f32 %v4220_v23  ;;  %v4181_v50 = vadd.f32 %v4084_v30, %v4032_v39  ;;  %4024 = vmatpush.bf16.msra.mxu3 %v4015_v36  ;;  %v4008_v39 = vrot.slane %v4006_v42, 3 }
 0x2ca   : > { %v6329_v37 = vpop.f32.mrf.mxu1 }
 0x2cb   : > { %v6331_v48 = vadd.f32 %v5173_v0, %v4181_v50  ;;  %v3997_v50 = vrot.slane %v3995_v47, 2  ;;  %v4009_v38 = vor.u32 %v4008_v39, %v4005_v31  ;;  %v3679_v12 = vadd.f32 %v6329_v37, %v3474_v13 }
 0x2cd   : > { %v4213_v25 = vmin.f32 %v6331_v48, 20.0  ;;  %vm4285_vm9 = vcmp.gt.f32.partialorder %v6331_v48, 20.0 }
 0x2cf   : > { %v5226_v49 = vpop.eup %5225  ;;  %v4222_v20 = vmul.f32 1.442695, %v4213_v25 }
 0x2d0   : > { %v4236_v55 = vadd.f32 2.0, %v5226_v49 }
 0x2d1   : > { %5227 = vpow2.f32 %v4222_v20 }
 0x2d2   : > { %v4244_v21 = vmul.f32 %v5226_v49, %v4236_v55  ;;  %v6337_v5 = vpop.f32.mrf.mxu1  ;;  %v4001_v49 = vor.u32 %v4000_v22, %v3997_v50 }
 0x2d4   : > { %v4260_v18 = vadd.f32 2.0, %v4244_v21  ;;  %v4252_v61 = vmul.f32 %v4244_v21, %v6325_v28  ;;  %v4010_v16 = vsel %vm2408_vm15, %v4001_v49, %v4009_v38 }
 0x2d6   : > { %5229 = vrcp.f32 %v4260_v18 }
 0x2d7   : > { %v5228_v45 = vpop.eup %5227 }
 0x2d8   : > { %v4237_v43 = vadd.f32 2.0, %v5228_v45  ;;  %5011 = vmatmul.msk.bf16.vlgmr.msrb.gmra.mxu3 %vm1432_vm10, %v3805_v41 }
 0x2d9   : > { %4173 = vmatpush.bf16.msrb.mxu3 %v4164_v11 }
 0x2da   : > { %v4245_v15 = vmul.f32 %v5228_v45, %v4237_v43  ;;  %v6340_v63 = vpop.f32.mrf.mxu1 }
 0x2db   : > { %v3828_v11 = vadd.f32 %v6340_v63, %v3679_v12  ;;  %v3680_v63 = vadd.f32 %v6337_v5, %v3475_v53 }
 0x2dc   : > { %v5230_v52 = vpop.eup %5229  ;;  %v4261_v8 = vadd.f32 2.0, %v4245_v15  ;;  %v4253_v32 = vmul.f32 %v4245_v15, %v6331_v48  ;;  %v4156_v15 = vpack.c.b16 %v4154_v1, %v4154_v1 }
 0x2dd   : > { %v4276_v6 = vmul.f32 %v5230_v52, %v4252_v61  ;;  %v5050_v61 = vor.u32 %v5127_v59, %v5049_v51 }
 0x2de   : > { %5231 = vrcp.f32 %v4261_v8  ;;  %v4158_v52 = vrot.slane %v4156_v15, 3 }
 0x2df   : > { %v4292_v0 = vsel %vm4284_vm8, %v6325_v28, %v4276_v6  ;;  %v4157_v14 = vrot.slane %v5050_v61, 3  ;;  %v5174_v6 = vld [vmem:[%s6557_s5 + $0x1] ss:$0 sm:$0xff] }
 0x2e0   : > { %v4312_v62 = vmul.f32 %v6342_v46, %v4292_v0  ;;  %v3186_v60 = vpop.f32.mrf.mxu2 }
 0x2e1   : > { %v4159_v29 = vsel %vm2658_vm4, %v4157_v14, %v4158_v52 }
 0x2e2   : > { %v4322_v4 = vrot.slane %v4312_v62, 1  ;;  %v4323_v7 = vrot.slane %v4312_v62, 2  ;;  %v4324_v10 = vrot.slane %v4312_v62, 3  ;;  %4351 = vst.msk [vmem:[%s6352_s20] sm:$0x1] %vm4350_vm0, %v4312_v62  ;;  %v4325_v19 = vrot.slane %v4312_v62, 4  ;;  %v6359_v28 = vpop.f32.mrf.mxu1 }
 0x2e3   : > { %v4326_v2 = vrot.slane %v4312_v62, 5  ;;  %v4327_v23 = vrot.slane %v4312_v62, 6  ;;  %v4328_v56 = vrot.slane %v4312_v62, 7  ;;  %v3829_v62 = vadd.f32 %v6359_v28, %v3680_v63 }
 0x2e4   : > { %v5232_v33 = vpop.eup %5231  ;;  %4352 = vst.msk [vmem:[%s6352_s20 + $0x4] sm:$0x1] %vm4350_vm0, %v4322_v4 }
 0x2e5   : > { %4353 = vst.msk [vmem:[%s6352_s20 + $0x8] sm:$0x1] %vm4350_vm0, %v4323_v7  ;;  %v4277_v30 = vmul.f32 %v5232_v33, %v4253_v32 }
 0x2e6   : > { %4354 = vst.msk [vmem:[%s6352_s20 + $0xc] sm:$0x1] %vm4350_vm0, %v4324_v10 }
 0x2e7   : > { %4355 = vst.msk [vmem:[%s6352_s20 + $0x10] sm:$0x1] %vm4350_vm0, %v4325_v19  ;;  %v4293_v36 = vsel %vm4285_vm9, %v6331_v48, %v4277_v30 }
 0x2e8   : > { %4356 = vst.msk [vmem:[%s6352_s20 + $0x14] sm:$0x1] %vm4350_vm0, %v4326_v2  ;;  %v4313_v25 = vmul.f32 %v6365_v40, %v4293_v36  ;;  %v3188_v27 = vpop.f32.mrf.mxu2  ;;  %5031 = vmatmul.msk.bf16.vlgmr.msra.gmra.mxu3 %vm1432_vm10, %v4010_v16 }
 0x2e9   : > { %4357 = vst.msk [vmem:[%s6352_s20 + $0x18] sm:$0x1] %vm4350_vm0, %v4327_v23 }
 0x2ea   : > { %4358 = vst.msk [vmem:[%s6352_s20 + $0x1c] sm:$0x1] %vm4350_vm0, %v4328_v56  ;;  %v4329_v20 = vrot.slane %v4313_v25, 1  ;;  %v4330_v55 = vrot.slane %v4313_v25, 2  ;;  %v4331_v9 = vrot.slane %v4313_v25, 3  ;;  %v4332_v48 = vrot.slane %v4313_v25, 4  ;;  %v3936_v21 = vpop.f32.mrf.mxu1 }
 0x2eb   : > { %4359 = vst.msk [vmem:[%s6352_s20 + $0x20] sm:$0x1] %vm4350_vm0, %v4313_v25  ;;  %v4333_v18 = vrot.slane %v4313_v25, 5  ;;  %v4334_v44 = vrot.slane %v4313_v25, 6  ;;  %v4335_v24 = vrot.slane %v4313_v25, 7  ;;  %v4033_v41 = vadd.f32 %v3936_v21, %v3828_v11 }
 0x2ec   : > { %4360 = vst.msk [vmem:[%s6352_s20 + $0x24] sm:$0x1] %vm4350_vm0, %v4329_v20 }
 0x2ed   : > { %4361 = vst.msk [vmem:[%s6352_s20 + $0x28] sm:$0x1] %vm4350_vm0, %v4330_v55 }
 0x2ee   : > { %4362 = vst.msk [vmem:[%s6352_s20 + $0x2c] sm:$0x1] %vm4350_vm0, %v4331_v9 }
 0x2ef   : > { %4363 = vst.msk [vmem:[%s6352_s20 + $0x30] sm:$0x1] %vm4350_vm0, %v4332_v48 }
 0x2f0   : > { %4364 = vst.msk [vmem:[%s6352_s20 + $0x34] sm:$0x1] %vm4350_vm0, %v4333_v18  ;;  %v3301_v45 = vpop.f32.mrf.mxu2 }
 0x2f1   : > { %4365 = vst.msk [vmem:[%s6352_s20 + $0x38] sm:$0x1] %vm4350_vm0, %v4334_v44  ;;  %v6398_v43 = vadd.f32 %v3301_v45, %v3186_v60 }
 0x2f2   : > { %4366 = vst.msk [vmem:[%s6352_s20 + $0x3c] sm:$0x1] %vm4350_vm0, %v4335_v24  ;;  %v3938_v57 = vpop.f32.mrf.mxu1 }
 0x2f3   : > { %v4034_v60 = vadd.f32 %v3938_v57, %v3829_v62  ;;  %v5175_v62 = vld [vmem:[%s6557_s5 + $0x2] ss:$0 sm:$0xff] }
 0x2f8   : > { %v3303_v8 = vpop.f32.mrf.mxu2  ;;  %5051 = vmatmul.msk.bf16.vlgmr.msrb.gmra.mxu3 %vm1432_vm10, %v4159_v29 }
 0x2f9   : > { %v6404_v3 = vadd.f32 %v3303_v8, %v3188_v27 }
 0x2fa   : > { %v4113_v58 = vpop.f32.mrf.mxu1 }
 0x2fb   : > { %v4182_v37 = vadd.f32 %v4113_v58, %v4033_v41 }
 0x2fd   : > { %v4206_v0 = vadd.f32 %v5174_v6, %v4182_v37 }
 0x2ff   : > { %v4214_v35 = vmin.f32 %v4206_v0, 20.0  ;;  %vm4286_vm10 = vcmp.gt.f32.partialorder %v4206_v0, 20.0 }
 0x300   : > { %v6415_v42 = vpop.f32.mrf.mxu2 }
 0x301   : > { %v4224_v47 = vmul.f32 1.442695, %v4214_v35  ;;  %v3476_v53 = vadd.f32 %v6415_v42, %v6398_v43 }
 0x302   : > { %v4115_v4 = vpop.f32.mrf.mxu1 }
 0x303   : > { %5233 = vpow2.f32 %v4224_v47  ;;  %v4183_v7 = vadd.f32 %v4115_v4, %v4034_v60 }
 0x305   : > { %v4207_v10 = vadd.f32 %v5174_v6, %v4183_v7 }
 0x307   : > { %v4215_v26 = vmin.f32 %v4207_v10, 20.0  ;;  %vm4287_vm12 = vcmp.gt.f32.partialorder %v4207_v10, 20.0 }
 0x308   : > { %v6417_v54 = vpop.f32.mrf.mxu2 }
 0x309   : > { %v5234_v17 = vpop.eup %5233  ;;  %v4226_v32 = vmul.f32 1.442695, %v4215_v26  ;;  %v3477_v60 = vadd.f32 %v6417_v54, %v6404_v3 }
 0x30a   : > { %v4238_v19 = vadd.f32 2.0, %v5234_v17 }
 0x30b   : > { %5235 = vpow2.f32 %v4226_v32 }
 0x30c   : > { %v4246_v5 = vmul.f32 %v5234_v17, %v4238_v19 }
 0x30e   : > { %v4262_v33 = vadd.f32 2.0, %v4246_v5  ;;  %v4254_v23 = vmul.f32 %v4246_v5, %v4206_v0 }
 0x310   : > { %5237 = vrcp.f32 %v4262_v33  ;;  %v3627_v28 = vpop.f32.mrf.mxu2 }
 0x311   : > { %v5236_v2 = vpop.eup %5235  ;;  %v3681_v29 = vadd.f32 %v3627_v28, %v3476_v53 }
 0x312   : > { %v4239_v31 = vadd.f32 2.0, %v5236_v2 }
 0x314   : > { %v4247_v39 = vmul.f32 %v5236_v2, %v4239_v31 }
 0x316   : > { %v5238_v30 = vpop.eup %5237  ;;  %v4263_v56 = vadd.f32 2.0, %v4247_v39  ;;  %v4255_v55 = vmul.f32 %v4247_v39, %v4207_v10 }
 0x317   : > { %v4278_v50 = vmul.f32 %v5238_v30, %v4254_v23 }
 0x318   : > { %5239 = vrcp.f32 %v4263_v56  ;;  %v3629_v22 = vpop.f32.mrf.mxu2 }
 0x319   : > { %v4294_v36 = vsel %vm4286_vm10, %v4206_v0, %v4278_v50  ;;  %v3682_v4 = vadd.f32 %v3629_v22, %v3477_v60 }
 0x31a   : > { %v4314_v38 = vmul.f32 %v6342_v46, %v4294_v36 }
 0x31b   : > { %v3226_v18 = vpop.f32.mrf.mxu3 }
 0x31c   : > { %v4369_v25 = vrot.slane %v4314_v38, 1  ;;  %v4370_v27 = vrot.slane %v4314_v38, 2  ;;  %v4371_v49 = vrot.slane %v4314_v38, 3  ;;  %4397 = vst.msk [vmem:[%s6352_s20 + $0x1] sm:$0x1] %vm4350_vm0, %v4314_v38  ;;  %v4372_v20 = vrot.slane %v4314_v38, 4 }
 0x31d   : > { %v4373_v48 = vrot.slane %v4314_v38, 5  ;;  %v4374_v21 = vrot.slane %v4314_v38, 6  ;;  %v4375_v44 = vrot.slane %v4314_v38, 7 }
 0x31e   : > { %v5240_v9 = vpop.eup %5239  ;;  %4398 = vst.msk [vmem:[%s6352_s20 + $0x5] sm:$0x1] %vm4350_vm0, %v4369_v25 }
 0x31f   : > { %4399 = vst.msk [vmem:[%s6352_s20 + $0x9] sm:$0x1] %vm4350_vm0, %v4370_v27  ;;  %v4279_v16 = vmul.f32 %v5240_v9, %v4255_v55 }
 0x320   : > { %4400 = vst.msk [vmem:[%s6352_s20 + $0xd] sm:$0x1] %vm4350_vm0, %v4371_v49  ;;  %v3790_v34 = vpop.f32.mrf.mxu2 }
 0x321   : > { %4401 = vst.msk [vmem:[%s6352_s20 + $0x11] sm:$0x1] %vm4350_vm0, %v4372_v20  ;;  %v4295_v24 = vsel %vm4287_vm12, %v4207_v10, %v4279_v16  ;;  %v3830_v37 = vadd.f32 %v3790_v34, %v3681_v29 }
 0x322   : > { %4402 = vst.msk [vmem:[%s6352_s20 + $0x15] sm:$0x1] %vm4350_vm0, %v4373_v48  ;;  %v4315_v1 = vmul.f32 %v6365_v40, %v4295_v24 }
 0x323   : > { %4403 = vst.msk [vmem:[%s6352_s20 + $0x19] sm:$0x1] %vm4350_vm0, %v4374_v21  ;;  %v3228_v12 = vpop.f32.mrf.mxu3 }
 0x324   : > { %4404 = vst.msk [vmem:[%s6352_s20 + $0x1d] sm:$0x1] %vm4350_vm0, %v4375_v44  ;;  %v4376_v45 = vrot.slane %v4315_v1, 1  ;;  %v4377_v57 = vrot.slane %v4315_v1, 2  ;;  %v4378_v59 = vrot.slane %v4315_v1, 3  ;;  %v4379_v13 = vrot.slane %v4315_v1, 4 }
 0x325   : > { %4405 = vst.msk [vmem:[%s6352_s20 + $0x21] sm:$0x1] %vm4350_vm0, %v4315_v1  ;;  %v4380_v15 = vrot.slane %v4315_v1, 5  ;;  %v4381_v51 = vrot.slane %v4315_v1, 6  ;;  %v4382_v61 = vrot.slane %v4315_v1, 7 }
 0x326   : > { %4406 = vst.msk [vmem:[%s6352_s20 + $0x25] sm:$0x1] %vm4350_vm0, %v4376_v45 }
 0x327   : > { %4407 = vst.msk [vmem:[%s6352_s20 + $0x29] sm:$0x1] %vm4350_vm0, %v4377_v57 }
 0x328   : > { %4408 = vst.msk [vmem:[%s6352_s20 + $0x2d] sm:$0x1] %vm4350_vm0, %v4378_v59  ;;  %v3792_v11 = vpop.f32.mrf.mxu2 }
 0x329   : > { %4409 = vst.msk [vmem:[%s6352_s20 + $0x31] sm:$0x1] %vm4350_vm0, %v4379_v13  ;;  %v3831_v10 = vadd.f32 %v3792_v11, %v3682_v4 }
 0x32a   : > { %4410 = vst.msk [vmem:[%s6352_s20 + $0x35] sm:$0x1] %vm4350_vm0, %v4380_v15 }
 0x32b   : > { %4411 = vst.msk [vmem:[%s6352_s20 + $0x39] sm:$0x1] %vm4350_vm0, %v4381_v51  ;;  %v3326_v52 = vpop.f32.mrf.mxu3 }
 0x32c   : > { %4412 = vst.msk [vmem:[%s6352_s20 + $0x3d] sm:$0x1] %vm4350_vm0, %v4382_v61  ;;  %v6453_v8 = vadd.f32 %v3326_v52, %v3226_v18 }
 0x330   : > { %v3981_v41 = vpop.f32.mrf.mxu2 }
 0x331   : > { %v4035_v63 = vadd.f32 %v3981_v41, %v3830_v37 }
 0x333   : > { %v3328_v14 = vpop.f32.mrf.mxu3 }
 0x334   : > { %v6455_v6 = vadd.f32 %v3328_v14, %v3228_v12 }
 0x338   : > { %v3983_v58 = vpop.f32.mrf.mxu2 }
 0x339   : > { %v4036_v17 = vadd.f32 %v3983_v58, %v3831_v10 }
 0x33b   : > { %v6459_v0 = vpop.f32.mrf.mxu3 }
 0x33c   : > { %v3478_v58 = vadd.f32 %v6459_v0, %v6453_v8 }
 0x340   : > { %v4144_v35 = vpop.f32.mrf.mxu2 }
 0x341   : > { %v4184_v47 = vadd.f32 %v4144_v35, %v4035_v63  ;;  %v5176_v63 = vld [vmem:[%s6557_s5 + $0x3] ss:$0 sm:$0xff] }
 0x343   : > { %v4208_v7 = vadd.f32 %v5175_v62, %v4184_v47  ;;  %v6466_v43 = vpop.f32.mrf.mxu3 }
 0x344   : > { %v3479_v35 = vadd.f32 %v6466_v43, %v6455_v6 }
 0x345   : > { %v4216_v26 = vmin.f32 %v4208_v7, 20.0  ;;  %vm4288_vm13 = vcmp.gt.f32.partialorder %v4208_v7, 20.0 }
 0x347   : > { %v4228_v42 = vmul.f32 1.442695, %v4216_v26 }
 0x348   : > { %v4146_v32 = vpop.f32.mrf.mxu2 }
 0x349   : > { %5241 = vpow2.f32 %v4228_v42  ;;  %v4185_v19 = vadd.f32 %v4146_v32, %v4036_v17 }
 0x34b   : > { %v4209_v5 = vadd.f32 %v5175_v62, %v4185_v19  ;;  %v3672_v2 = vpop.f32.mrf.mxu3 }
 0x34c   : > { %v3683_v53 = vadd.f32 %v3672_v2, %v3478_v58 }
 0x34d   : > { %v4217_v33 = vmin.f32 %v4209_v5, 20.0  ;;  %vm4289_vm14 = vcmp.gt.f32.partialorder %v4209_v5, 20.0 }
 0x34f   : > { %v5242_v28 = vpop.eup %5241  ;;  %v4230_v31 = vmul.f32 1.442695, %v4217_v33 }
 0x350   : > { %v4240_v39 = vadd.f32 2.0, %v5242_v28 }
 0x351   : > { %5243 = vpow2.f32 %v4230_v31 }
 0x352   : > { %v4248_v3 = vmul.f32 %v5242_v28, %v4240_v39 }
 0x353   : > { %v3674_v30 = vpop.f32.mrf.mxu3 }
 0x354   : > { %v4264_v54 = vadd.f32 2.0, %v4248_v3  ;;  %v4256_v22 = vmul.f32 %v4248_v3, %v4208_v7  ;;  %v3684_v47 = vadd.f32 %v3674_v30, %v3479_v35 }
 0x356   : > { %5245 = vrcp.f32 %v4264_v54 }
 0x357   : > { %v5244_v23 = vpop.eup %5243 }
 0x358   : > { %v4241_v56 = vadd.f32 2.0, %v5244_v23 }
 0x35a   : > { %v4249_v50 = vmul.f32 %v5244_v23, %v4241_v56 }
 0x35b   : > { %v3821_v49 = vpop.f32.mrf.mxu3 }
 0x35c   : > { %v5246_v36 = vpop.eup %5245  ;;  %v4265_v38 = vadd.f32 2.0, %v4249_v50  ;;  %v4257_v16 = vmul.f32 %v4249_v50, %v4209_v5  ;;  %v3832_v29 = vadd.f32 %v3821_v49, %v3683_v53 }
 0x35d   : > { %v4280_v25 = vmul.f32 %v5246_v36, %v4256_v22 }
 0x35e   : > { %5247 = vrcp.f32 %v4265_v38 }
 0x35f   : > { %v4296_v27 = vsel %vm4288_vm13, %v4208_v7, %v4280_v25 }
 0x360   : > { %v4316_v20 = vmul.f32 %v6342_v46, %v4296_v27 }
 0x362   : > { %v4415_v55 = vrot.slane %v4316_v20, 1  ;;  %v4416_v9 = vrot.slane %v4316_v20, 2  ;;  %v4417_v48 = vrot.slane %v4316_v20, 3  ;;  %4443 = vst.msk [vmem:[%s6352_s20 + $0x2] sm:$0x1] %vm4350_vm0, %v4316_v20  ;;  %v4418_v21 = vrot.slane %v4316_v20, 4 }
 0x363   : > { %v4419_v44 = vrot.slane %v4316_v20, 5  ;;  %v4420_v34 = vrot.slane %v4316_v20, 6  ;;  %v4421_v1 = vrot.slane %v4316_v20, 7  ;;  %v3823_v57 = vpop.f32.mrf.mxu3 }
 0x364   : > { %v5248_v18 = vpop.eup %5247  ;;  %4444 = vst.msk [vmem:[%s6352_s20 + $0x6] sm:$0x1] %vm4350_vm0, %v4415_v55  ;;  %v3833_v7 = vadd.f32 %v3823_v57, %v3684_v47 }
 0x365   : > { %4445 = vst.msk [vmem:[%s6352_s20 + $0xa] sm:$0x1] %vm4350_vm0, %v4416_v9  ;;  %v4281_v24 = vmul.f32 %v5248_v18, %v4257_v16 }
 0x366   : > { %4446 = vst.msk [vmem:[%s6352_s20 + $0xe] sm:$0x1] %vm4350_vm0, %v4417_v48 }
 0x367   : > { %4447 = vst.msk [vmem:[%s6352_s20 + $0x12] sm:$0x1] %vm4350_vm0, %v4418_v21  ;;  %v4297_v45 = vsel %vm4289_vm14, %v4209_v5, %v4281_v24 }
 0x368   : > { %4448 = vst.msk [vmem:[%s6352_s20 + $0x16] sm:$0x1] %vm4350_vm0, %v4419_v44  ;;  %v4317_v59 = vmul.f32 %v6365_v40, %v4297_v45 }
 0x369   : > { %4449 = vst.msk [vmem:[%s6352_s20 + $0x1a] sm:$0x1] %vm4350_vm0, %v4420_v34 }
 0x36a   : > { %4450 = vst.msk [vmem:[%s6352_s20 + $0x1e] sm:$0x1] %vm4350_vm0, %v4421_v1  ;;  %v4422_v13 = vrot.slane %v4317_v59, 1  ;;  %v4423_v15 = vrot.slane %v4317_v59, 2  ;;  %v4424_v51 = vrot.slane %v4317_v59, 3  ;;  %v4425_v12 = vrot.slane %v4317_v59, 4 }
 0x36b   : > { %4451 = vst.msk [vmem:[%s6352_s20 + $0x22] sm:$0x1] %vm4350_vm0, %v4317_v59  ;;  %v4426_v61 = vrot.slane %v4317_v59, 5  ;;  %v4427_v11 = vrot.slane %v4317_v59, 6  ;;  %v4428_v52 = vrot.slane %v4317_v59, 7  ;;  %v4026_v41 = vpop.f32.mrf.mxu3 }
 0x36c   : > { %4452 = vst.msk [vmem:[%s6352_s20 + $0x26] sm:$0x1] %vm4350_vm0, %v4422_v13  ;;  %v4037_v37 = vadd.f32 %v4026_v41, %v3832_v29 }
 0x36d   : > { %4453 = vst.msk [vmem:[%s6352_s20 + $0x2a] sm:$0x1] %vm4350_vm0, %v4423_v15 }
 0x36e   : > { %4454 = vst.msk [vmem:[%s6352_s20 + $0x2e] sm:$0x1] %vm4350_vm0, %v4424_v51 }
 0x36f   : > { %4455 = vst.msk [vmem:[%s6352_s20 + $0x32] sm:$0x1] %vm4350_vm0, %v4425_v12 }
 0x370   : > { %4456 = vst.msk [vmem:[%s6352_s20 + $0x36] sm:$0x1] %vm4350_vm0, %v4426_v61 }
 0x371   : > { %4457 = vst.msk [vmem:[%s6352_s20 + $0x3a] sm:$0x1] %vm4350_vm0, %v4427_v11 }
 0x372   : > { %4458 = vst.msk [vmem:[%s6352_s20 + $0x3e] sm:$0x1] %vm4350_vm0, %v4428_v52 }
 0x373   : > { %v4028_v14 = vpop.f32.mrf.mxu3 }
 0x374   : > { %v4038_v26 = vadd.f32 %v4028_v14, %v3833_v7 }
 0x37b   : > { %v4175_v62 = vpop.f32.mrf.mxu3 }
 0x37c   : > { %v4186_v60 = vadd.f32 %v4175_v62, %v4037_v37 }
 0x37e   : > { %v4210_v4 = vadd.f32 %v5176_v63, %v4186_v60 }
 0x380   : > { %v4218_v10 = vmin.f32 %v4210_v4, 20.0  ;;  %vm4290_vm15 = vcmp.gt.f32.partialorder %v4210_v4, 20.0 }
 0x382   : > { %v4232_v17 = vmul.f32 1.442695, %v4218_v10 }
 0x383   : > { %v4177_v42 = vpop.f32.mrf.mxu3 }
 0x384   : > { %5249 = vpow2.f32 %v4232_v17  ;;  %v4187_v8 = vadd.f32 %v4177_v42, %v4038_v26 }
 0x386   : > { %v4211_v0 = vadd.f32 %v5176_v63, %v4187_v8 }
 0x388   : > { %v4219_v32 = vmin.f32 %v4211_v0, 20.0  ;;  %vm4291_vm4 = vcmp.gt.f32.partialorder %v4211_v0, 20.0 }
 0x38a   : > { %v5250_v19 = vpop.eup %5249  ;;  %v4234_v5 = vmul.f32 1.442695, %v4219_v32 }
 0x38b   : > { %v4242_v33 = vadd.f32 2.0, %v5250_v19 }
 0x38c   : > { %5251 = vpow2.f32 %v4234_v5 }
 0x38d   : > { %v4250_v28 = vmul.f32 %v5250_v19, %v4242_v33 }
 0x38f   : > { %v4266_v2 = vadd.f32 2.0, %v4250_v28  ;;  %v4258_v39 = vmul.f32 %v4250_v28, %v4210_v4 }
 0x391   : > { %5253 = vrcp.f32 %v4266_v2 }
 0x392   : > { %v5252_v6 = vpop.eup %5251 }
 0x393   : > { %v4243_v43 = vadd.f32 2.0, %v5252_v6 }
 0x395   : > { %v4251_v31 = vmul.f32 %v5252_v6, %v4243_v43 }
 0x397   : > { %v5254_v3 = vpop.eup %5253  ;;  %v4267_v54 = vadd.f32 2.0, %v4251_v31  ;;  %v4259_v25 = vmul.f32 %v4251_v31, %v4211_v0 }
 0x398   : > { %v4282_v23 = vmul.f32 %v5254_v3, %v4258_v39 }
 0x399   : > { %5255 = vrcp.f32 %v4267_v54 }
 0x39a   : > { %v4298_v30 = vsel %vm4290_vm15, %v4210_v4, %v4282_v23 }
 0x39b   : > { %v4318_v56 = vmul.f32 %v6342_v46, %v4298_v30 }
 0x39d   : > { %v4461_v50 = vrot.slane %v4318_v56, 1  ;;  %v4462_v22 = vrot.slane %v4318_v56, 2  ;;  %v4463_v36 = vrot.slane %v4318_v56, 3  ;;  %4489 = vst.msk [vmem:[%s6352_s20 + $0x3] sm:$0x1] %vm4350_vm0, %v4318_v56  ;;  %v4464_v38 = vrot.slane %v4318_v56, 4 }
 0x39e   : > { %v4465_v49 = vrot.slane %v4318_v56, 5  ;;  %v4466_v20 = vrot.slane %v4318_v56, 6  ;;  %v4467_v55 = vrot.slane %v4318_v56, 7 }
 0x39f   : > { %v5256_v27 = vpop.eup %5255  ;;  %4490 = vst.msk [vmem:[%s6352_s20 + $0x7] sm:$0x1] %vm4350_vm0, %v4461_v50 }
 0x3a0   : > { %4491 = vst.msk [vmem:[%s6352_s20 + $0xb] sm:$0x1] %vm4350_vm0, %v4462_v22  ;;  %v4283_v46 = vmul.f32 %v5256_v27, %v4259_v25 }
 0x3a1   : > { %4492 = vst.msk [vmem:[%s6352_s20 + $0xf] sm:$0x1] %vm4350_vm0, %v4463_v36 }
 0x3a2   : > { %4493 = vst.msk [vmem:[%s6352_s20 + $0x13] sm:$0x1] %vm4350_vm0, %v4464_v38  ;;  %v4299_v9 = vsel %vm4291_vm4, %v4211_v0, %v4283_v46 }
 0x3a3   : > { %4494 = vst.msk [vmem:[%s6352_s20 + $0x17] sm:$0x1] %vm4350_vm0, %v4465_v49  ;;  %v4319_v48 = vmul.f32 %v6365_v40, %v4299_v9 }
 0x3a4   : > { %4495 = vst.msk [vmem:[%s6352_s20 + $0x1b] sm:$0x1] %vm4350_vm0, %v4466_v20 }
 0x3a5   : > { %4496 = vst.msk [vmem:[%s6352_s20 + $0x1f] sm:$0x1] %vm4350_vm0, %v4467_v55  ;;  %v4468_v21 = vrot.slane %v4319_v48, 1  ;;  %v4469_v16 = vrot.slane %v4319_v48, 2  ;;  %v4470_v18 = vrot.slane %v4319_v48, 3  ;;  %v4471_v44 = vrot.slane %v4319_v48, 4 }
 0x3a6   : > { %4497 = vst.msk [vmem:[%s6352_s20 + $0x23] sm:$0x1] %vm4350_vm0, %v4319_v48  ;;  %v4472_v34 = vrot.slane %v4319_v48, 5  ;;  %v4473_v24 = vrot.slane %v4319_v48, 6  ;;  %v4474_v1 = vrot.slane %v4319_v48, 7 }
 0x3a7   : > { %4498 = vst.msk [vmem:[%s6352_s20 + $0x27] sm:$0x1] %vm4350_vm0, %v4468_v21 }
 0x3a8   : > { %4499 = vst.msk [vmem:[%s6352_s20 + $0x2b] sm:$0x1] %vm4350_vm0, %v4469_v16 }
 0x3a9   : > { %4500 = vst.msk [vmem:[%s6352_s20 + $0x2f] sm:$0x1] %vm4350_vm0, %v4470_v18 }
 0x3aa   : > { %4501 = vst.msk [vmem:[%s6352_s20 + $0x33] sm:$0x1] %vm4350_vm0, %v4471_v44 }
 0x3ab   : > { %4502 = vst.msk [vmem:[%s6352_s20 + $0x37] sm:$0x1] %vm4350_vm0, %v4472_v34 }
 0x3ac   : > { %4503 = vst.msk [vmem:[%s6352_s20 + $0x3b] sm:$0x1] %vm4350_vm0, %v4473_v24 }
 0x3ad   : > { %4504 = vst.msk [vmem:[%s6352_s20 + $0x3f] sm:$0x1] %vm4350_vm0, %v4474_v1 }
 0x3ae PF: > { %s18_s26 = sadd.s32 1, %s5313_s26   ;;  %s6560_s24 = smov %s5309_s25 }
 0x3af   : > { %p15_p8 = scmp.ge.s32.totalorder %s18_s26, 4   ;;  %s6561_s25 = smov %s6563_s28 }
 0x3b1   :  { %17 = sbr.rel (!%p15_p8) target bundleno = 2 (0x2), region = 128 }
 0x3b6   :  { %4535 = vsyncpa [#allocation5], 1 }
 0x3b7   :  { %4537 = vsyncpa [#allocation5 + $0x1], 1 }

</bundles_post_ra>
